<compile_context>
chip_gen: v7x
topology: tpu7x:2x2x1
jax: 0.10.0
libtpu: 0.0.40
codegen_flags: <defaults>
</compile_context>

<pallas_src>
import math

import numpy as np
import jax
import jax.numpy as jnp
from jax.experimental import pallas as pl
from jax.experimental.pallas import tpu as pltpu

# ----------------------------- configuration -------------------------------
N_NODE = 24       # number of items
EMB = 32          # emb_size
N_TIME = 2        # opt.n_time
N_LAYER = 2       # opt.layer
BATCH = 4         # session batch size
SEQ_LEN = 8       # session length
DECAY = 0.9       # opt.decay
OPT_BETA = 0.005  # opt.beta

f32 = jnp.float32
bf16 = jnp.bfloat16


def _ru8(x):
    return (x + 7) // 8 * 8


# ------------------------- derived layout constants ------------------------
BL = BATCH * SEQ_LEN                    # flattened session rows
VT = 2 * N_TIME                         # (view, time) combos: glob-t0..hyp-t1
GC_ROWS = VT * N_NODE                   # stacked adjacency / conv rows (96)
KW = VT * N_LAYER * EMB                 # packed conv output lane width (256)
OPS_W = max(EMB, N_NODE, BL)            # lane width of the operand slab

assert BL % 8 == 0 and N_NODE % 8 == 0 and EMB % 8 == 0

# operand ("bops") slab row offsets:  [ static head | batch-dependent tail ]
R_A = 0                                  # A_all            (GC_ROWS rows)
R_EMB = R_A + GC_ROWS                    # item embedding   (N_NODE rows)
R_POS = R_EMB + _ru8(N_NODE)             # pos_rep          (BL rows)
R_STATIC = R_POS + _ru8(BL)
R_SEL = R_STATIC                         # item one-hot     (BL rows)
R_HSEL = R_SEL + _ru8(BL)                # session-mean sel (BL rows)
R_SELM = R_HSEL + _ru8(BL)               # batch pooling    (BATCH rows)
R_TOT = R_SELM + _ru8(BATCH)

# column-vector slab rows
V_MASK = 0                               # session mask       (BL rows)
V_SIGN = _ru8(BL)                        # +1 / -1 pos|neg    (2*T*n rows)
V_DEC = V_SIGN + 2 * N_TIME * N_NODE     # decay**(w-1)       (2*T*n rows)
V_TOT = V_DEC + 2 * N_TIME * N_NODE

# numeric consts slab rows
C_BLK = 0                                # block-diag ones   (KW rows)
C_SUM = KW                               # stacked identity  (KW rows)
C_TM = 2 * KW                            # (view,t) mask     (GC_ROWS rows)
C_TOT = C_TM + GC_ROWS

# square-weight slab indices (each entry is (EMB, EMB))
SQ_G1, SQ_G2 = 0, 6        # per GRU: wih_r, wih_z, wih_n, whh_r, whh_z, whh_n
SQ_FC1, SQ_FC2 = 12, 14    # per MLP: w1, w2
SQ_GLU1, SQ_GLU2 = 16, 17
SQ_W1P, SQ_W1S = 18, 19    # w_1 split into pos / seq halves
SQ_W2 = 20                 # w_2 padded into column 0 of a (d, d) block
SQ_PCOL = 21               # shared column-shuffle permutation
SQ_TOT = 22

# bias slab rows
BI_G1, BI_G2 = 0, 6
BI_FC1, BI_FC2 = 12, 14
BI_GLU1 = 16
BI_TOT = 17

OUT_ROWS = _ru8(N_NODE + BATCH + 1)      # packed output slab rows


# =========================== fused Pallas kernel ===========================

def stgcr_fused_kernel(conv_ref, sqw_ref, bias_ref, bops_ref, prow_ref,
                       vecs_ref, consts_ref, out_ref):
    d, n, T, B = EMB, N_NODE, N_TIME, BATCH

    def sq(k):                       # (d, d) bf16 weight block
        return sqw_ref[k]

    def bias(k):                     # (1, d) f32 bias row
        return bias_ref[k:k + 1, :]

    def mm(a, b):                    # bf16 MXU matmul, f32 accumulate
        return jnp.dot(a.astype(bf16), b, preferred_element_type=f32)

    # ---- graph conv: both views x T x L in one lane-dense pass ------------
    emb = bops_ref[R_EMB:R_EMB + n, 0:d]                    # (n, d) bf16
    a_all = bops_ref[R_A:R_A + GC_ROWS, 0:n]                # (4n, n) bf16
    ax = jnp.dot(a_all, emb, preferred_element_type=f32)    # (4n, d)

    w_all = conv_ref[0:d, :]                                # (d, KW) bf16
    b_all = conv_ref[d:d + 1, :].astype(f32)                # (1, KW)
    hh = mm(ax, w_all) + b_all                              # (4n, KW)

    blk_ones = consts_ref[C_BLK:C_BLK + KW, :]              # block-diag ones
    ssq = mm(hh * hh, blk_ones)                             # per-layer-block ||.||^2
    hn = hh * jax.lax.rsqrt(jnp.maximum(ssq, 1e-24))        # F.normalize per block

    tmask = consts_ref[C_TM:C_TM + GC_ROWS, :].astype(f32)  # keep own (view,t) blocks
    sum_id = consts_ref[C_SUM:C_SUM + KW, 0:d]              # stacked identities
    acc = mm(hn * tmask, sum_id)                            # (4n, d): sum over layers

    # ---- GRU over time (gate-split weights -> lane-aligned, no slicing) ---
    def run_gru(x_all, wb, bb):
        xb = x_all.astype(bf16)
        gi = [jnp.dot(xb, sq(wb + g_), preferred_element_type=f32) + bias(bb + g_)
              for g_ in range(3)]                            # all T batched
        h = jnp.zeros((n, d), f32)
        hs = []
        for t in range(T):
            hb = h.astype(bf16)
            gh = [jnp.dot(hb, sq(wb + 3 + g_), preferred_element_type=f32)
                  + bias(bb + 3 + g_) for g_ in range(3)]
            r0 = t * n
            r = jax.nn.sigmoid(gi[0][r0:r0 + n] + gh[0])
            z = jax.nn.sigmoid(gi[1][r0:r0 + n] + gh[1])
            c = jnp.tanh(gi[2][r0:r0 + n] + r * gh[2])
            h = (1.0 - z) * c + z * h
            hs.append(h)
        return jnp.concatenate(hs, axis=0), h                # (T*n, d), (n, d)

    h1_all, x1 = run_gru(acc[0:T * n], SQ_G1, BI_G1)         # global view -> GRU1
    h2_all, x2 = run_gru(acc[T * n:2 * T * n], SQ_G2, BI_G2)  # hyper view  -> GRU2
    g = x1 + x2                                              # (n, d) f32

    # ---- STG_Co contrastive loss (all time slices batched) ----------------
    def mlp(x, wb, bb):
        hm = mm(x, sq(wb)) + bias(bb)
        hm = jnp.where(hm > 0, hm, 0.01 * hm)                # LeakyReLU
        return mm(hm, sq(wb + 1)) + bias(bb + 1)

    a1 = mlp(h2_all, SQ_FC1, BI_FC1)                         # fc1(z1 = H)
    a2 = mlp(h1_all, SQ_FC2, BI_FC2)                         # fc2(z2 = G)
    # TODO(synk): torch.randperm is nondeterministic; fixed per-time row perms
    # (block-diag) + one shared column perm, applied as matmuls (no gather).
    a2s = mm(jnp.dot(prow_ref[...], a2.astype(bf16),
                     preferred_element_type=f32), sq(SQ_PCOL))

    left = jnp.concatenate([a1, a1], axis=0)                 # (2*T*n, d)
    right = jnp.concatenate([a2, a2s], axis=0)               # pos rows | neg rows
    s = jnp.sum(left * right, axis=-1, keepdims=True)        # (2*T*n, 1)
    sgn = vecs_ref[V_SIGN:V_SIGN + 2 * T * n, :]             # +1 pos / -1 neg
    dec = vecs_ref[V_DEC:V_DEC + 2 * T * n, :]               # decay**(w-1), PyTorch-faithful
    # -log(1e-8 + sigmoid(pos)) - log(1e-8 + (1 - sigmoid(neg))), via sigmoid(-neg)
    term = -jnp.log(1e-8 + jax.nn.sigmoid(s * sgn))
    loss = jnp.sum(term * dec, axis=0, keepdims=True) * OPT_BETA   # (1, 1)

    # ---- generate_sess_emb (session attention) ----------------------------
    gb = g.astype(bf16)
    sel_hsel = bops_ref[R_SEL:R_SEL + 2 * BL, 0:n]           # [sel ; (bcast@pool)@sel]
    sh = jnp.dot(sel_hsel, gb, preferred_element_type=f32)   # (2*BL, d)
    seq_h = sh[0:BL]                                         # gathered item embeddings
    hs_f = sh[BL:2 * BL]                                     # broadcast session mean
    pos_rep = bops_ref[R_POS:R_POS + BL, 0:d]                # (BL, d) bf16
    nh = jnp.tanh(jnp.dot(pos_rep, sq(SQ_W1P), preferred_element_type=f32)
                  + mm(seq_h, sq(SQ_W1S)))
    gate = jax.nn.sigmoid(mm(nh, sq(SQ_GLU1)) + bias(BI_GLU1)
                          + mm(hs_f, sq(SQ_GLU2)))
    beta = mm(gate, sq(SQ_W2))[:, 0:1] * vecs_ref[V_MASK:V_MASK + BL, :]
    selmat = bops_ref[R_SELM:R_SELM + B, 0:BL]               # (B, BL) bf16
    S = jnp.dot(selmat, (beta * seq_h).astype(bf16), preferred_element_type=f32)

    # ---- single packed output slab: [g ; S ; loss broadcast] --------------
    fill = OUT_ROWS - n - B
    out_ref[...] = jnp.concatenate(
        [g, S, jnp.broadcast_to(loss, (fill, d))], axis=0)


# ====================== parameters / synthetic graph =======================

def init_params(key):
    stdv = 1.0 / math.sqrt(EMB)

    def uni(k, shape):
        return jax.random.uniform(k, shape, f32, -stdv, stdv)

    ks = iter(jax.random.split(key, 64))
    gru_shapes = [(EMB, 3 * EMB), (EMB, 3 * EMB), (1, 3 * EMB), (1, 3 * EMB)]
    fc_shapes = [(EMB, EMB), (1, EMB), (EMB, EMB), (1, EMB)]
    return {
        "embedding": uni(next(ks), (N_NODE, EMB)),
        "pos_embedding": uni(next(ks), (300, EMB)),
        "w_1": uni(next(ks), (2 * EMB, EMB)),
        "w_2": uni(next(ks), (EMB, 1)),
        "glu1_W": uni(next(ks), (EMB, EMB)),
        "glu1_b": uni(next(ks), (1, EMB)),
        "glu2_W": uni(next(ks), (EMB, EMB)),
        "gcn_W": uni(next(ks), (N_TIME * N_LAYER, EMB, EMB)),
        "gcn_b": uni(next(ks), (N_TIME * N_LAYER, 1, EMB)),
        "hyp_W": uni(next(ks), (N_TIME * N_LAYER, EMB, EMB)),
        "hyp_b": uni(next(ks), (N_TIME * N_LAYER, 1, EMB)),
        "gru1": tuple(uni(next(ks), s) for s in gru_shapes),
        "gru2": tuple(uni(next(ks), s) for s in gru_shapes),
        "fc1": tuple(uni(next(ks), s) for s in fc_shapes),
        "fc2": tuple(uni(next(ks), s) for s in fc_shapes),
    }


def make_graphs(key):
    """Deterministic dense stand-ins for the per-time-slice sparse graphs."""
    k1, k2 = jax.random.split(key)
    a = jax.random.uniform(k1, (N_TIME, N_NODE, N_NODE), f32, 0.0, 1.0)
    a = a / jnp.sum(a, axis=1, keepdims=True)
    h = jax.random.uniform(k2, (N_TIME, N_NODE, N_NODE), f32, 0.0, 1.0)
    h = h / jnp.sum(h, axis=2, keepdims=True)
    return a, h


# ======================== host-side slab packing ===========================

def pack_static(params, A_glob, A_hyp):
    d = EMB

    # packed graph-conv weights [glob t0l0 | t0l1 | t1l0 | t1l1 | hyp ...] + bias row
    w_cols = [params["gcn_W"][k] for k in range(N_TIME * N_LAYER)] + \
             [params["hyp_W"][k] for k in range(N_TIME * N_LAYER)]
    b_cols = [params["gcn_b"][k] for k in range(N_TIME * N_LAYER)] + \
             [params["hyp_b"][k] for k in range(N_TIME * N_LAYER)]
    conv = jnp.concatenate(
        [jnp.concatenate(w_cols, axis=1), jnp.concatenate(b_cols, axis=1)],
        axis=0).astype(bf16)                                   # (d + 1, KW)

    def split3(w):
        return [w[:, g * d:(g + 1) * d] for g in range(3)]

    g1_wih, g1_whh, g1_bih, g1_bhh = params["gru1"]
    g2_wih, g2_whh, g2_bih, g2_bhh = params["gru2"]
    f1_w1, f1_b1, f1_w2, f1_b2 = params["fc1"]
    f2_w1, f2_b1, f2_w2, f2_b2 = params["fc2"]
    w2_pad = jnp.zeros((d, d), f32).at[:, 0:1].set(params["w_2"])
    pcol = jax.nn.one_hot(
        jax.random.permutation(jax.random.PRNGKey(7), d), d, dtype=f32).T

    sq_list = (split3(g1_wih) + split3(g1_whh) + split3(g2_wih) + split3(g2_whh)
               + [f1_w1, f1_w2, f2_w1, f2_w2,
                  params["glu1_W"], params["glu2_W"],
                  params["w_1"][:d], params["w_1"][d:], w2_pad, pcol])
    assert len(sq_list) == SQ_TOT
    sqw = jnp.stack(sq_list, axis=0).astype(bf16)              # (SQ_TOT, d, d)

    biases = jnp.concatenate(
        split3(g1_bih) + split3(g1_bhh) + split3(g2_bih) + split3(g2_bhh)
        + [f1_b1, f1_b2, f2_b1, f2_b2, params["glu1_b"]], axis=0)   # (BI_TOT, d)

    # block-diag per-time row-shuffle permutation (deterministic stand-in)
    blocks = []
    for w in range(N_TIME):
        kr = jax.random.fold_in(jax.random.PRNGKey(42), w)
        perm = jax.random.permutation(kr, N_NODE)
        blocks.append(jax.nn.one_hot(perm, N_NODE, dtype=f32))
    prow = jax.scipy.linalg.block_diag(*blocks).astype(bf16)   # (T*n, T*n)

    # numeric consts: block-diag ones / stacked identity / (view,t) lane mask
    nblk = VT * N_LAYER
    blk = np.kron(np.eye(nblk, dtype=np.float32), np.ones((d, d), np.float32))
    sum_id = np.zeros((KW, KW), np.float32)
    sum_id[:, :d] = np.tile(np.eye(d, dtype=np.float32), (nblk, 1))
    row_vt = np.repeat(np.arange(VT), N_NODE)
    col_vt = np.repeat(np.arange(VT), N_LAYER * d)
    tmask = (row_vt[:, None] == col_vt[None, :]).astype(np.float32)
    consts = jnp.asarray(np.concatenate([blk, sum_id, tmask], axis=0), dtype=bf16)
    assert consts.shape == (C_TOT, KW)

    # static head of the operand slab: [A_all ; embedding ; pos_rep]
    def padw(x):
        return jnp.pad(x, ((0, 0), (0, OPS_W - x.shape[1])))

    A_all = jnp.concatenate([A_glob[t] for t in range(N_TIME)]
                            + [A_hyp[t] for t in range(N_TIME)], axis=0)
    pos_rep = jnp.tile(params["pos_embedding"][:SEQ_LEN], (BATCH, 1))
    bops_head = jnp.concatenate(
        [padw(A_all), padw(params["embedding"]), padw(pos_rep)],
        axis=0).astype(bf16)
    assert bops_head.shape == (R_STATIC, OPS_W)

    # static rows of the column-vector slab: sign / decay weights for co-loss
    sign = np.concatenate([np.ones(N_TIME * N_NODE, np.float32),
                           -np.ones(N_TIME * N_NODE, np.float32)])
    w_ids = np.repeat(np.arange(N_TIME, dtype=np.float32), N_NODE)
    dec = np.tile(DECAY ** (w_ids - 1.0), 2)   # faithful: decay ** (w - 1), w from 0
    vec_tail = jnp.asarray(np.concatenate([sign, dec])[:, None], dtype=f32)

    return {"conv": conv, "sqw": sqw, "bias": biases, "prow": prow,
            "consts": consts, "bops_head": bops_head, "vec_tail": vec_tail}


# =============================== forward ===================================

@jax.jit
def stgcr_forward(static, session_item, session_len, reversed_sess_item, mask):
    del session_item                         # unused in the PyTorch forward
    B, L = reversed_sess_item.shape

    # batch-dependent rows of the operand / vector slabs (tiny XLA-side prep)
    sel = jax.nn.one_hot(reversed_sess_item.reshape(-1) - 1, N_NODE, dtype=f32)
    selmat = jnp.kron(jnp.eye(B, dtype=f32), jnp.ones((1, L), f32))   # (B, BL)
    pool = selmat / session_len.reshape(B, 1)
    hsel = (selmat.T @ pool) @ sel            # folds bcast@pool@sel into one selector

    def padw(x):
        return jnp.pad(x, ((0, 0), (0, OPS_W - x.shape[1])))

    bops = jnp.concatenate(
        [static["bops_head"],
         padw(sel).astype(bf16),
         padw(hsel).astype(bf16),
         jnp.pad(padw(selmat), ((0, _ru8(B) - B), (0, 0))).astype(bf16)],
        axis=0)
    vecs = jnp.concatenate(
        [mask.astype(f32).reshape(B * L, 1), static["vec_tail"]], axis=0)

    vmem = pl.BlockSpec(memory_space=pltpu.MemorySpace.VMEM)
    out = pl.pallas_call(
        stgcr_fused_kernel,
        out_shape=jax.ShapeDtypeStruct((OUT_ROWS, EMB), f32),
        in_specs=[vmem] * 7,
        out_specs=vmem,
        cost_estimate=pl.CostEstimate(flops=18_000_000, transcendentals=40_000,
                                      bytes_accessed=400_000),
    )(static["conv"], static["sqw"], static["bias"], bops, static["prow"],
      vecs, static["consts"])

    g = out[:N_NODE]
    S = out[N_NODE:N_NODE + B]
    co_loss = out[N_NODE + B, 0]
    return g, S, co_loss


# ================================ main ======================================

if __name__ == "__main__":
    root = jax.random.PRNGKey(0)
    k_par, k_graph, k_sess = jax.random.split(root, 3)

    params = init_params(k_par)
    A_glob, A_hyp = make_graphs(k_graph)
    static = pack_static(params, A_glob, A_hyp)

    # synthetic session batch
    ki, km = jax.random.split(k_sess)
    items = jax.random.randint(ki, (BATCH, SEQ_LEN), 1, N_NODE + 1)
    lens = jax.random.randint(km, (BATCH,), 3, SEQ_LEN + 1)
    pos = jnp.arange(SEQ_LEN)[None, :]
    mask = (pos < lens[:, None]).astype(jnp.int32)           # (B, L)
    reversed_sess_item = items * mask                        # 0 = padding
    session_item = reversed_sess_item
    session_len = mask.sum(axis=1, keepdims=True).astype(f32)

    g, S, co_loss = stgcr_forward(static, session_item, session_len,
                                  reversed_sess_item, mask)
    jax.block_until_ready((g, S, co_loss))
    assert g.shape == (N_NODE, EMB)
    assert S.shape == (BATCH, EMB)
    assert co_loss.shape == ()
    print("KERNEL_OK")
</pallas_src>

<mosaic_0001>
module attributes {stable_mosaic.version = 11 : i64} {
  func.func @stgcr_fused_kernel(%arg0: memref<33x256xbf16, #tpu.memory_space<vmem>>, %arg1: memref<22x32x32xbf16, #tpu.memory_space<vmem>>, %arg2: memref<17x32xf32, #tpu.memory_space<vmem>>, %arg3: memref<224x32xbf16, #tpu.memory_space<vmem>>, %arg4: memref<48x48xbf16, #tpu.memory_space<vmem>>, %arg5: memref<224x1xf32, #tpu.memory_space<vmem>>, %arg6: memref<608x256xbf16, #tpu.memory_space<vmem>>, %arg7: memref<32x32xf32, #tpu.memory_space<vmem>>) attributes {dimension_semantics = [], scalar_prefetch = 0 : i64, scratch_operands = 0 : i64, tpu.core_type = #tpu.core_type<tc>} {
    %c96 = arith.constant 96 : index
    %c0 = arith.constant 0 : index
    %0 = vector.load %arg3[%c96, %c0] : memref<224x32xbf16, #tpu.memory_space<vmem>>, vector<24x32xbf16>
    %c0_0 = arith.constant 0 : index
    %c0_1 = arith.constant 0 : index
    %1 = vector.load %arg3[%c0_0, %c0_1] : memref<224x32xbf16, #tpu.memory_space<vmem>>, vector<96x24xbf16>
    %cst = arith.constant dense<0.000000e+00> : vector<96x32xf32>
    %2 = tpu.matmul %1, %0, %cst {dimension_numbers = #tpu.dot_dimension_numbers<[1], [0], [0], [1], [0, 0, 1, 1], [], []>} : vector<96x24xbf16>, vector<24x32xbf16>, vector<96x32xf32> -> vector<96x32xf32>
    %c0_2 = arith.constant 0 : index
    %c0_3 = arith.constant 0 : index
    %3 = vector.load %arg0[%c0_2, %c0_3] : memref<33x256xbf16, #tpu.memory_space<vmem>>, vector<32x256xbf16>
    %c32 = arith.constant 32 : index
    %c0_4 = arith.constant 0 : index
    %4 = vector.load %arg0[%c32, %c0_4] : memref<33x256xbf16, #tpu.memory_space<vmem>>, vector<1x256xbf16>
    %5 = arith.extf %4 : vector<1x256xbf16> to vector<1x256xf32>
    %6 = arith.truncf %2 : vector<96x32xf32> to vector<96x32xbf16>
    %cst_5 = arith.constant dense<0.000000e+00> : vector<96x256xf32>
    %7 = tpu.matmul %6, %3, %cst_5 {dimension_numbers = #tpu.dot_dimension_numbers<[1], [0], [0], [1], [0, 0, 1, 1], [], []>} : vector<96x32xbf16>, vector<32x256xbf16>, vector<96x256xf32> -> vector<96x256xf32>
    %8 = vector.broadcast %5 : vector<1x256xf32> to vector<96x256xf32>
    %9 = arith.addf %7, %8 : vector<96x256xf32>
    %c0_6 = arith.constant 0 : index
    %c0_7 = arith.constant 0 : index
    %10 = vector.load %arg6[%c0_6, %c0_7] : memref<608x256xbf16, #tpu.memory_space<vmem>>, vector<256x256xbf16>
    %11 = arith.mulf %9, %9 : vector<96x256xf32>
    %12 = arith.truncf %11 : vector<96x256xf32> to vector<96x256xbf16>
    %cst_8 = arith.constant dense<0.000000e+00> : vector<96x256xf32>
    %13 = tpu.matmul %12, %10, %cst_8 {dimension_numbers = #tpu.dot_dimension_numbers<[1], [0], [0], [1], [0, 0, 1, 1], [], []>} : vector<96x256xbf16>, vector<256x256xbf16>, vector<96x256xf32> -> vector<96x256xf32>
    %cst_9 = arith.constant 1.000000e-24 : f32
    %14 = vector.broadcast %cst_9 : f32 to vector<96x256xf32>
    %15 = arith.maximumf %13, %14 : vector<96x256xf32>
    %16 = math.rsqrt %15 : vector<96x256xf32>
    %17 = arith.mulf %9, %16 : vector<96x256xf32>
    %c512 = arith.constant 512 : index
    %c0_10 = arith.constant 0 : index
    %18 = vector.load %arg6[%c512, %c0_10] : memref<608x256xbf16, #tpu.memory_space<vmem>>, vector<96x256xbf16>
    %19 = arith.extf %18 : vector<96x256xbf16> to vector<96x256xf32>
    %c256 = arith.constant 256 : index
    %c0_11 = arith.constant 0 : index
    %20 = vector.load %arg6[%c256, %c0_11] : memref<608x256xbf16, #tpu.memory_space<vmem>>, vector<256x32xbf16>
    %21 = arith.mulf %17, %19 : vector<96x256xf32>
    %22 = arith.truncf %21 : vector<96x256xf32> to vector<96x256xbf16>
    %cst_12 = arith.constant dense<0.000000e+00> : vector<96x32xf32>
    %23 = tpu.matmul %22, %20, %cst_12 {dimension_numbers = #tpu.dot_dimension_numbers<[1], [0], [0], [1], [0, 0, 1, 1], [], []>} : vector<96x256xbf16>, vector<256x32xbf16>, vector<96x32xf32> -> vector<96x32xf32>
    %24 = vector.extract_strided_slice %23 {offsets = [0, 0], sizes = [48, 32], strides = [1, 1]} : vector<96x32xf32> to vector<48x32xf32>
    %25 = arith.truncf %24 : vector<48x32xf32> to vector<48x32xbf16>
    %c0_13 = arith.constant 0 : index
    %c0_14 = arith.constant 0 : index
    %c0_15 = arith.constant 0 : index
    %26 = vector.load %arg1[%c0_13, %c0_14, %c0_15] : memref<22x32x32xbf16, #tpu.memory_space<vmem>>, vector<1x32x32xbf16>
    %27 = vector.shape_cast %26 : vector<1x32x32xbf16> to vector<32x32xbf16>
    %cst_16 = arith.constant dense<0.000000e+00> : vector<48x32xf32>
    %28 = tpu.matmul %25, %27, %cst_16 {dimension_numbers = #tpu.dot_dimension_numbers<[1], [0], [0], [1], [0, 0, 1, 1], [], []>} : vector<48x32xbf16>, vector<32x32xbf16>, vector<48x32xf32> -> vector<48x32xf32>
    %c0_17 = arith.constant 0 : index
    %c0_18 = arith.constant 0 : index
    %29 = vector.load %arg2[%c0_17, %c0_18] : memref<17x32xf32, #tpu.memory_space<vmem>>, vector<1x32xf32>
    %30 = vector.broadcast %29 : vector<1x32xf32> to vector<48x32xf32>
    %31 = arith.addf %28, %30 : vector<48x32xf32>
    %c1 = arith.constant 1 : index
    %c0_19 = arith.constant 0 : index
    %c0_20 = arith.constant 0 : index
    %32 = vector.load %arg1[%c1, %c0_19, %c0_20] : memref<22x32x32xbf16, #tpu.memory_space<vmem>>, vector<1x32x32xbf16>
    %33 = vector.shape_cast %32 : vector<1x32x32xbf16> to vector<32x32xbf16>
    %cst_21 = arith.constant dense<0.000000e+00> : vector<48x32xf32>
    %34 = tpu.matmul %25, %33, %cst_21 {dimension_numbers = #tpu.dot_dimension_numbers<[1], [0], [0], [1], [0, 0, 1, 1], [], []>} : vector<48x32xbf16>, vector<32x32xbf16>, vector<48x32xf32> -> vector<48x32xf32>
    %c1_22 = arith.constant 1 : index
    %c0_23 = arith.constant 0 : index
    %35 = vector.load %arg2[%c1_22, %c0_23] : memref<17x32xf32, #tpu.memory_space<vmem>>, vector<1x32xf32>
    %36 = vector.broadcast %35 : vector<1x32xf32> to vector<48x32xf32>
    %37 = arith.addf %34, %36 : vector<48x32xf32>
    %c2 = arith.constant 2 : index
    %c0_24 = arith.constant 0 : index
    %c0_25 = arith.constant 0 : index
    %38 = vector.load %arg1[%c2, %c0_24, %c0_25] : memref<22x32x32xbf16, #tpu.memory_space<vmem>>, vector<1x32x32xbf16>
    %39 = vector.shape_cast %38 : vector<1x32x32xbf16> to vector<32x32xbf16>
    %cst_26 = arith.constant dense<0.000000e+00> : vector<48x32xf32>
    %40 = tpu.matmul %25, %39, %cst_26 {dimension_numbers = #tpu.dot_dimension_numbers<[1], [0], [0], [1], [0, 0, 1, 1], [], []>} : vector<48x32xbf16>, vector<32x32xbf16>, vector<48x32xf32> -> vector<48x32xf32>
    %c2_27 = arith.constant 2 : index
    %c0_28 = arith.constant 0 : index
    %41 = vector.load %arg2[%c2_27, %c0_28] : memref<17x32xf32, #tpu.memory_space<vmem>>, vector<1x32xf32>
    %42 = vector.broadcast %41 : vector<1x32xf32> to vector<48x32xf32>
    %43 = arith.addf %40, %42 : vector<48x32xf32>
    %cst_29 = arith.constant 0.000000e+00 : f32
    %44 = vector.broadcast %cst_29 : f32 to vector<24x32xf32>
    %45 = arith.truncf %44 : vector<24x32xf32> to vector<24x32xbf16>
    %c3 = arith.constant 3 : index
    %c0_30 = arith.constant 0 : index
    %c0_31 = arith.constant 0 : index
    %46 = vector.load %arg1[%c3, %c0_30, %c0_31] : memref<22x32x32xbf16, #tpu.memory_space<vmem>>, vector<1x32x32xbf16>
    %47 = vector.shape_cast %46 : vector<1x32x32xbf16> to vector<32x32xbf16>
    %cst_32 = arith.constant dense<0.000000e+00> : vector<24x32xf32>
    %48 = tpu.matmul %45, %47, %cst_32 {dimension_numbers = #tpu.dot_dimension_numbers<[1], [0], [0], [1], [0, 0, 1, 1], [], []>} : vector<24x32xbf16>, vector<32x32xbf16>, vector<24x32xf32> -> vector<24x32xf32>
    %c3_33 = arith.constant 3 : index
    %c0_34 = arith.constant 0 : index
    %49 = vector.load %arg2[%c3_33, %c0_34] : memref<17x32xf32, #tpu.memory_space<vmem>>, vector<1x32xf32>
    %50 = vector.broadcast %49 : vector<1x32xf32> to vector<24x32xf32>
    %51 = arith.addf %48, %50 : vector<24x32xf32>
    %c4 = arith.constant 4 : index
    %c0_35 = arith.constant 0 : index
    %c0_36 = arith.constant 0 : index
    %52 = vector.load %arg1[%c4, %c0_35, %c0_36] : memref<22x32x32xbf16, #tpu.memory_space<vmem>>, vector<1x32x32xbf16>
    %53 = vector.shape_cast %52 : vector<1x32x32xbf16> to vector<32x32xbf16>
    %cst_37 = arith.constant dense<0.000000e+00> : vector<24x32xf32>
    %54 = tpu.matmul %45, %53, %cst_37 {dimension_numbers = #tpu.dot_dimension_numbers<[1], [0], [0], [1], [0, 0, 1, 1], [], []>} : vector<24x32xbf16>, vector<32x32xbf16>, vector<24x32xf32> -> vector<24x32xf32>
    %c4_38 = arith.constant 4 : index
    %c0_39 = arith.constant 0 : index
    %55 = vector.load %arg2[%c4_38, %c0_39] : memref<17x32xf32, #tpu.memory_space<vmem>>, vector<1x32xf32>
    %56 = vector.broadcast %55 : vector<1x32xf32> to vector<24x32xf32>
    %57 = arith.addf %54, %56 : vector<24x32xf32>
    %c5 = arith.constant 5 : index
    %c0_40 = arith.constant 0 : index
    %c0_41 = arith.constant 0 : index
    %58 = vector.load %arg1[%c5, %c0_40, %c0_41] : memref<22x32x32xbf16, #tpu.memory_space<vmem>>, vector<1x32x32xbf16>
    %59 = vector.shape_cast %58 : vector<1x32x32xbf16> to vector<32x32xbf16>
    %cst_42 = arith.constant dense<0.000000e+00> : vector<24x32xf32>
    %60 = tpu.matmul %45, %59, %cst_42 {dimension_numbers = #tpu.dot_dimension_numbers<[1], [0], [0], [1], [0, 0, 1, 1], [], []>} : vector<24x32xbf16>, vector<32x32xbf16>, vector<24x32xf32> -> vector<24x32xf32>
    %c5_43 = arith.constant 5 : index
    %c0_44 = arith.constant 0 : index
    %61 = vector.load %arg2[%c5_43, %c0_44] : memref<17x32xf32, #tpu.memory_space<vmem>>, vector<1x32xf32>
    %62 = vector.broadcast %61 : vector<1x32xf32> to vector<24x32xf32>
    %63 = arith.addf %60, %62 : vector<24x32xf32>
    %64 = vector.extract_strided_slice %31 {offsets = [0, 0], sizes = [24, 32], strides = [1, 1]} : vector<48x32xf32> to vector<24x32xf32>
    %65 = arith.addf %64, %51 : vector<24x32xf32>
    %66 = arith.negf %65 : vector<24x32xf32>
    %67 = math.exp %66 : vector<24x32xf32>
    %cst_45 = arith.constant 1.000000e+00 : f32
    %68 = vector.broadcast %cst_45 : f32 to vector<24x32xf32>
    %69 = arith.addf %68, %67 : vector<24x32xf32>
    %70 = arith.divf %68, %69 : vector<24x32xf32>
    %71 = vector.extract_strided_slice %37 {offsets = [0, 0], sizes = [24, 32], strides = [1, 1]} : vector<48x32xf32> to vector<24x32xf32>
    %72 = arith.addf %71, %57 : vector<24x32xf32>
    %73 = arith.negf %72 : vector<24x32xf32>
    %74 = math.exp %73 : vector<24x32xf32>
    %cst_46 = arith.constant 1.000000e+00 : f32
    %75 = vector.broadcast %cst_46 : f32 to vector<24x32xf32>
    %76 = arith.addf %75, %74 : vector<24x32xf32>
    %77 = arith.divf %75, %76 : vector<24x32xf32>
    %78 = vector.extract_strided_slice %43 {offsets = [0, 0], sizes = [24, 32], strides = [1, 1]} : vector<48x32xf32> to vector<24x32xf32>
    %79 = arith.mulf %70, %63 : vector<24x32xf32>
    %80 = arith.addf %78, %79 : vector<24x32xf32>
    %81 = math.tanh %80 : vector<24x32xf32>
    %cst_47 = arith.constant 1.000000e+00 : f32
    %82 = vector.broadcast %cst_47 : f32 to vector<24x32xf32>
    %83 = arith.subf %82, %77 : vector<24x32xf32>
    %84 = arith.mulf %83, %81 : vector<24x32xf32>
    %85 = arith.mulf %77, %44 : vector<24x32xf32>
    %86 = arith.addf %84, %85 : vector<24x32xf32>
    %87 = arith.truncf %86 : vector<24x32xf32> to vector<24x32xbf16>
    %c3_48 = arith.constant 3 : index
    %c0_49 = arith.constant 0 : index
    %c0_50 = arith.constant 0 : index
    %88 = vector.load %arg1[%c3_48, %c0_49, %c0_50] : memref<22x32x32xbf16, #tpu.memory_space<vmem>>, vector<1x32x32xbf16>
    %89 = vector.shape_cast %88 : vector<1x32x32xbf16> to vector<32x32xbf16>
    %cst_51 = arith.constant dense<0.000000e+00> : vector<24x32xf32>
    %90 = tpu.matmul %87, %89, %cst_51 {dimension_numbers = #tpu.dot_dimension_numbers<[1], [0], [0], [1], [0, 0, 1, 1], [], []>} : vector<24x32xbf16>, vector<32x32xbf16>, vector<24x32xf32> -> vector<24x32xf32>
    %c3_52 = arith.constant 3 : index
    %c0_53 = arith.constant 0 : index
    %91 = vector.load %arg2[%c3_52, %c0_53] : memref<17x32xf32, #tpu.memory_space<vmem>>, vector<1x32xf32>
    %92 = vector.broadcast %91 : vector<1x32xf32> to vector<24x32xf32>
    %93 = arith.addf %90, %92 : vector<24x32xf32>
    %c4_54 = arith.constant 4 : index
    %c0_55 = arith.constant 0 : index
    %c0_56 = arith.constant 0 : index
    %94 = vector.load %arg1[%c4_54, %c0_55, %c0_56] : memref<22x32x32xbf16, #tpu.memory_space<vmem>>, vector<1x32x32xbf16>
    %95 = vector.shape_cast %94 : vector<1x32x32xbf16> to vector<32x32xbf16>
    %cst_57 = arith.constant dense<0.000000e+00> : vector<24x32xf32>
    %96 = tpu.matmul %87, %95, %cst_57 {dimension_numbers = #tpu.dot_dimension_numbers<[1], [0], [0], [1], [0, 0, 1, 1], [], []>} : vector<24x32xbf16>, vector<32x32xbf16>, vector<24x32xf32> -> vector<24x32xf32>
    %c4_58 = arith.constant 4 : index
    %c0_59 = arith.constant 0 : index
    %97 = vector.load %arg2[%c4_58, %c0_59] : memref<17x32xf32, #tpu.memory_space<vmem>>, vector<1x32xf32>
    %98 = vector.broadcast %97 : vector<1x32xf32> to vector<24x32xf32>
    %99 = arith.addf %96, %98 : vector<24x32xf32>
    %c5_60 = arith.constant 5 : index
    %c0_61 = arith.constant 0 : index
    %c0_62 = arith.constant 0 : index
    %100 = vector.load %arg1[%c5_60, %c0_61, %c0_62] : memref<22x32x32xbf16, #tpu.memory_space<vmem>>, vector<1x32x32xbf16>
    %101 = vector.shape_cast %100 : vector<1x32x32xbf16> to vector<32x32xbf16>
    %cst_63 = arith.constant dense<0.000000e+00> : vector<24x32xf32>
    %102 = tpu.matmul %87, %101, %cst_63 {dimension_numbers = #tpu.dot_dimension_numbers<[1], [0], [0], [1], [0, 0, 1, 1], [], []>} : vector<24x32xbf16>, vector<32x32xbf16>, vector<24x32xf32> -> vector<24x32xf32>
    %c5_64 = arith.constant 5 : index
    %c0_65 = arith.constant 0 : index
    %103 = vector.load %arg2[%c5_64, %c0_65] : memref<17x32xf32, #tpu.memory_space<vmem>>, vector<1x32xf32>
    %104 = vector.broadcast %103 : vector<1x32xf32> to vector<24x32xf32>
    %105 = arith.addf %102, %104 : vector<24x32xf32>
    %106 = vector.extract_strided_slice %31 {offsets = [24, 0], sizes = [24, 32], strides = [1, 1]} : vector<48x32xf32> to vector<24x32xf32>
    %107 = arith.addf %106, %93 : vector<24x32xf32>
    %108 = arith.negf %107 : vector<24x32xf32>
    %109 = math.exp %108 : vector<24x32xf32>
    %cst_66 = arith.constant 1.000000e+00 : f32
    %110 = vector.broadcast %cst_66 : f32 to vector<24x32xf32>
    %111 = arith.addf %110, %109 : vector<24x32xf32>
    %112 = arith.divf %110, %111 : vector<24x32xf32>
    %113 = vector.extract_strided_slice %37 {offsets = [24, 0], sizes = [24, 32], strides = [1, 1]} : vector<48x32xf32> to vector<24x32xf32>
    %114 = arith.addf %113, %99 : vector<24x32xf32>
    %115 = arith.negf %114 : vector<24x32xf32>
    %116 = math.exp %115 : vector<24x32xf32>
    %cst_67 = arith.constant 1.000000e+00 : f32
    %117 = vector.broadcast %cst_67 : f32 to vector<24x32xf32>
    %118 = arith.addf %117, %116 : vector<24x32xf32>
    %119 = arith.divf %117, %118 : vector<24x32xf32>
    %120 = vector.extract_strided_slice %43 {offsets = [24, 0], sizes = [24, 32], strides = [1, 1]} : vector<48x32xf32> to vector<24x32xf32>
    %121 = arith.mulf %112, %105 : vector<24x32xf32>
    %122 = arith.addf %120, %121 : vector<24x32xf32>
    %123 = math.tanh %122 : vector<24x32xf32>
    %cst_68 = arith.constant 1.000000e+00 : f32
    %124 = vector.broadcast %cst_68 : f32 to vector<24x32xf32>
    %125 = arith.subf %124, %119 : vector<24x32xf32>
    %126 = arith.mulf %125, %123 : vector<24x32xf32>
    %127 = arith.mulf %119, %86 : vector<24x32xf32>
    %128 = arith.addf %126, %127 : vector<24x32xf32>
    %129 = tpu.concatenate %86, %128 in 0 : vector<24x32xf32>, vector<24x32xf32> -> vector<48x32xf32>
    %130 = vector.extract_strided_slice %23 {offsets = [48, 0], sizes = [48, 32], strides = [1, 1]} : vector<96x32xf32> to vector<48x32xf32>
    %131 = arith.truncf %130 : vector<48x32xf32> to vector<48x32xbf16>
    %c6 = arith.constant 6 : index
    %c0_69 = arith.constant 0 : index
    %c0_70 = arith.constant 0 : index
    %132 = vector.load %arg1[%c6, %c0_69, %c0_70] : memref<22x32x32xbf16, #tpu.memory_space<vmem>>, vector<1x32x32xbf16>
    %133 = vector.shape_cast %132 : vector<1x32x32xbf16> to vector<32x32xbf16>
    %cst_71 = arith.constant dense<0.000000e+00> : vector<48x32xf32>
    %134 = tpu.matmul %131, %133, %cst_71 {dimension_numbers = #tpu.dot_dimension_numbers<[1], [0], [0], [1], [0, 0, 1, 1], [], []>} : vector<48x32xbf16>, vector<32x32xbf16>, vector<48x32xf32> -> vector<48x32xf32>
    %c6_72 = arith.constant 6 : index
    %c0_73 = arith.constant 0 : index
    %135 = vector.load %arg2[%c6_72, %c0_73] : memref<17x32xf32, #tpu.memory_space<vmem>>, vector<1x32xf32>
    %136 = vector.broadcast %135 : vector<1x32xf32> to vector<48x32xf32>
    %137 = arith.addf %134, %136 : vector<48x32xf32>
    %c7 = arith.constant 7 : index
    %c0_74 = arith.constant 0 : index
    %c0_75 = arith.constant 0 : index
    %138 = vector.load %arg1[%c7, %c0_74, %c0_75] : memref<22x32x32xbf16, #tpu.memory_space<vmem>>, vector<1x32x32xbf16>
    %139 = vector.shape_cast %138 : vector<1x32x32xbf16> to vector<32x32xbf16>
    %cst_76 = arith.constant dense<0.000000e+00> : vector<48x32xf32>
    %140 = tpu.matmul %131, %139, %cst_76 {dimension_numbers = #tpu.dot_dimension_numbers<[1], [0], [0], [1], [0, 0, 1, 1], [], []>} : vector<48x32xbf16>, vector<32x32xbf16>, vector<48x32xf32> -> vector<48x32xf32>
    %c7_77 = arith.constant 7 : index
    %c0_78 = arith.constant 0 : index
    %141 = vector.load %arg2[%c7_77, %c0_78] : memref<17x32xf32, #tpu.memory_space<vmem>>, vector<1x32xf32>
    %142 = vector.broadcast %141 : vector<1x32xf32> to vector<48x32xf32>
    %143 = arith.addf %140, %142 : vector<48x32xf32>
    %c8 = arith.constant 8 : index
    %c0_79 = arith.constant 0 : index
    %c0_80 = arith.constant 0 : index
    %144 = vector.load %arg1[%c8, %c0_79, %c0_80] : memref<22x32x32xbf16, #tpu.memory_space<vmem>>, vector<1x32x32xbf16>
    %145 = vector.shape_cast %144 : vector<1x32x32xbf16> to vector<32x32xbf16>
    %cst_81 = arith.constant dense<0.000000e+00> : vector<48x32xf32>
    %146 = tpu.matmul %131, %145, %cst_81 {dimension_numbers = #tpu.dot_dimension_numbers<[1], [0], [0], [1], [0, 0, 1, 1], [], []>} : vector<48x32xbf16>, vector<32x32xbf16>, vector<48x32xf32> -> vector<48x32xf32>
    %c8_82 = arith.constant 8 : index
    %c0_83 = arith.constant 0 : index
    %147 = vector.load %arg2[%c8_82, %c0_83] : memref<17x32xf32, #tpu.memory_space<vmem>>, vector<1x32xf32>
    %148 = vector.broadcast %147 : vector<1x32xf32> to vector<48x32xf32>
    %149 = arith.addf %146, %148 : vector<48x32xf32>
    %cst_84 = arith.constant 0.000000e+00 : f32
    %150 = vector.broadcast %cst_84 : f32 to vector<24x32xf32>
    %151 = arith.truncf %150 : vector<24x32xf32> to vector<24x32xbf16>
    %c9 = arith.constant 9 : index
    %c0_85 = arith.constant 0 : index
    %c0_86 = arith.constant 0 : index
    %152 = vector.load %arg1[%c9, %c0_85, %c0_86] : memref<22x32x32xbf16, #tpu.memory_space<vmem>>, vector<1x32x32xbf16>
    %153 = vector.shape_cast %152 : vector<1x32x32xbf16> to vector<32x32xbf16>
    %cst_87 = arith.constant dense<0.000000e+00> : vector<24x32xf32>
    %154 = tpu.matmul %151, %153, %cst_87 {dimension_numbers = #tpu.dot_dimension_numbers<[1], [0], [0], [1], [0, 0, 1, 1], [], []>} : vector<24x32xbf16>, vector<32x32xbf16>, vector<24x32xf32> -> vector<24x32xf32>
    %c9_88 = arith.constant 9 : index
    %c0_89 = arith.constant 0 : index
    %155 = vector.load %arg2[%c9_88, %c0_89] : memref<17x32xf32, #tpu.memory_space<vmem>>, vector<1x32xf32>
    %156 = vector.broadcast %155 : vector<1x32xf32> to vector<24x32xf32>
    %157 = arith.addf %154, %156 : vector<24x32xf32>
    %c10 = arith.constant 10 : index
    %c0_90 = arith.constant 0 : index
    %c0_91 = arith.constant 0 : index
    %158 = vector.load %arg1[%c10, %c0_90, %c0_91] : memref<22x32x32xbf16, #tpu.memory_space<vmem>>, vector<1x32x32xbf16>
    %159 = vector.shape_cast %158 : vector<1x32x32xbf16> to vector<32x32xbf16>
    %cst_92 = arith.constant dense<0.000000e+00> : vector<24x32xf32>
    %160 = tpu.matmul %151, %159, %cst_92 {dimension_numbers = #tpu.dot_dimension_numbers<[1], [0], [0], [1], [0, 0, 1, 1], [], []>} : vector<24x32xbf16>, vector<32x32xbf16>, vector<24x32xf32> -> vector<24x32xf32>
    %c10_93 = arith.constant 10 : index
    %c0_94 = arith.constant 0 : index
    %161 = vector.load %arg2[%c10_93, %c0_94] : memref<17x32xf32, #tpu.memory_space<vmem>>, vector<1x32xf32>
    %162 = vector.broadcast %161 : vector<1x32xf32> to vector<24x32xf32>
    %163 = arith.addf %160, %162 : vector<24x32xf32>
    %c11 = arith.constant 11 : index
    %c0_95 = arith.constant 0 : index
    %c0_96 = arith.constant 0 : index
    %164 = vector.load %arg1[%c11, %c0_95, %c0_96] : memref<22x32x32xbf16, #tpu.memory_space<vmem>>, vector<1x32x32xbf16>
    %165 = vector.shape_cast %164 : vector<1x32x32xbf16> to vector<32x32xbf16>
    %cst_97 = arith.constant dense<0.000000e+00> : vector<24x32xf32>
    %166 = tpu.matmul %151, %165, %cst_97 {dimension_numbers = #tpu.dot_dimension_numbers<[1], [0], [0], [1], [0, 0, 1, 1], [], []>} : vector<24x32xbf16>, vector<32x32xbf16>, vector<24x32xf32> -> vector<24x32xf32>
    %c11_98 = arith.constant 11 : index
    %c0_99 = arith.constant 0 : index
    %167 = vector.load %arg2[%c11_98, %c0_99] : memref<17x32xf32, #tpu.memory_space<vmem>>, vector<1x32xf32>
    %168 = vector.broadcast %167 : vector<1x32xf32> to vector<24x32xf32>
    %169 = arith.addf %166, %168 : vector<24x32xf32>
    %170 = vector.extract_strided_slice %137 {offsets = [0, 0], sizes = [24, 32], strides = [1, 1]} : vector<48x32xf32> to vector<24x32xf32>
    %171 = arith.addf %170, %157 : vector<24x32xf32>
    %172 = arith.negf %171 : vector<24x32xf32>
    %173 = math.exp %172 : vector<24x32xf32>
    %cst_100 = arith.constant 1.000000e+00 : f32
    %174 = vector.broadcast %cst_100 : f32 to vector<24x32xf32>
    %175 = arith.addf %174, %173 : vector<24x32xf32>
    %176 = arith.divf %174, %175 : vector<24x32xf32>
    %177 = vector.extract_strided_slice %143 {offsets = [0, 0], sizes = [24, 32], strides = [1, 1]} : vector<48x32xf32> to vector<24x32xf32>
    %178 = arith.addf %177, %163 : vector<24x32xf32>
    %179 = arith.negf %178 : vector<24x32xf32>
    %180 = math.exp %179 : vector<24x32xf32>
    %cst_101 = arith.constant 1.000000e+00 : f32
    %181 = vector.broadcast %cst_101 : f32 to vector<24x32xf32>
    %182 = arith.addf %181, %180 : vector<24x32xf32>
    %183 = arith.divf %181, %182 : vector<24x32xf32>
    %184 = vector.extract_strided_slice %149 {offsets = [0, 0], sizes = [24, 32], strides = [1, 1]} : vector<48x32xf32> to vector<24x32xf32>
    %185 = arith.mulf %176, %169 : vector<24x32xf32>
    %186 = arith.addf %184, %185 : vector<24x32xf32>
    %187 = math.tanh %186 : vector<24x32xf32>
    %cst_102 = arith.constant 1.000000e+00 : f32
    %188 = vector.broadcast %cst_102 : f32 to vector<24x32xf32>
    %189 = arith.subf %188, %183 : vector<24x32xf32>
    %190 = arith.mulf %189, %187 : vector<24x32xf32>
    %191 = arith.mulf %183, %150 : vector<24x32xf32>
    %192 = arith.addf %190, %191 : vector<24x32xf32>
    %193 = arith.truncf %192 : vector<24x32xf32> to vector<24x32xbf16>
    %c9_103 = arith.constant 9 : index
    %c0_104 = arith.constant 0 : index
    %c0_105 = arith.constant 0 : index
    %194 = vector.load %arg1[%c9_103, %c0_104, %c0_105] : memref<22x32x32xbf16, #tpu.memory_space<vmem>>, vector<1x32x32xbf16>
    %195 = vector.shape_cast %194 : vector<1x32x32xbf16> to vector<32x32xbf16>
    %cst_106 = arith.constant dense<0.000000e+00> : vector<24x32xf32>
    %196 = tpu.matmul %193, %195, %cst_106 {dimension_numbers = #tpu.dot_dimension_numbers<[1], [0], [0], [1], [0, 0, 1, 1], [], []>} : vector<24x32xbf16>, vector<32x32xbf16>, vector<24x32xf32> -> vector<24x32xf32>
    %c9_107 = arith.constant 9 : index
    %c0_108 = arith.constant 0 : index
    %197 = vector.load %arg2[%c9_107, %c0_108] : memref<17x32xf32, #tpu.memory_space<vmem>>, vector<1x32xf32>
    %198 = vector.broadcast %197 : vector<1x32xf32> to vector<24x32xf32>
    %199 = arith.addf %196, %198 : vector<24x32xf32>
    %c10_109 = arith.constant 10 : index
    %c0_110 = arith.constant 0 : index
    %c0_111 = arith.constant 0 : index
    %200 = vector.load %arg1[%c10_109, %c0_110, %c0_111] : memref<22x32x32xbf16, #tpu.memory_space<vmem>>, vector<1x32x32xbf16>
    %201 = vector.shape_cast %200 : vector<1x32x32xbf16> to vector<32x32xbf16>
    %cst_112 = arith.constant dense<0.000000e+00> : vector<24x32xf32>
    %202 = tpu.matmul %193, %201, %cst_112 {dimension_numbers = #tpu.dot_dimension_numbers<[1], [0], [0], [1], [0, 0, 1, 1], [], []>} : vector<24x32xbf16>, vector<32x32xbf16>, vector<24x32xf32> -> vector<24x32xf32>
    %c10_113 = arith.constant 10 : index
    %c0_114 = arith.constant 0 : index
    %203 = vector.load %arg2[%c10_113, %c0_114] : memref<17x32xf32, #tpu.memory_space<vmem>>, vector<1x32xf32>
    %204 = vector.broadcast %203 : vector<1x32xf32> to vector<24x32xf32>
    %205 = arith.addf %202, %204 : vector<24x32xf32>
    %c11_115 = arith.constant 11 : index
    %c0_116 = arith.constant 0 : index
    %c0_117 = arith.constant 0 : index
    %206 = vector.load %arg1[%c11_115, %c0_116, %c0_117] : memref<22x32x32xbf16, #tpu.memory_space<vmem>>, vector<1x32x32xbf16>
    %207 = vector.shape_cast %206 : vector<1x32x32xbf16> to vector<32x32xbf16>
    %cst_118 = arith.constant dense<0.000000e+00> : vector<24x32xf32>
    %208 = tpu.matmul %193, %207, %cst_118 {dimension_numbers = #tpu.dot_dimension_numbers<[1], [0], [0], [1], [0, 0, 1, 1], [], []>} : vector<24x32xbf16>, vector<32x32xbf16>, vector<24x32xf32> -> vector<24x32xf32>
    %c11_119 = arith.constant 11 : index
    %c0_120 = arith.constant 0 : index
    %209 = vector.load %arg2[%c11_119, %c0_120] : memref<17x32xf32, #tpu.memory_space<vmem>>, vector<1x32xf32>
    %210 = vector.broadcast %209 : vector<1x32xf32> to vector<24x32xf32>
    %211 = arith.addf %208, %210 : vector<24x32xf32>
    %212 = vector.extract_strided_slice %137 {offsets = [24, 0], sizes = [24, 32], strides = [1, 1]} : vector<48x32xf32> to vector<24x32xf32>
    %213 = arith.addf %212, %199 : vector<24x32xf32>
    %214 = arith.negf %213 : vector<24x32xf32>
    %215 = math.exp %214 : vector<24x32xf32>
    %cst_121 = arith.constant 1.000000e+00 : f32
    %216 = vector.broadcast %cst_121 : f32 to vector<24x32xf32>
    %217 = arith.addf %216, %215 : vector<24x32xf32>
    %218 = arith.divf %216, %217 : vector<24x32xf32>
    %219 = vector.extract_strided_slice %143 {offsets = [24, 0], sizes = [24, 32], strides = [1, 1]} : vector<48x32xf32> to vector<24x32xf32>
    %220 = arith.addf %219, %205 : vector<24x32xf32>
    %221 = arith.negf %220 : vector<24x32xf32>
    %222 = math.exp %221 : vector<24x32xf32>
    %cst_122 = arith.constant 1.000000e+00 : f32
    %223 = vector.broadcast %cst_122 : f32 to vector<24x32xf32>
    %224 = arith.addf %223, %222 : vector<24x32xf32>
    %225 = arith.divf %223, %224 : vector<24x32xf32>
    %226 = vector.extract_strided_slice %149 {offsets = [24, 0], sizes = [24, 32], strides = [1, 1]} : vector<48x32xf32> to vector<24x32xf32>
    %227 = arith.mulf %218, %211 : vector<24x32xf32>
    %228 = arith.addf %226, %227 : vector<24x32xf32>
    %229 = math.tanh %228 : vector<24x32xf32>
    %cst_123 = arith.constant 1.000000e+00 : f32
    %230 = vector.broadcast %cst_123 : f32 to vector<24x32xf32>
    %231 = arith.subf %230, %225 : vector<24x32xf32>
    %232 = arith.mulf %231, %229 : vector<24x32xf32>
    %233 = arith.mulf %225, %192 : vector<24x32xf32>
    %234 = arith.addf %232, %233 : vector<24x32xf32>
    %235 = tpu.concatenate %192, %234 in 0 : vector<24x32xf32>, vector<24x32xf32> -> vector<48x32xf32>
    %236 = arith.addf %128, %234 : vector<24x32xf32>
    %c12 = arith.constant 12 : index
    %c0_124 = arith.constant 0 : index
    %c0_125 = arith.constant 0 : index
    %237 = vector.load %arg1[%c12, %c0_124, %c0_125] : memref<22x32x32xbf16, #tpu.memory_space<vmem>>, vector<1x32x32xbf16>
    %238 = vector.shape_cast %237 : vector<1x32x32xbf16> to vector<32x32xbf16>
    %239 = arith.truncf %235 : vector<48x32xf32> to vector<48x32xbf16>
    %cst_126 = arith.constant dense<0.000000e+00> : vector<48x32xf32>
    %240 = tpu.matmul %239, %238, %cst_126 {dimension_numbers = #tpu.dot_dimension_numbers<[1], [0], [0], [1], [0, 0, 1, 1], [], []>} : vector<48x32xbf16>, vector<32x32xbf16>, vector<48x32xf32> -> vector<48x32xf32>
    %c12_127 = arith.constant 12 : index
    %c0_128 = arith.constant 0 : index
    %241 = vector.load %arg2[%c12_127, %c0_128] : memref<17x32xf32, #tpu.memory_space<vmem>>, vector<1x32xf32>
    %242 = vector.broadcast %241 : vector<1x32xf32> to vector<48x32xf32>
    %243 = arith.addf %240, %242 : vector<48x32xf32>
    %cst_129 = arith.constant 0.000000e+00 : f32
    %244 = vector.broadcast %cst_129 : f32 to vector<48x32xf32>
    %245 = arith.cmpf ogt, %243, %244 : vector<48x32xf32>
    %cst_130 = arith.constant 0.00999999977 : f32
    %246 = vector.broadcast %cst_130 : f32 to vector<48x32xf32>
    %247 = arith.mulf %246, %243 : vector<48x32xf32>
    %248 = arith.select %245, %243, %247 : vector<48x32xi1>, vector<48x32xf32>
    %c13 = arith.constant 13 : index
    %c0_131 = arith.constant 0 : index
    %c0_132 = arith.constant 0 : index
    %249 = vector.load %arg1[%c13, %c0_131, %c0_132] : memref<22x32x32xbf16, #tpu.memory_space<vmem>>, vector<1x32x32xbf16>
    %250 = vector.shape_cast %249 : vector<1x32x32xbf16> to vector<32x32xbf16>
    %251 = arith.truncf %248 : vector<48x32xf32> to vector<48x32xbf16>
    %cst_133 = arith.constant dense<0.000000e+00> : vector<48x32xf32>
    %252 = tpu.matmul %251, %250, %cst_133 {dimension_numbers = #tpu.dot_dimension_numbers<[1], [0], [0], [1], [0, 0, 1, 1], [], []>} : vector<48x32xbf16>, vector<32x32xbf16>, vector<48x32xf32> -> vector<48x32xf32>
    %c13_134 = arith.constant 13 : index
    %c0_135 = arith.constant 0 : index
    %253 = vector.load %arg2[%c13_134, %c0_135] : memref<17x32xf32, #tpu.memory_space<vmem>>, vector<1x32xf32>
    %254 = vector.broadcast %253 : vector<1x32xf32> to vector<48x32xf32>
    %255 = arith.addf %252, %254 : vector<48x32xf32>
    %c14 = arith.constant 14 : index
    %c0_136 = arith.constant 0 : index
    %c0_137 = arith.constant 0 : index
    %256 = vector.load %arg1[%c14, %c0_136, %c0_137] : memref<22x32x32xbf16, #tpu.memory_space<vmem>>, vector<1x32x32xbf16>
    %257 = vector.shape_cast %256 : vector<1x32x32xbf16> to vector<32x32xbf16>
    %258 = arith.truncf %129 : vector<48x32xf32> to vector<48x32xbf16>
    %cst_138 = arith.constant dense<0.000000e+00> : vector<48x32xf32>
    %259 = tpu.matmul %258, %257, %cst_138 {dimension_numbers = #tpu.dot_dimension_numbers<[1], [0], [0], [1], [0, 0, 1, 1], [], []>} : vector<48x32xbf16>, vector<32x32xbf16>, vector<48x32xf32> -> vector<48x32xf32>
    %c14_139 = arith.constant 14 : index
    %c0_140 = arith.constant 0 : index
    %260 = vector.load %arg2[%c14_139, %c0_140] : memref<17x32xf32, #tpu.memory_space<vmem>>, vector<1x32xf32>
    %261 = vector.broadcast %260 : vector<1x32xf32> to vector<48x32xf32>
    %262 = arith.addf %259, %261 : vector<48x32xf32>
    %cst_141 = arith.constant 0.000000e+00 : f32
    %263 = vector.broadcast %cst_141 : f32 to vector<48x32xf32>
    %264 = arith.cmpf ogt, %262, %263 : vector<48x32xf32>
    %cst_142 = arith.constant 0.00999999977 : f32
    %265 = vector.broadcast %cst_142 : f32 to vector<48x32xf32>
    %266 = arith.mulf %265, %262 : vector<48x32xf32>
    %267 = arith.select %264, %262, %266 : vector<48x32xi1>, vector<48x32xf32>
    %c15 = arith.constant 15 : index
    %c0_143 = arith.constant 0 : index
    %c0_144 = arith.constant 0 : index
    %268 = vector.load %arg1[%c15, %c0_143, %c0_144] : memref<22x32x32xbf16, #tpu.memory_space<vmem>>, vector<1x32x32xbf16>
    %269 = vector.shape_cast %268 : vector<1x32x32xbf16> to vector<32x32xbf16>
    %270 = arith.truncf %267 : vector<48x32xf32> to vector<48x32xbf16>
    %cst_145 = arith.constant dense<0.000000e+00> : vector<48x32xf32>
    %271 = tpu.matmul %270, %269, %cst_145 {dimension_numbers = #tpu.dot_dimension_numbers<[1], [0], [0], [1], [0, 0, 1, 1], [], []>} : vector<48x32xbf16>, vector<32x32xbf16>, vector<48x32xf32> -> vector<48x32xf32>
    %c15_146 = arith.constant 15 : index
    %c0_147 = arith.constant 0 : index
    %272 = vector.load %arg2[%c15_146, %c0_147] : memref<17x32xf32, #tpu.memory_space<vmem>>, vector<1x32xf32>
    %273 = vector.broadcast %272 : vector<1x32xf32> to vector<48x32xf32>
    %274 = arith.addf %271, %273 : vector<48x32xf32>
    %c0_148 = arith.constant 0 : index
    %c0_149 = arith.constant 0 : index
    %275 = vector.load %arg4[%c0_148, %c0_149] : memref<48x48xbf16, #tpu.memory_space<vmem>>, vector<48x48xbf16>
    %276 = arith.truncf %274 : vector<48x32xf32> to vector<48x32xbf16>
    %cst_150 = arith.constant dense<0.000000e+00> : vector<48x32xf32>
    %277 = tpu.matmul %275, %276, %cst_150 {dimension_numbers = #tpu.dot_dimension_numbers<[1], [0], [0], [1], [0, 0, 1, 1], [], []>} : vector<48x48xbf16>, vector<48x32xbf16>, vector<48x32xf32> -> vector<48x32xf32>
    %c21 = arith.constant 21 : index
    %c0_151 = arith.constant 0 : index
    %c0_152 = arith.constant 0 : index
    %278 = vector.load %arg1[%c21, %c0_151, %c0_152] : memref<22x32x32xbf16, #tpu.memory_space<vmem>>, vector<1x32x32xbf16>
    %279 = vector.shape_cast %278 : vector<1x32x32xbf16> to vector<32x32xbf16>
    %280 = arith.truncf %277 : vector<48x32xf32> to vector<48x32xbf16>
    %cst_153 = arith.constant dense<0.000000e+00> : vector<48x32xf32>
    %281 = tpu.matmul %280, %279, %cst_153 {dimension_numbers = #tpu.dot_dimension_numbers<[1], [0], [0], [1], [0, 0, 1, 1], [], []>} : vector<48x32xbf16>, vector<32x32xbf16>, vector<48x32xf32> -> vector<48x32xf32>
    %282 = tpu.concatenate %255, %255 in 0 : vector<48x32xf32>, vector<48x32xf32> -> vector<96x32xf32>
    %283 = tpu.concatenate %274, %281 in 0 : vector<48x32xf32>, vector<48x32xf32> -> vector<96x32xf32>
    %284 = arith.mulf %282, %283 : vector<96x32xf32>
    %cst_154 = arith.constant dense<0.000000e+00> : vector<96xf32>
    %285 = vector.multi_reduction <add>, %284, %cst_154 [1] : vector<96x32xf32> to vector<96xf32>
    %286 = vector.shape_cast %285 : vector<96xf32> to vector<96x1xf32>
    %c32_155 = arith.constant 32 : index
    %c0_156 = arith.constant 0 : index
    %287 = vector.load %arg5[%c32_155, %c0_156] : memref<224x1xf32, #tpu.memory_space<vmem>>, vector<96x1xf32>
    %c128 = arith.constant 128 : index
    %c0_157 = arith.constant 0 : index
    %288 = vector.load %arg5[%c128, %c0_157] : memref<224x1xf32, #tpu.memory_space<vmem>>, vector<96x1xf32>
    %289 = arith.mulf %286, %287 : vector<96x1xf32>
    %290 = arith.negf %289 : vector<96x1xf32>
    %291 = math.exp %290 : vector<96x1xf32>
    %cst_158 = arith.constant 1.000000e+00 : f32
    %292 = vector.broadcast %cst_158 : f32 to vector<96x1xf32>
    %293 = arith.addf %292, %291 : vector<96x1xf32>
    %294 = arith.divf %292, %293 : vector<96x1xf32>
    %cst_159 = arith.constant 9.99999993E-9 : f32
    %295 = vector.broadcast %cst_159 : f32 to vector<96x1xf32>
    %296 = arith.addf %295, %294 : vector<96x1xf32>
    %297 = math.log %296 : vector<96x1xf32>
    %cst_160 = arith.constant 0.000000e+00 : f32
    %298 = vector.broadcast %cst_160 : f32 to vector<96x1xf32>
    %299 = arith.subf %298, %297 : vector<96x1xf32>
    %300 = arith.mulf %299, %288 : vector<96x1xf32>
    %cst_161 = arith.constant dense<0.000000e+00> : vector<1xf32>
    %301 = vector.multi_reduction <add>, %300, %cst_161 [0] : vector<96x1xf32> to vector<1xf32>
    %302 = vector.shape_cast %301 : vector<1xf32> to vector<1x1xf32>
    %cst_162 = arith.constant 5.000000e-03 : f32
    %303 = vector.broadcast %cst_162 : f32 to vector<1x1xf32>
    %304 = arith.mulf %302, %303 : vector<1x1xf32>
    %305 = arith.truncf %236 : vector<24x32xf32> to vector<24x32xbf16>
    %c152 = arith.constant 152 : index
    %c0_163 = arith.constant 0 : index
    %306 = vector.load %arg3[%c152, %c0_163] : memref<224x32xbf16, #tpu.memory_space<vmem>>, vector<64x24xbf16>
    %cst_164 = arith.constant dense<0.000000e+00> : vector<64x32xf32>
    %307 = tpu.matmul %306, %305, %cst_164 {dimension_numbers = #tpu.dot_dimension_numbers<[1], [0], [0], [1], [0, 0, 1, 1], [], []>} : vector<64x24xbf16>, vector<24x32xbf16>, vector<64x32xf32> -> vector<64x32xf32>
    %308 = vector.extract_strided_slice %307 {offsets = [0, 0], sizes = [32, 32], strides = [1, 1]} : vector<64x32xf32> to vector<32x32xf32>
    %309 = vector.extract_strided_slice %307 {offsets = [32, 0], sizes = [32, 32], strides = [1, 1]} : vector<64x32xf32> to vector<32x32xf32>
    %c120 = arith.constant 120 : index
    %c0_165 = arith.constant 0 : index
    %310 = vector.load %arg3[%c120, %c0_165] : memref<224x32xbf16, #tpu.memory_space<vmem>>, vector<32x32xbf16>
    %c18 = arith.constant 18 : index
    %c0_166 = arith.constant 0 : index
    %c0_167 = arith.constant 0 : index
    %311 = vector.load %arg1[%c18, %c0_166, %c0_167] : memref<22x32x32xbf16, #tpu.memory_space<vmem>>, vector<1x32x32xbf16>
    %312 = vector.shape_cast %311 : vector<1x32x32xbf16> to vector<32x32xbf16>
    %cst_168 = arith.constant dense<0.000000e+00> : vector<32x32xf32>
    %313 = tpu.matmul %310, %312, %cst_168 {dimension_numbers = #tpu.dot_dimension_numbers<[1], [0], [0], [1], [0, 0, 1, 1], [], []>} : vector<32x32xbf16>, vector<32x32xbf16>, vector<32x32xf32> -> vector<32x32xf32>
    %c19 = arith.constant 19 : index
    %c0_169 = arith.constant 0 : index
    %c0_170 = arith.constant 0 : index
    %314 = vector.load %arg1[%c19, %c0_169, %c0_170] : memref<22x32x32xbf16, #tpu.memory_space<vmem>>, vector<1x32x32xbf16>
    %315 = vector.shape_cast %314 : vector<1x32x32xbf16> to vector<32x32xbf16>
    %316 = arith.truncf %308 : vector<32x32xf32> to vector<32x32xbf16>
    %cst_171 = arith.constant dense<0.000000e+00> : vector<32x32xf32>
    %317 = tpu.matmul %316, %315, %cst_171 {dimension_numbers = #tpu.dot_dimension_numbers<[1], [0], [0], [1], [0, 0, 1, 1], [], []>} : vector<32x32xbf16>, vector<32x32xbf16>, vector<32x32xf32> -> vector<32x32xf32>
    %318 = arith.addf %313, %317 : vector<32x32xf32>
    %319 = math.tanh %318 : vector<32x32xf32>
    %c16 = arith.constant 16 : index
    %c0_172 = arith.constant 0 : index
    %c0_173 = arith.constant 0 : index
    %320 = vector.load %arg1[%c16, %c0_172, %c0_173] : memref<22x32x32xbf16, #tpu.memory_space<vmem>>, vector<1x32x32xbf16>
    %321 = vector.shape_cast %320 : vector<1x32x32xbf16> to vector<32x32xbf16>
    %322 = arith.truncf %319 : vector<32x32xf32> to vector<32x32xbf16>
    %cst_174 = arith.constant dense<0.000000e+00> : vector<32x32xf32>
    %323 = tpu.matmul %322, %321, %cst_174 {dimension_numbers = #tpu.dot_dimension_numbers<[1], [0], [0], [1], [0, 0, 1, 1], [], []>} : vector<32x32xbf16>, vector<32x32xbf16>, vector<32x32xf32> -> vector<32x32xf32>
    %c16_175 = arith.constant 16 : index
    %c0_176 = arith.constant 0 : index
    %324 = vector.load %arg2[%c16_175, %c0_176] : memref<17x32xf32, #tpu.memory_space<vmem>>, vector<1x32xf32>
    %325 = vector.broadcast %324 : vector<1x32xf32> to vector<32x32xf32>
    %326 = arith.addf %323, %325 : vector<32x32xf32>
    %c17 = arith.constant 17 : index
    %c0_177 = arith.constant 0 : index
    %c0_178 = arith.constant 0 : index
    %327 = vector.load %arg1[%c17, %c0_177, %c0_178] : memref<22x32x32xbf16, #tpu.memory_space<vmem>>, vector<1x32x32xbf16>
    %328 = vector.shape_cast %327 : vector<1x32x32xbf16> to vector<32x32xbf16>
    %329 = arith.truncf %309 : vector<32x32xf32> to vector<32x32xbf16>
    %cst_179 = arith.constant dense<0.000000e+00> : vector<32x32xf32>
    %330 = tpu.matmul %329, %328, %cst_179 {dimension_numbers = #tpu.dot_dimension_numbers<[1], [0], [0], [1], [0, 0, 1, 1], [], []>} : vector<32x32xbf16>, vector<32x32xbf16>, vector<32x32xf32> -> vector<32x32xf32>
    %331 = arith.addf %326, %330 : vector<32x32xf32>
    %332 = arith.negf %331 : vector<32x32xf32>
    %333 = math.exp %332 : vector<32x32xf32>
    %cst_180 = arith.constant 1.000000e+00 : f32
    %334 = vector.broadcast %cst_180 : f32 to vector<32x32xf32>
    %335 = arith.addf %334, %333 : vector<32x32xf32>
    %336 = arith.divf %334, %335 : vector<32x32xf32>
    %c20 = arith.constant 20 : index
    %c0_181 = arith.constant 0 : index
    %c0_182 = arith.constant 0 : index
    %337 = vector.load %arg1[%c20, %c0_181, %c0_182] : memref<22x32x32xbf16, #tpu.memory_space<vmem>>, vector<1x32x32xbf16>
    %338 = vector.shape_cast %337 : vector<1x32x32xbf16> to vector<32x32xbf16>
    %339 = arith.truncf %336 : vector<32x32xf32> to vector<32x32xbf16>
    %cst_183 = arith.constant dense<0.000000e+00> : vector<32x32xf32>
    %340 = tpu.matmul %339, %338, %cst_183 {dimension_numbers = #tpu.dot_dimension_numbers<[1], [0], [0], [1], [0, 0, 1, 1], [], []>} : vector<32x32xbf16>, vector<32x32xbf16>, vector<32x32xf32> -> vector<32x32xf32>
    %341 = vector.extract_strided_slice %340 {offsets = [0, 0], sizes = [32, 1], strides = [1, 1]} : vector<32x32xf32> to vector<32x1xf32>
    %c0_184 = arith.constant 0 : index
    %c0_185 = arith.constant 0 : index
    %342 = vector.load %arg5[%c0_184, %c0_185] : memref<224x1xf32, #tpu.memory_space<vmem>>, vector<32x1xf32>
    %343 = arith.mulf %341, %342 : vector<32x1xf32>
    %c216 = arith.constant 216 : index
    %c0_186 = arith.constant 0 : index
    %344 = vector.load %arg3[%c216, %c0_186] : memref<224x32xbf16, #tpu.memory_space<vmem>>, vector<4x32xbf16>
    %345 = vector.broadcast %343 : vector<32x1xf32> to vector<32x32xf32>
    %346 = arith.mulf %345, %308 : vector<32x32xf32>
    %347 = arith.truncf %346 : vector<32x32xf32> to vector<32x32xbf16>
    %cst_187 = arith.constant dense<0.000000e+00> : vector<4x32xf32>
    %348 = tpu.matmul %344, %347, %cst_187 {dimension_numbers = #tpu.dot_dimension_numbers<[1], [0], [0], [1], [0, 0, 1, 1], [], []>} : vector<4x32xbf16>, vector<32x32xbf16>, vector<4x32xf32> -> vector<4x32xf32>
    %349 = vector.shape_cast %304 : vector<1x1xf32> to vector<1x1xf32>
    %350 = vector.broadcast %349 : vector<1x1xf32> to vector<4x32xf32>
    %351 = tpu.concatenate %236, %348, %350 in 0 : vector<24x32xf32>, vector<4x32xf32>, vector<4x32xf32> -> vector<32x32xf32>
    %c0_188 = arith.constant 0 : index
    %c0_189 = arith.constant 0 : index
    %352 = vector.load %arg7[%c0_188, %c0_189] : memref<32x32xf32, #tpu.memory_space<vmem>>, vector<32x32xf32>
    tpu.vector_store %arg7[%c0_188, %c0_189], %351 {strides = array<i32>} : memref<32x32xf32, #tpu.memory_space<vmem>>, vector<32x32xf32>,
    return
  }
}

</mosaic_0001>

<bundles_post_ra>
// kernel: stgcr_forward.1
= control target key start
LH: loop header
LB: loop body
LE: loop exit
PB: predicated region body
PF: predicated region fallthrough
CT: control target
= control target key end

     0   :  { %12 = vsyncpa [#allocation3], 0  ;;  %s5193_s24 = smov [#allocation2]   ;;  %s6388_s0 = inlined_call_operand.vmem [shape: bf16[33,256], index: 0, kind: input, shape index: {}]   ;;  %s6389_s1 = inlined_call_operand.hbm [shape: bf16[22,32,32], index: 1, kind: input, shape index: {}]   ;;  %s6390_s2 = inlined_call_operand.vmem [shape: f32[17,32], index: 2, kind: input, shape index: {}]   ;;  %s6391_s3 = inlined_call_operand.vmem [shape: bf16[224,32], index: 3, kind: input, shape index: {}]   ;;  %s6392_s4 = inlined_call_operand.vmem [shape: bf16[48,48], index: 4, kind: input, shape index: {}]   ;;  %s6393_s5 = inlined_call_operand.vmem [shape: f32[224,1], index: 5, kind: input, shape index: {}]   ;;  %s6394_s6 = inlined_call_operand.vmem [shape: bf16[608,256], index: 6, kind: input, shape index: {}]   ;;  %s6395_s7 = inlined_call_operand.vmem [shape: f32[32,32], index: 7, kind: output, shape index: {}]  }
   0x1   :  { %s20_s25 = sshll.u32 %s5193_s24, 4  ;;  %s5169_s28 = scalar_lea.hbm %s6389_s1, 5632  ;;  %s21_s25 = int_to_ptr.vmem [resolvable:$true] %s20_s25 }
   0x2   :  { %p5170_p0 = scmp.ne.s32.totalorder %s6389_s1, %s5169_s28  ;;  %p5173_p1 = scmp.lt.u32.totalorder %s5169_s28, %s6389_s1 }
   0x4   :  { %p5175_p2 = pnand %p5173_p1, %p5170_p0 }
   0x6   :  { %5178 = shalt.err (!%p5175_p2)
}
   0x7   :  { %s5179_s10 = scalar_lea.vmem %s21_s25, 5632  ;;  %p5184_p4 = scmp.lt.s32.totalorder %s21_s25, %s21_s25 }
   0x8   :  { %p5180_p3 = scmp.ne.s32.totalorder %s21_s25, %s5179_s10  ;;  %p5185_p5 = scmp.lt.s32.totalorder %s5179_s10, %s5179_s10 }
   0xa   :  { %p5186_p6 = por %p5185_p5, %p5184_p4 }
   0xc   :  { %p5187_p7 = pnand %p5186_p6, %p5180_p3 }
   0xe   :  { %5190 = shalt.err (!%p5187_p7)
}
   0xf   :  { %s5194_s11 = smov 64   ;;  %s5195_s12 = smov 4  }
  0x10   :  { %26 = dma.hbm_to_vmem [thread:$0]  %s6389_s1, 5632, %s21_s25, [#allocation3], %s5194_s11, %s5194_s11, %s5195_s12  }
  0x11   :  { %5191 = dma.done.wait [#allocation3], 5632  }
  0x12   :  { %5192 = vsyncadd [#allocation3], 4294961664  ;;  %vm114_vm0 = vcmask 1043456   ;;  %v4774_v0 = vld [vmem:[%s6391_s3 + $0x30] sm:$0xff]   ;;  %vm95_vm1 = vcmask 195584   ;;  %v4776_v2 = vld [vmem:[%s6391_s3] sm:$0xff]  }
  0x13   :  { %v4775_v1 = vld [vmem:[%s6391_s3 + $0x38] ss:$0 sps:$4 sm:$0xff]   ;;  %4386 = vmatprep.subr.bf16.mxu0 %v4774_v0  ;;  %4390 = vmatprep.mubr.msk.bf16.mxu0 %vm95_vm1, %v4776_v2  ;;  %v4777_v4 = vld [vmem:[%s6391_s3 + $0x8] sm:$0xff]   ;;  %v4778_v5 = vld [vmem:[%s6391_s3 + $0x10] sm:$0xff]   ;;  %v5196_v13 = vmov 0   ;;  %vm240_vm2 = vcmask 261120  }
  0x14   :  { %4387 = vmatpush3.bf16.msra.mxu0 %v4774_v0  ;;  %v116_v3 = vsel %vm114_vm0, %v4775_v1, 0  ;;  %v4782_v6 = vld [vmem:[%s6388_s0 + $0x4] ss:$8 sps:$4 sm:$0xff]   ;;  %v4784_v7 = vld [vmem:[%s6388_s0] ss:$8 sps:$4 sm:$0xff]   ;;  %v4779_v8 = vld [vmem:[%s6391_s3 + $0x18] sm:$0xff]   ;;  %291 = vmatprep.mubr.bf16.mxu1 %v5196_v13 }
  0x15   :  { %4764 = vmatprep.subr.msk.bf16.mxu0 %vm114_vm0, %v4775_v1  ;;  %259 = vmatprep.subr.bf16.mxu1 %v4782_v6  ;;  %v4780_v9 = vld [vmem:[%s6391_s3 + $0x20] sm:$0xff]   ;;  %v4781_v10 = vld [vmem:[%s6391_s3 + $0x28] sm:$0xff]   ;;  %v4785_v11 = vld [vmem:[%s6388_s0 + $0x14] ss:$8 sps:$4 sm:$0xff]   ;;  %vm5198_vm3 = vmmov 0  }
  0x16   :  { %260 = vmatpush1.bf16.msra.mxu1 %v4784_v7  ;;  %v4787_v12 = vld [vmem:[%s6388_s0 + $0x10] ss:$8 sps:$4 sm:$0xff]   ;;  %4773 = vset.pattern.permute.xlu1 %v5196_v13  ;;  %v4788_v14 = vld [vmem:[%s6394_s6] ss:$8 sps:$4 sm:$0xff]   ;;  %v4790_v15 = vld [vmem:[%s6394_s6 + $0x4] ss:$8 sps:$4 sm:$0xff]  }
  0x17   :  { %261 = vmatprep.subr.bf16.mxu1 %v4785_v11  ;;  %4772 = vset.pattern.permute.xlu0 %v5196_v13  ;;  %v4793_v16 = vld [vmem:[%s6394_s6 + $0x14] ss:$8 sps:$4 sm:$0xff]   ;;  %v4791_v17 = vld [vmem:[%s6394_s6 + $0x10] ss:$8 sps:$4 sm:$0xff]   ;;  %v4796_v18 = vld [vmem:[%s6394_s6 + $0x24] ss:$8 sps:$4 sm:$0xff]  }
  0x18   :  { %4389 = vmatpush3.bf16.msra.mxu0 %v116_v3  ;;  %v4794_v19 = vld [vmem:[%s6394_s6 + $0x20] ss:$8 sps:$4 sm:$0xff]   ;;  %v4799_v20 = vld [vmem:[%s6394_s6 + $0x34] ss:$8 sps:$4 sm:$0xff]   ;;  %v4797_v21 = vld [vmem:[%s6394_s6 + $0x30] ss:$8 sps:$4 sm:$0xff]  }
  0x19   :  { %580 = vmatprep.subr.bf16.mxu0 %v4790_v15  ;;  %v4802_v22 = vld [vmem:[%s6394_s6 + $0x44] ss:$8 sps:$4 sm:$0xff]   ;;  %v4800_v23 = vld [vmem:[%s6394_s6 + $0x40] ss:$8 sps:$4 sm:$0xff]   ;;  %v4805_v24 = vld [vmem:[%s6394_s6 + $0x54] ss:$8 sps:$4 sm:$0xff]  }
  0x1a   :  { %262 = vmatpush1.bf16.msra.mxu1 %v4787_v12  ;;  %v4803_v25 = vld [vmem:[%s6394_s6 + $0x50] ss:$8 sps:$4 sm:$0xff]   ;;  %v4808_v26 = vld [vmem:[%s6394_s6 + $0x64] ss:$8 sps:$4 sm:$0xff]   ;;  %v4806_v27 = vld [vmem:[%s6394_s6 + $0x60] ss:$8 sps:$4 sm:$0xff]  }
  0x1b   :  { %4391 = vmatmul.mubr.msk.bf16.vlgmr.msra.gmra.mrb[0].mxu0 %vm95_vm1, %v4777_v4  ;;  %v4811_v28 = vld [vmem:[%s6394_s6 + $0x74] ss:$8 sps:$4 sm:$0xff]   ;;  %v4809_v29 = vld [vmem:[%s6394_s6 + $0x70] ss:$8 sps:$4 sm:$0xff]   ;;  %v4814_v30 = vld [vmem:[%s6394_s6 + $0x84] ss:$8 sps:$4 sm:$0xff]  }
  0x1c   :  { %4394 = vmatprep.mubr.msk.bf16.mxu0 %vm95_vm1, %v4778_v5  ;;  %581 = vmatpush1.bf16.msra.mxu0 %v4788_v14  ;;  %v4812_v31 = vld [vmem:[%s6394_s6 + $0x80] ss:$8 sps:$4 sm:$0xff]   ;;  %v4817_v32 = vld [vmem:[%s6394_s6 + $0x94] ss:$8 sps:$4 sm:$0xff]   ;;  %v4815_v33 = vld [vmem:[%s6394_s6 + $0x90] ss:$8 sps:$4 sm:$0xff]  }
  0x1d   :  { %582 = vmatprep.subr.bf16.mxu0 %v4793_v16  ;;  %v4820_v34 = vld [vmem:[%s6394_s6 + $0xa4] ss:$8 sps:$4 sm:$0xff]   ;;  %v4818_v35 = vld [vmem:[%s6394_s6 + $0xa0] ss:$8 sps:$4 sm:$0xff]   ;;  %v4823_v36 = vld [vmem:[%s6394_s6 + $0xb4] ss:$8 sps:$4 sm:$0xff]  }
  0x1e   :  { %v4821_v37 = vld [vmem:[%s6394_s6 + $0xb0] ss:$8 sps:$4 sm:$0xff]   ;;  %v4826_v38 = vld [vmem:[%s6394_s6 + $0xc4] ss:$8 sps:$4 sm:$0xff]   ;;  %v4824_v39 = vld [vmem:[%s6394_s6 + $0xc0] ss:$8 sps:$4 sm:$0xff]  }
  0x1f   :  { %v4829_v40 = vld [vmem:[%s6394_s6 + $0xd4] ss:$8 sps:$4 sm:$0xff]   ;;  %v4827_v41 = vld [vmem:[%s6394_s6 + $0xd0] ss:$8 sps:$4 sm:$0xff]   ;;  %v4832_v60 = vld [vmem:[%s6394_s6 + $0xe4] ss:$8 sps:$4 sm:$0xff]  }
  0x20   :  { %583 = vmatpush1.bf16.msra.mxu0 %v4791_v17  ;;  %v4830_v61 = vld [vmem:[%s6394_s6 + $0xe0] ss:$8 sps:$4 sm:$0xff]   ;;  %v4835_v62 = vld [vmem:[%s6394_s6 + $0xf4] ss:$8 sps:$4 sm:$0xff]   ;;  %v4833_v63 = vld [vmem:[%s6394_s6 + $0xf0] ss:$8 sps:$4 sm:$0xff]  }
  0x21   :  { %584 = vmatprep.subr.bf16.mxu0 %v4796_v18  ;;  %v4836_v0 = vld [vmem:[%s6394_s6 + $0x180] ss:$8 sps:$4 sm:$0xff]   ;;  %v4838_v2 = vld [vmem:[%s6394_s6 + $0x190] ss:$8 sps:$4 sm:$0xff]  }
  0x22   :  { %v4837_v1 = vld [vmem:[%s6394_s6 + $0x100] ss:$8 sps:$4 sm:$0xff]   ;;  %4196 = vmatprep.subr.bf16.mxu1 %v4836_v0  ;;  %v4839_v3 = vld [vmem:[%s6394_s6 + $0x110] ss:$8 sps:$4 sm:$0xff]  }
  0x23   :  { %4395 = vmatmul.mubr.msk.bf16.gmra.mrb[4].mxu0 %vm95_vm1, %v4779_v8  ;;  %v4840_v4 = vld [vmem:[%s6394_s6 + $0x1a0] ss:$8 sps:$4 sm:$0xff]   ;;  %v4842_v6 = vld [vmem:[%s6394_s6 + $0x1b0] ss:$8 sps:$4 sm:$0xff]   ;;  %v212_v8 = vlaneseq }
  0x24   :  { %4398 = vmatprep.mubr.msk.bf16.mxu0 %vm95_vm1, %v4780_v9  ;;  %585 = vmatpush1.bf16.msra.mxu0 %v4794_v19  ;;  %v4841_v5 = vld [vmem:[%s6394_s6 + $0x120] ss:$8 sps:$4 sm:$0xff]   ;;  %v4843_v7 = vld [vmem:[%s6394_s6 + $0x130] ss:$8 sps:$4 sm:$0xff]  }
  0x25   :  { %586 = vmatprep.subr.bf16.mxu0 %v4799_v20  ;;  %v213_v9 = vshrl.u32 %v212_v8, 7 }
  0x27   :  { %v214_v11 = vsub.s32 0, %v213_v9 }
  0x28   :  { %587 = vmatpush1.bf16.msra.mxu0 %v4797_v21 }
  0x29   :  { %588 = vmatprep.subr.bf16.mxu0 %v4802_v22 }
  0x2b   :  { %4399 = vmatmul.mubr.msk.bf16.gmra.mrb[8].mxu0 %vm95_vm1, %v4781_v10  ;;  %v203_v10 = vld [vmem:[%s6388_s0 + $0x20] sm:$0x11] }
  0x2c   :  { %589 = vmatpush1.bf16.msra.mxu0 %v4800_v23  ;;  %v205_v12 = vunpack.c.h.bf16 %v203_v10  ;;  %v204_v14 = vunpack.c.l.bf16 %v203_v10 }
  0x2d   :  { %590 = vmatprep.subr.bf16.mxu0 %v4805_v24 }
  0x2e   :  { %v5432_v15 = vrot.slane %v205_v12, %v214_v11  ;;  %v5434_v16 = vrot.slane %v204_v14, %v214_v11 }
  0x30   :  { %591 = vmatpush1.bf16.msra.mxu0 %v4803_v25 }
  0x31   :  { %592 = vmatprep.subr.bf16.mxu0 %v4808_v26 }
  0x34   :  { %593 = vmatpush1.bf16.msra.mxu0 %v4806_v27 }
  0x35   :  { %594 = vmatprep.subr.bf16.mxu0 %v4811_v28 }
  0x38   :  { %595 = vmatpush1.bf16.msra.mxu0 %v4809_v29 }
  0x39   :  { %596 = vmatprep.subr.bf16.mxu0 %v4814_v30 }
  0x3c   :  { %597 = vmatpush1.bf16.msra.mxu0 %v4812_v31 }
  0x3d   :  { %598 = vmatprep.subr.bf16.mxu0 %v4817_v32 }
  0x40   :  { %599 = vmatpush1.bf16.msra.mxu0 %v4815_v33 }
  0x41   :  { %600 = vmatprep.subr.bf16.mxu0 %v4820_v34 }
  0x44   :  { %601 = vmatpush1.bf16.msra.mxu0 %v4818_v35 }
  0x45   :  { %602 = vmatprep.subr.bf16.mxu0 %v4823_v36 }
  0x48   :  { %603 = vmatpush1.bf16.msra.mxu0 %v4821_v37 }
  0x49   :  { %604 = vmatprep.subr.bf16.mxu0 %v4826_v38 }
  0x4c   :  { %605 = vmatpush1.bf16.msra.mxu0 %v4824_v39 }
  0x4d   :  { %606 = vmatprep.subr.bf16.mxu0 %v4829_v40 }
  0x50   :  { %607 = vmatpush1.bf16.msra.mxu0 %v4827_v41 }
  0x51   :  { %608 = vmatprep.subr.bf16.mxu0 %v4832_v60 }
  0x54   :  { %609 = vmatpush1.bf16.msra.mxu0 %v4830_v61 }
  0x55   :  { %610 = vmatprep.subr.bf16.mxu0 %v4835_v62 }
  0x58   :  { %611 = vmatpush1.bf16.msra.mxu0 %v4833_v63 }
  0xee   :  { %v4392_v42 = vpop.f32.mrb[0].mxu0 }
  0xef   :  { %v152_v43 = vpop.f32.mrb[1].mxu0 }
  0xf0   :  { %v4393_v44 = vpop.f32.mrb[2].mxu0 }
  0xf1   :  { %v207_v45 = vpack.c.bf16 %v4393_v44, %v4392_v42  ;;  %v155_v46 = vpop.f32.mrb[3].mxu0 }
  0xf2   :  { %v206_v47 = vpack.c.bf16 %v155_v46, %v152_v43 }
  0xf4   :  { %3961 = vmatmul.mubr.msk.bf16.vlgmr.msra.gmra.mrb[0].mxu1 %vm240_vm2, %v206_v47 }
  0xf5   :  { %301 = vmatprep.mubr.bf16.mxu1 %v5196_v13  ;;  %4197 = vmatpush3.bf16.msra.mxu1 %v4837_v1 }
  0xf6   :  { %v4396_v48 = vpop.f32.mrb[4].mxu0  ;;  %4198 = vmatprep.subr.bf16.mxu1 %v4838_v2 }
  0xf7   :  { %v168_v49 = vpop.f32.mrb[5].mxu0 }
  0xf8   :  { %v4397_v50 = vpop.f32.mrb[6].mxu0 }
  0xf9   :  { %v209_v51 = vpack.c.bf16 %v4397_v50, %v4396_v48  ;;  %v171_v52 = vpop.f32.mrb[7].mxu0  ;;  %4199 = vmatpush3.bf16.msra.mxu1 %v4839_v3 }
  0xfa   :  { %v208_v53 = vpack.c.bf16 %v171_v52, %v168_v49  ;;  %4200 = vmatprep.subr.bf16.mxu1 %v4840_v4 }
  0xfc   :  { %3962 = vmatmul.mubr.msk.bf16.gmra.mrb[4].mxu1 %vm240_vm2, %v207_v45 }
  0xfd   :  { %311 = vmatprep.mubr.bf16.mxu1 %v5196_v13  ;;  %4201 = vmatpush3.bf16.msra.mxu1 %v4841_v5 }
  0xfe   :  { %v4400_v54 = vpop.f32.mrb[8].mxu0  ;;  %4202 = vmatprep.subr.bf16.mxu1 %v4842_v6 }
  0xff   :  { %v184_v55 = vpop.f32.mrb[9].mxu0 }
 0x100   :  { %v4401_v56 = vpop.f32.mrb[10].mxu0 }
 0x101   :  { %v211_v57 = vpack.c.bf16 %v4401_v56, %v4400_v54  ;;  %v187_v58 = vpop.f32.mrb[11].mxu0  ;;  %4203 = vmatpush3.bf16.msra.mxu1 %v4843_v7 }
 0x102   :  { %v210_v59 = vpack.c.bf16 %v187_v58, %v184_v55 }
 0x104   :  { %3963 = vmatmul.mubr.msk.bf16.gmra.mrb[8].mxu1 %vm240_vm2, %v208_v53 }
 0x105   :  { %321 = vmatprep.mubr.bf16.mxu1 %v5196_v13 }
 0x10c   :  { %3964 = vmatmul.mubr.msk.bf16.gmra.mrb[12].mxu1 %vm240_vm2, %v209_v51 }
 0x10d   :  { %331 = vmatprep.mubr.bf16.mxu1 %v5196_v13 }
 0x114   :  { %3965 = vmatmul.mubr.msk.bf16.gmra.mrb[16].mxu1 %vm240_vm2, %v210_v59 }
 0x115   :  { %341 = vmatprep.mubr.bf16.mxu1 %v5196_v13 }
 0x11c   :  { %3966 = vmatmul.mubr.msk.bf16.gmra.mrb[20].mxu1 %vm240_vm2, %v211_v57 }
 0x1c7   :  { %v293_v17 = vpop.f32.mrb[0].mxu1 }
 0x1c8   :  { %v295_v18 = vpop.f32.mrb[1].mxu1  ;;  %v5440_v21 = vadd.f32 %v293_v17, %v5434_v16 }
 0x1c9   :  { %v5437_v19 = vadd.f32 %v295_v18, %v5432_v15  ;;  %v297_v20 = vpop.f32.mrb[2].mxu1 }
 0x1ca   :  { %v5443_v22 = vadd.f32 %v297_v20, %v5434_v16  ;;  %v299_v23 = vpop.f32.mrb[3].mxu1  ;;  %v384_v28 = vmul.f32 %v5440_v21, %v5440_v21 }
 0x1cb   :  { %v5446_v24 = vadd.f32 %v299_v23, %v5432_v15  ;;  %v385_v26 = vmul.f32 %v5437_v19, %v5437_v19 }
 0x1cc   :  { %v386_v25 = vmul.f32 %v5443_v22, %v5443_v22 }
 0x1cd   :  { %v387_v27 = vmul.f32 %v5446_v24, %v5446_v24 }
 0x1ce   :  { %v408_v31 = vpack.c.bf16 %v386_v25, %v384_v28 }
 0x1cf   :  { %v303_v29 = vpop.f32.mrb[4].mxu1  ;;  %v409_v30 = vpack.c.bf16 %v387_v27, %v385_v26 }
 0x1d0   :  { %v305_v32 = vpop.f32.mrb[5].mxu1  ;;  %v5460_v35 = vadd.f32 %v303_v29, %v5434_v16 }
 0x1d1   :  { %v5457_v33 = vadd.f32 %v305_v32, %v5432_v15  ;;  %v307_v34 = vpop.f32.mrb[6].mxu1  ;;  %612 = vmatprep.mubr.bf16.mxu0 %v409_v30 }
 0x1d2   :  { %v5463_v36 = vadd.f32 %v307_v34, %v5434_v16  ;;  %v309_v37 = vpop.f32.mrb[7].mxu1  ;;  %613 = vmatmul.mubr.bf16.vlgmr.msra.gmra.mrb[12].mxu0 %v408_v31  ;;  %v388_v42 = vmul.f32 %v5460_v35, %v5460_v35 }
 0x1d3   :  { %v5466_v38 = vadd.f32 %v309_v37, %v5432_v15  ;;  %v389_v40 = vmul.f32 %v5457_v33, %v5457_v33 }
 0x1d4   :  { %v390_v39 = vmul.f32 %v5463_v36, %v5463_v36 }
 0x1d5   :  { %v391_v41 = vmul.f32 %v5466_v38, %v5466_v38 }
 0x1d6   :  { %v410_v46 = vpack.c.bf16 %v390_v39, %v388_v42 }
 0x1d7   :  { %v313_v43 = vpop.f32.mrb[8].mxu1  ;;  %v411_v44 = vpack.c.bf16 %v391_v41, %v389_v40 }
 0x1d8   :  { %v315_v45 = vpop.f32.mrb[9].mxu1  ;;  %v5480_v49 = vadd.f32 %v313_v43, %v5434_v16 }
 0x1d9   :  { %v5477_v47 = vadd.f32 %v315_v45, %v5432_v15  ;;  %v317_v48 = vpop.f32.mrb[10].mxu1  ;;  %622 = vmatprep.mubr.bf16.mxu0 %v411_v44 }
 0x1da   :  { %v5483_v50 = vadd.f32 %v317_v48, %v5434_v16  ;;  %v319_v51 = vpop.f32.mrb[11].mxu1  ;;  %623 = vmatmul.mubr.bf16.gmra.mrb[16].mxu0 %v410_v46  ;;  %v392_v56 = vmul.f32 %v5480_v49, %v5480_v49 }
 0x1db   :  { %v5486_v52 = vadd.f32 %v319_v51, %v5432_v15  ;;  %v393_v54 = vmul.f32 %v5477_v47, %v5477_v47  ;;  %v4845_v51 = vld [vmem:[%s6394_s6 + $0x140] ss:$8 sps:$4 sm:$0xff]  }
 0x1dc   :  { %v394_v53 = vmul.f32 %v5483_v50, %v5483_v50 }
 0x1dd   :  { %v395_v55 = vmul.f32 %v5486_v52, %v5486_v52 }
 0x1de   :  { %v412_v60 = vpack.c.bf16 %v394_v53, %v392_v56  ;;  %v4847_v53 = vld [vmem:[%s6394_s6 + $0x150] ss:$8 sps:$4 sm:$0xff]  }
 0x1df   :  { %v323_v57 = vpop.f32.mrb[12].mxu1  ;;  %v413_v58 = vpack.c.bf16 %v395_v55, %v393_v54  ;;  %v4848_v54 = vld [vmem:[%s6394_s6 + $0x1e0] ss:$8 sps:$4 sm:$0xff]   ;;  %v4850_v56 = vld [vmem:[%s6394_s6 + $0x1f0] ss:$8 sps:$4 sm:$0xff]  }
 0x1e0   :  { %v325_v59 = vpop.f32.mrb[13].mxu1  ;;  %v5500_v63 = vadd.f32 %v323_v57, %v5434_v16  ;;  %v4849_v55 = vld [vmem:[%s6394_s6 + $0x160] ss:$8 sps:$4 sm:$0xff]   ;;  %v4851_v57 = vld [vmem:[%s6394_s6 + $0x170] ss:$8 sps:$4 sm:$0xff]  }
 0x1e1   :  { %v5497_v61 = vadd.f32 %v325_v59, %v5432_v15  ;;  %v327_v62 = vpop.f32.mrb[14].mxu1  ;;  %632 = vmatprep.mubr.bf16.mxu0 %v413_v58  ;;  %v4852_v58 = vld [vmem:[#allocation2 + $0x10] sm:$0xff]   ;;  %v5197_v59 = vmov 0.0  }
 0x1e2   :  { %v5503_v0 = vadd.f32 %v327_v62, %v5434_v16  ;;  %v329_v1 = vpop.f32.mrb[15].mxu1  ;;  %633 = vmatmul.mubr.bf16.gmra.mrb[20].mxu0 %v412_v60  ;;  %v396_v6 = vmul.f32 %v5500_v63, %v5500_v63  ;;  %4418 = vmatprep.subr.bf16.mxu0 %v5197_v59  ;;  %v4854_v60 = vld [vmem:[#allocation2 + $0x18] sm:$0xff]  }
 0x1e3   :  { %v5506_v2 = vadd.f32 %v329_v1, %v5432_v15  ;;  %v397_v4 = vmul.f32 %v5497_v61, %v5497_v61  ;;  %4419 = vmatpush3.bf16.msra.mxu0 %v4852_v58 }
 0x1e4   :  { %v398_v3 = vmul.f32 %v5503_v0, %v5503_v0  ;;  %4420 = vmatprep.subr.bf16.mxu0 %v5197_v59 }
 0x1e5   :  { %v399_v5 = vmul.f32 %v5506_v2, %v5506_v2 }
 0x1e6   :  { %v414_v11 = vpack.c.bf16 %v398_v3, %v396_v6 }
 0x1e7   :  { %v333_v7 = vpop.f32.mrb[16].mxu1  ;;  %v415_v8 = vpack.c.bf16 %v399_v5, %v397_v4  ;;  %4421 = vmatpush3.bf16.msra.mxu0 %v4854_v60 }
 0x1e8   :  { %v5517_v9 = vadd.f32 %v333_v7, %v5434_v16  ;;  %v335_v10 = vpop.f32.mrb[17].mxu1 }
 0x1e9   :  { %v5520_v12 = vadd.f32 %v335_v10, %v5432_v15  ;;  %v337_v14 = vpop.f32.mrb[18].mxu1  ;;  %642 = vmatprep.mubr.bf16.mxu0 %v415_v8 }
 0x1ea   :  { %v400_v17 = vmul.f32 %v5517_v9, %v5517_v9  ;;  %v5525_v18 = vadd.f32 %v337_v14, %v5434_v16  ;;  %v339_v20 = vpop.f32.mrb[19].mxu1  ;;  %643 = vmatmul.mubr.bf16.gmra.mrb[24].mxu0 %v414_v11 }
 0x1eb   :  { %v401_v23 = vmul.f32 %v5520_v12, %v5520_v12  ;;  %v5530_v25 = vadd.f32 %v339_v20, %v5432_v15 }
 0x1ec   :  { %v402_v26 = vmul.f32 %v5525_v18, %v5525_v18 }
 0x1ed   :  { %v403_v27 = vmul.f32 %v5530_v25, %v5530_v25 }
 0x1ee   :  { %v416_v28 = vpack.c.bf16 %v402_v26, %v400_v17 }
 0x1ef   :  { %v343_v29 = vpop.f32.mrb[20].mxu1  ;;  %v417_v30 = vpack.c.bf16 %v403_v27, %v401_v23  ;;  %v745_v27 = vld [vmem:[%s6394_s6 + $0x200] sm:$0xff] }
 0x1f0   :  { %v5537_v31 = vadd.f32 %v343_v29, %v5434_v16  ;;  %v345_v32 = vpop.f32.mrb[21].mxu1 }
 0x1f1   :  { %v5540_v34 = vadd.f32 %v345_v32, %v5432_v15  ;;  %v347_v37 = vpop.f32.mrb[22].mxu1  ;;  %652 = vmatprep.mubr.bf16.mxu0 %v417_v30 }
 0x1f2   :  { %v404_v39 = vmul.f32 %v5537_v31, %v5537_v31  ;;  %v5545_v40 = vadd.f32 %v347_v37, %v5434_v16  ;;  %v349_v41 = vpop.f32.mrb[23].mxu1  ;;  %653 = vmatmul.mubr.bf16.gmra.mrb[28].mxu0 %v416_v28  ;;  %v4844_v16 = vld [vmem:[%s6394_s6 + $0x1c0] ss:$8 sps:$4 sm:$0xff]  }
 0x1f3   :  { %v405_v42 = vmul.f32 %v5540_v34, %v5540_v34  ;;  %v5550_v43 = vadd.f32 %v349_v41, %v5432_v15  ;;  %4204 = vmatprep.subr.bf16.mxu1 %v4844_v16  ;;  %v4846_v15 = vld [vmem:[%s6394_s6 + $0x1d0] ss:$8 sps:$4 sm:$0xff]   ;;  %v746_v28 = vld [vmem:[%s6394_s6 + $0x208] sm:$0xff] }
 0x1f4   :  { %v406_v44 = vmul.f32 %v5545_v40, %v5545_v40  ;;  %4205 = vmatpush3.bf16.msra.mxu1 %v4845_v51  ;;  %v759_v41 = vunpack.c.l.bf16 %v746_v28 }
 0x1f5   :  { %v407_v45 = vmul.f32 %v5550_v43, %v5550_v43  ;;  %4206 = vmatprep.subr.bf16.mxu1 %v4846_v15 }
 0x1f6   :  { %v418_v46 = vpack.c.bf16 %v406_v44, %v404_v39  ;;  %v757_v39 = vunpack.c.l.bf16 %v745_v27 }
 0x1f7   :  { %v419_v48 = vpack.c.bf16 %v407_v45, %v405_v42  ;;  %v758_v45 = vunpack.c.h.bf16 %v745_v27 }
 0x1f8   :  { %4207 = vmatpush3.bf16.msra.mxu1 %v4847_v53 }
 0x1f9   :  { %662 = vmatprep.mubr.bf16.mxu0 %v419_v48  ;;  %4208 = vmatprep.subr.bf16.mxu1 %v4848_v54 }
 0x1fa   :  { %663 = vmatmul.mubr.bf16.gmra.mrb[32].mxu0 %v418_v46  ;;  %v760_v46 = vunpack.c.h.bf16 %v746_v28 }
 0x1fb   :  { %4422 = vmatprep.mubr.msk.bf16.mxu0 %vm5198_vm3, %v5197_v59 }
 0x1fc   :  { %4209 = vmatpush3.bf16.msra.mxu1 %v4849_v55 }
 0x1fd   :  { %4210 = vmatprep.subr.bf16.mxu1 %v4850_v56 }
 0x200   :  { %4211 = vmatpush3.bf16.msra.mxu1 %v4851_v57 }
 0x201   :  { %4402 = vmatprep.subr.bf16.mxu1 %v5197_v59 }
 0x2a5   :  { %v614_v62 = vpop.f32.mrb[12].mxu0 }
 0x2a6   :  { %v673_v1 = vmax.f32 %v614_v62, 1e-24  ;;  %v616_v3 = vpop.f32.mrb[13].mxu0 }
 0x2a7   :  { %v674_v4 = vmax.f32 %v616_v3, 1e-24  ;;  %v618_v5 = vpop.f32.mrb[14].mxu0 }
 0x2a8   :  { %4905 = vrsqrt.f32 %v673_v1  ;;  %v675_v6 = vmax.f32 %v618_v5, 1e-24  ;;  %v620_v7 = vpop.f32.mrb[15].mxu0 }
 0x2a9   :  { %4907 = vrsqrt.f32 %v674_v4  ;;  %v676_v8 = vmax.f32 %v620_v7, 1e-24 }
 0x2aa   :  { %4909 = vrsqrt.f32 %v675_v6  ;;  %v4853_v6 = vld [vmem:[#allocation2] sm:$0xff]  }
 0x2ab   :  { %4911 = vrsqrt.f32 %v676_v8 }
 0x2ad   :  { %v624_v10 = vpop.f32.mrb[16].mxu0 }
 0x2ae   :  { %v677_v11 = vmax.f32 %v624_v10, 1e-24  ;;  %v626_v14 = vpop.f32.mrb[17].mxu0 }
 0x2af   :  { %v678_v17 = vmax.f32 %v626_v14, 1e-24  ;;  %v628_v20 = vpop.f32.mrb[18].mxu0 }
 0x2b0   :  { %4913 = vrsqrt.f32 %v677_v11  ;;  %v679_v23 = vmax.f32 %v628_v20, 1e-24  ;;  %v630_v26 = vpop.f32.mrb[19].mxu0 }
 0x2b1   :  { %4915 = vrsqrt.f32 %v678_v17  ;;  %v680_v29 = vmax.f32 %v630_v26, 1e-24 }
 0x2b2   :  { %v4906_v30 = vpop.eup %4905  ;;  %4917 = vrsqrt.f32 %v679_v23 }
 0x2b3   :  { %v4908_v32 = vpop.eup %4907  ;;  %v721_v37 = vmul.f32 %v4906_v30, %v5440_v21  ;;  %4919 = vrsqrt.f32 %v680_v29 }
 0x2b4   :  { %v4910_v42 = vpop.eup %4909  ;;  %v722_v44 = vmul.f32 %v4908_v32, %v5437_v19  ;;  %v747_v19 = vld [vmem:[%s6394_s6 + $0x210] sm:$0xff] }
 0x2b5   :  { %v4912_v48 = vpop.eup %4911  ;;  %v723_v16 = vmul.f32 %v4910_v42, %v5443_v22  ;;  %v634_v51 = vpop.f32.mrb[20].mxu0  ;;  %v813_v57 = vmul.f32 %v757_v39, %v721_v37  ;;  %v748_v22 = vld [vmem:[%s6394_s6 + $0x218] sm:$0xff]  ;;  %v761_v10 = vunpack.c.l.bf16 %v747_v19  ;;  %v762_v20 = vunpack.c.h.bf16 %v747_v19  ;;  %v4855_v37 = vld [vmem:[#allocation2 + $0x8] sm:$0xff]  }
 0x2b6   :  { %v681_v15 = vmax.f32 %v634_v51, 1e-24  ;;  %v636_v53 = vpop.f32.mrb[21].mxu0  ;;  %v724_v54 = vmul.f32 %v4912_v48, %v5446_v24  ;;  %v814_v62 = vmul.f32 %v758_v45, %v722_v44  ;;  %v763_v11 = vunpack.c.l.bf16 %v748_v22 }
 0x2b7   :  { %v682_v55 = vmax.f32 %v636_v53, 1e-24  ;;  %v638_v56 = vpop.f32.mrb[22].mxu0  ;;  %v815_v21 = vmul.f32 %v759_v41, %v723_v16  ;;  %v764_v23 = vunpack.c.h.bf16 %v748_v22 }
 0x2b8   :  { %4921 = vrsqrt.f32 %v681_v15  ;;  %v683_v58 = vmax.f32 %v638_v56, 1e-24  ;;  %v640_v60 = vpop.f32.mrb[23].mxu0  ;;  %v816_v1 = vmul.f32 %v760_v46, %v724_v54 }
 0x2b9   :  { %4923 = vrsqrt.f32 %v682_v55  ;;  %v684_v3 = vmax.f32 %v640_v60, 1e-24  ;;  %v837_v24 = vpack.c.bf16 %v815_v21, %v813_v57 }
 0x2ba   :  { %v4914_v4 = vpop.eup %4913  ;;  %4925 = vrsqrt.f32 %v683_v58  ;;  %v838_v5 = vpack.c.bf16 %v816_v1, %v814_v62 }
 0x2bb   :  { %v4916_v7 = vpop.eup %4915  ;;  %4927 = vrsqrt.f32 %v684_v3  ;;  %v725_v8 = vmul.f32 %v4914_v4, %v5460_v35 }
 0x2bc   :  { %v4918_v14 = vpop.eup %4917  ;;  %977 = vmatprep.mubr.bf16.mxu1 %v838_v5  ;;  %v726_v17 = vmul.f32 %v4916_v7, %v5457_v33 }
 0x2bd   :  { %v4920_v26 = vpop.eup %4919  ;;  %v644_v27 = vpop.f32.mrb[24].mxu0  ;;  %978 = vmatmul.mubr.bf16.vlgmr.msra.gmra.mrb[24].mxu1 %v837_v24  ;;  %v727_v28 = vmul.f32 %v4918_v14, %v5463_v36  ;;  %v817_v41 = vmul.f32 %v761_v10, %v725_v8  ;;  %v749_v36 = vld [vmem:[%s6394_s6 + $0x220] sm:$0xff] }
 0x2be   :  { %v685_v29 = vmax.f32 %v644_v27, 1e-24  ;;  %v646_v30 = vpop.f32.mrb[25].mxu0  ;;  %v728_v32 = vmul.f32 %v4920_v26, %v5466_v38  ;;  %4403 = vmatpush3.bf16.msra.mxu1 %v4853_v6  ;;  %v818_v45 = vmul.f32 %v762_v20, %v726_v17  ;;  %v750_v38 = vld [vmem:[%s6394_s6 + $0x228] sm:$0xff]  ;;  %v765_v55 = vunpack.c.l.bf16 %v749_v36 }
 0x2bf   :  { %v686_v35 = vmax.f32 %v646_v30, 1e-24  ;;  %v648_v39 = vpop.f32.mrb[26].mxu0  ;;  %v819_v42 = vmul.f32 %v763_v11, %v727_v28  ;;  %4404 = vmatprep.subr.bf16.mxu1 %v5197_v59  ;;  %v767_v56 = vunpack.c.l.bf16 %v750_v38  ;;  %v766_v58 = vunpack.c.h.bf16 %v749_v36  ;;  %v751_v11 = vld [vmem:[%s6394_s6 + $0x230] sm:$0xff] }
 0x2c0   :  { %4929 = vrsqrt.f32 %v685_v29  ;;  %v687_v33 = vmax.f32 %v648_v39, 1e-24  ;;  %v650_v44 = vpop.f32.mrb[27].mxu0  ;;  %v820_v46 = vmul.f32 %v764_v23, %v728_v32  ;;  %v768_v60 = vunpack.c.h.bf16 %v750_v38 }
 0x2c1   :  { %4931 = vrsqrt.f32 %v686_v35  ;;  %v688_v48 = vmax.f32 %v650_v44, 1e-24  ;;  %v839_v16 = vpack.c.bf16 %v819_v42, %v817_v41  ;;  %v769_v27 = vunpack.c.l.bf16 %v751_v11 }
 0x2c2   :  { %v4922_v51 = vpop.eup %4921  ;;  %4933 = vrsqrt.f32 %v687_v33  ;;  %v840_v15 = vpack.c.bf16 %v820_v46, %v818_v45  ;;  %4405 = vmatpush3.bf16.msra.mxu1 %v4855_v37  ;;  %v770_v32 = vunpack.c.h.bf16 %v751_v11 }
 0x2c3   :  { %v4924_v53 = vpop.eup %4923  ;;  %4935 = vrsqrt.f32 %v688_v48  ;;  %v729_v54 = vmul.f32 %v4922_v51, %v5480_v49  ;;  %4434 = vmatprep.subr.bf16.mxu1 %v5197_v59  ;;  %v753_v51 = vld [vmem:[%s6394_s6 + $0x240] sm:$0xff] }
 0x2c4   :  { %v4926_v57 = vpop.eup %4925  ;;  %985 = vmatprep.mubr.bf16.mxu1 %v840_v15  ;;  %v730_v21 = vmul.f32 %v4924_v53, %v5477_v47 }
 0x2c5   :  { %v4928_v62 = vpop.eup %4927  ;;  %v654_v1 = vpop.f32.mrb[28].mxu0  ;;  %986 = vmatmul.mubr.bf16.gmra.mrb[28].mxu1 %v839_v16  ;;  %v731_v19 = vmul.f32 %v4926_v57, %v5483_v50  ;;  %v821_v5 = vmul.f32 %v765_v55, %v729_v54  ;;  %v752_v50 = vld [vmem:[%s6394_s6 + $0x238] sm:$0xff]  ;;  %v773_v57 = vunpack.c.l.bf16 %v753_v51 }
 0x2c6   :  { %v689_v22 = vmax.f32 %v654_v1, 1e-24  ;;  %v656_v3 = vpop.f32.mrb[29].mxu0  ;;  %v732_v24 = vmul.f32 %v4928_v62, %v5486_v52  ;;  %v822_v10 = vmul.f32 %v766_v58, %v730_v21  ;;  %v771_v28 = vunpack.c.l.bf16 %v752_v50 }
 0x2c7   :  { %v690_v49 = vmax.f32 %v656_v3, 1e-24  ;;  %v658_v4 = vpop.f32.mrb[30].mxu0  ;;  %v823_v6 = vmul.f32 %v767_v56, %v731_v19  ;;  %v772_v37 = vunpack.c.h.bf16 %v752_v50  ;;  %v774_v62 = vunpack.c.h.bf16 %v753_v51 }
 0x2c8   :  { %4937 = vrsqrt.f32 %v689_v22  ;;  %v691_v7 = vmax.f32 %v658_v4, 1e-24  ;;  %v660_v8 = vpop.f32.mrb[31].mxu0  ;;  %v824_v47 = vmul.f32 %v768_v60, %v732_v24 }
 0x2c9   :  { %4939 = vrsqrt.f32 %v690_v49  ;;  %v692_v14 = vmax.f32 %v660_v8, 1e-24  ;;  %v841_v52 = vpack.c.bf16 %v823_v6, %v821_v5 }
 0x2ca   :  { %v4930_v17 = vpop.eup %4929  ;;  %4941 = vrsqrt.f32 %v691_v7  ;;  %v842_v20 = vpack.c.bf16 %v824_v47, %v822_v10 }
 0x2cb   :  { %v4932_v23 = vpop.eup %4931  ;;  %4943 = vrsqrt.f32 %v692_v14  ;;  %v733_v26 = vmul.f32 %v4930_v17, %v5500_v63 }
 0x2cc   :  { %v4934_v29 = vpop.eup %4933  ;;  %993 = vmatprep.mubr.bf16.mxu1 %v842_v20  ;;  %v734_v30 = vmul.f32 %v4932_v23, %v5497_v61 }
 0x2cd   :  { %v4936_v35 = vpop.eup %4935  ;;  %v664_v39 = vpop.f32.mrb[32].mxu0  ;;  %994 = vmatmul.mubr.bf16.gmra.mrb[32].mxu1 %v841_v52  ;;  %v735_v41 = vmul.f32 %v4934_v29, %v5503_v0  ;;  %v825_v63 = vmul.f32 %v769_v27, %v733_v26  ;;  %v754_v0 = vld [vmem:[%s6394_s6 + $0x248] sm:$0xff] }
 0x2ce   :  { %v693_v42 = vmax.f32 %v664_v39, 1e-24  ;;  %v666_v33 = vpop.f32.mrb[33].mxu0  ;;  %v736_v44 = vmul.f32 %v4936_v35, %v5506_v2  ;;  %v826_v16 = vmul.f32 %v770_v32, %v734_v30  ;;  %v775_v21 = vunpack.c.l.bf16 %v754_v0 }
 0x2cf   :  { %v694_v45 = vmax.f32 %v666_v33, 1e-24  ;;  %v668_v46 = vpop.f32.mrb[34].mxu0  ;;  %v827_v36 = vmul.f32 %v771_v28, %v735_v41  ;;  %v776_v1 = vunpack.c.h.bf16 %v754_v0  ;;  %v5652_v33 = vld [vmem:[#allocation2 + $0x38] sm:$0xff]  }
 0x2d0   :  { %4945 = vrsqrt.f32 %v693_v42  ;;  %v695_v38 = vmax.f32 %v668_v46, 1e-24  ;;  %v670_v48 = vpop.f32.mrb[35].mxu0  ;;  %v828_v61 = vmul.f32 %v772_v37, %v736_v44  ;;  %v4857_v42 = vld [vmem:[#allocation2 + $0x20] sm:$0xff]  }
 0x2d1   :  { %4947 = vrsqrt.f32 %v694_v45  ;;  %v696_v15 = vmax.f32 %v670_v48, 1e-24  ;;  %v843_v2 = vpack.c.bf16 %v827_v36, %v825_v63  ;;  %v4859_v36 = vld [vmem:[#allocation2 + $0x28] sm:$0xff]  }
 0x2d2   :  { %v4938_v53 = vpop.eup %4937  ;;  %4949 = vrsqrt.f32 %v695_v38  ;;  %v844_v54 = vpack.c.bf16 %v828_v61, %v826_v16  ;;  %v5661_v38 = vld [vmem:[#allocation2 + $0x40] sm:$0xff]   ;;  %v5665_v16 = vld [vmem:[#allocation2 + $0x50] sm:$0xff]  }
 0x2d3   :  { %v4940_v55 = vpop.eup %4939  ;;  %4951 = vrsqrt.f32 %v696_v15  ;;  %v737_v56 = vmul.f32 %v4938_v53, %v5517_v9  ;;  %v755_v9 = vld [vmem:[%s6394_s6 + $0x250] sm:$0xff] }
 0x2d4   :  { %v4942_v58 = vpop.eup %4941  ;;  %1001 = vmatprep.mubr.bf16.mxu1 %v844_v54  ;;  %v738_v60 = vmul.f32 %v4940_v55, %v5520_v12  ;;  %v756_v12 = vld [vmem:[%s6394_s6 + $0x258] sm:$0xff]  ;;  %v777_v47 = vunpack.c.l.bf16 %v755_v9  ;;  %v778_v14 = vunpack.c.h.bf16 %v755_v9 }
 0x2d5   :  { %v4944_v19 = vpop.eup %4943  ;;  %1002 = vmatmul.mubr.bf16.gmra.mrb[36].mxu1 %v843_v2  ;;  %v739_v22 = vmul.f32 %v4942_v58, %v5525_v18  ;;  %v829_v24 = vmul.f32 %v773_v57, %v737_v56  ;;  %v780_v52 = vunpack.c.h.bf16 %v756_v12 }
 0x2d6   :  { %v740_v3 = vmul.f32 %v4944_v19, %v5530_v25  ;;  %v830_v4 = vmul.f32 %v774_v62, %v738_v60  ;;  %v779_v25 = vunpack.c.l.bf16 %v756_v12 }
 0x2d7   :  { %v831_v49 = vmul.f32 %v775_v21, %v739_v22  ;;  %v4861_v22 = vld [vmem:[#allocation2 + $0x48] sm:$0xff]  }
 0x2d8   :  { %v832_v5 = vmul.f32 %v776_v1, %v740_v3 }
 0x2d9   :  { %v845_v6 = vpack.c.bf16 %v831_v49, %v829_v24  ;;  %v5685_v24 = vld [vmem:[#allocation2 + $0x58] sm:$0xff]  }
 0x2da   :  { %v4946_v7 = vpop.eup %4945  ;;  %v846_v8 = vpack.c.bf16 %v832_v5, %v830_v4 }
 0x2db   :  { %v4948_v10 = vpop.eup %4947  ;;  %v741_v18 = vmul.f32 %v4946_v7, %v5537_v31 }
 0x2dc   :  { %v4950_v11 = vpop.eup %4949  ;;  %1009 = vmatprep.mubr.bf16.mxu1 %v846_v8  ;;  %v742_v50 = vmul.f32 %v4948_v10, %v5540_v34  ;;  %v5649_v34 = vld [vmem:[#allocation2 + $0x30] sm:$0xff]  }
 0x2dd   :  { %v4952_v17 = vpop.eup %4951  ;;  %1010 = vmatmul.mubr.bf16.gmra.mrb[40].mxu1 %v845_v6  ;;  %v743_v20 = vmul.f32 %v4950_v11, %v5545_v40  ;;  %v833_v26 = vmul.f32 %v777_v47, %v741_v18  ;;  %4450 = vmatprep.subr.bf16.mxu0 %v5649_v34 }
 0x2de   :  { %v744_v23 = vmul.f32 %v4952_v17, %v5550_v43  ;;  %v834_v28 = vmul.f32 %v778_v14, %v742_v50 }
 0x2df   :  { %v835_v27 = vmul.f32 %v779_v25, %v743_v20 }
 0x2e0   :  { %v836_v29 = vmul.f32 %v780_v52, %v744_v23 }
 0x2e1   :  { %v847_v30 = vpack.c.bf16 %v835_v27, %v833_v26 }
 0x2e2   :  { %v848_v31 = vpack.c.bf16 %v836_v29, %v834_v28 }
 0x2e4   :  { %1017 = vmatprep.mubr.bf16.mxu1 %v848_v31 }
 0x2e5   :  { %1018 = vmatmul.mubr.bf16.gmra.mrb[44].mxu1 %v847_v30 }
 0x2e6   :  { %4406 = vmatprep.mubr.msk.bf16.mxu1 %vm5198_vm3, %v5197_v59 }
 0x390   :  { %v4212_v40 = vpop.f32.mrb[24].mxu1 }
 0x391   :  { %v4213_v43 = vpop.f32.mrb[25].mxu1 }
 0x392   :  { %v4214_v32 = vadd.f32 %v4213_v43, %v4212_v40  ;;  %v4215_v37 = vpop.f32.mrb[26].mxu1  ;;  %v4021_v40 = vld [vmem:[%s6390_s2 + $0x1] ss:$0 sm:$0xff] }
 0x393   :  { %v4216_v35 = vpop.f32.mrb[27].mxu1 }
 0x394   :  { %v4217_v39 = vadd.f32 %v4216_v35, %v4215_v37 }
 0x396   :  { %v1026_v41 = vpack.c.bf16 %v4217_v39, %v4214_v32 }
 0x398   :  { %v4218_v44 = vpop.f32.mrb[28].mxu1  ;;  %4407 = vmatmul.mubr.msk.bf16.vlgmr.msra.gmra.mrb[48].mxu1 %vm240_vm2, %v1026_v41  ;;  %4423 = vmatmul.mubr.msk.bf16.vlgmr.msra.gmra.mrb[36].mxu0 %vm240_vm2, %v1026_v41 }
 0x399   :  { %v4219_v45 = vpop.f32.mrb[29].mxu1  ;;  %4451 = vmatpush3.bf16.msra.mxu0 %v5649_v34  ;;  %4410 = vmatprep.mubr.msk.bf16.mxu1 %vm5198_vm3, %v5197_v59 }
 0x39a   :  { %v4220_v46 = vadd.f32 %v4219_v45, %v4218_v44  ;;  %v4221_v63 = vpop.f32.mrb[30].mxu1  ;;  %4426 = vmatprep.mubr.msk.bf16.mxu0 %vm5198_vm3, %v5197_v59  ;;  %4435 = vmatpush3.bf16.msra.mxu1 %v4857_v42 }
 0x39b   :  { %v4222_v48 = vpop.f32.mrb[31].mxu1  ;;  %4452 = vmatprep.subr.bf16.mxu0 %v5652_v33  ;;  %4436 = vmatprep.subr.bf16.mxu1 %v5197_v59 }
 0x39c   :  { %v4223_v61 = vadd.f32 %v4222_v48, %v4221_v63 }
 0x39d   :  { %4453 = vmatpush3.bf16.msra.mxu0 %v5652_v33 }
 0x39e   :  { %v1027_v51 = vpack.c.bf16 %v4223_v61, %v4220_v46  ;;  %4437 = vmatpush3.bf16.msra.mxu1 %v4859_v36  ;;  %4458 = vmatprep.subr.bf16.mxu0 %v5661_v38 }
 0x39f   :  { %4466 = vmatprep.subr.bf16.mxu1 %v5665_v16 }
 0x3a0   :  { %v4224_v0 = vpop.f32.mrb[32].mxu1  ;;  %4411 = vmatmul.mubr.msk.bf16.gmra.mrb[52].mxu1 %vm240_vm2, %v1027_v51  ;;  %4427 = vmatmul.mubr.msk.bf16.gmra.mrb[40].mxu0 %vm240_vm2, %v1027_v51 }
 0x3a1   :  { %v4225_v15 = vpop.f32.mrb[33].mxu1  ;;  %4414 = vmatprep.mubr.msk.bf16.mxu1 %vm5198_vm3, %v5197_v59  ;;  %4430 = vmatprep.mubr.msk.bf16.mxu0 %vm5198_vm3, %v5197_v59 }
 0x3a2   :  { %v4226_v2 = vadd.f32 %v4225_v15, %v4224_v0  ;;  %v4227_v53 = vpop.f32.mrb[34].mxu1  ;;  %v5736_v15 = vld [vmem:[%s6390_s2 + $0x3] ss:$0 sm:$0xff] }
 0x3a3   :  { %v4228_v54 = vpop.f32.mrb[35].mxu1 }
 0x3a4   :  { %v4229_v55 = vadd.f32 %v4228_v54, %v4227_v53 }
 0x3a6   :  { %v1028_v56 = vpack.c.bf16 %v4229_v55, %v4226_v2 }
 0x3a8   :  { %v4230_v57 = vpop.f32.mrb[36].mxu1  ;;  %4415 = vmatmul.mubr.msk.bf16.gmra.mrb[56].mxu1 %vm240_vm2, %v1028_v56  ;;  %4431 = vmatmul.mubr.msk.bf16.gmra.mrb[44].mxu0 %vm240_vm2, %v1028_v56 }
 0x3a9   :  { %v4231_v21 = vpop.f32.mrb[37].mxu1  ;;  %4438 = vmatprep.mubr.msk.bf16.mxu1 %vm5198_vm3, %v5197_v59  ;;  %4454 = vmatprep.mubr.bf16.mxu0 %v5196_v13 }
 0x3aa   :  { %v4232_v58 = vadd.f32 %v4231_v21, %v4230_v57  ;;  %v4233_v60 = vpop.f32.mrb[38].mxu1 }
 0x3ab   :  { %v4234_v62 = vpop.f32.mrb[39].mxu1 }
 0x3ac   :  { %v4235_v1 = vadd.f32 %v4234_v62, %v4233_v60 }
 0x3ae   :  { %v5681_v19 = vpack.c.bf16 %v4235_v1, %v4232_v58 }
 0x3b0   :  { %v4236_v3 = vpop.f32.mrb[40].mxu1  ;;  %4439 = vmatmul.mubr.msk.bf16.vlgmr.msra.gmra.mrb[60].mxu1 %vm240_vm2, %v1026_v41  ;;  %4455 = vmatmul.mubr.bf16.vlgmr.msra.gmra.mrb[48].mxu0 %v5196_v13 }
 0x3b1   :  { %v4237_v49 = vpop.f32.mrb[41].mxu1  ;;  %4459 = vmatpush3.bf16.msra.mxu0 %v5661_v38  ;;  %4442 = vmatprep.mubr.msk.bf16.mxu1 %vm5198_vm3, %v5197_v59 }
 0x3b2   :  { %v4238_v4 = vadd.f32 %v4237_v49, %v4236_v3  ;;  %v4239_v5 = vpop.f32.mrb[42].mxu1  ;;  %4460 = vmatprep.subr.bf16.mxu0 %v4861_v22  ;;  %4462 = vmatprep.mubr.bf16.mxu0 %v5196_v13 }
 0x3b3   :  { %v4240_v9 = vpop.f32.mrb[43].mxu1  ;;  %4467 = vmatpush3.bf16.msra.mxu1 %v5665_v16 }
 0x3b4   :  { %v4241_v12 = vadd.f32 %v4240_v9, %v4239_v5  ;;  %4468 = vmatprep.subr.bf16.mxu1 %v5685_v24 }
 0x3b5   :  { %4461 = vmatpush3.bf16.msra.mxu0 %v4861_v22 }
 0x3b6   :  { %v5693_v6 = vpack.c.bf16 %v4241_v12, %v4238_v4  ;;  %4474 = vmatprep.subr.bf16.mxu0 %v5649_v34 }
 0x3b7   :  { %4469 = vmatpush3.bf16.msra.mxu1 %v5685_v24 }
 0x3b8   :  { %v4242_v7 = vpop.f32.mrb[44].mxu1  ;;  %4443 = vmatmul.mubr.msk.bf16.gmra.mrb[64].mxu1 %vm240_vm2, %v1027_v51  ;;  %4463 = vmatmul.mubr.bf16.vlgmr.msra.gmra.mrb[52].mxu0 %v5196_v13 }
 0x3b9   :  { %v4243_v8 = vpop.f32.mrb[45].mxu1  ;;  %4446 = vmatprep.mubr.msk.bf16.mxu1 %vm5198_vm3, %v5197_v59  ;;  %4482 = vmatprep.subr.bf16.mxu1 %v5661_v38 }
 0x3ba   :  { %v4244_v10 = vadd.f32 %v4243_v8, %v4242_v7  ;;  %v4245_v18 = vpop.f32.mrb[46].mxu1  ;;  %4475 = vmatpush3.bf16.msra.mxu0 %v5649_v34  ;;  %v4015_v34 = vld [vmem:[%s6390_s2] ss:$0 sm:$0xff]  ;;  %v5748_v8 = vld [vmem:[%s6390_s2 + $0x4] ss:$0 sm:$0xff] }
 0x3bb   :  { %v4246_v47 = vpop.f32.mrb[47].mxu1  ;;  %4476 = vmatprep.subr.bf16.mxu0 %v5652_v33 }
 0x3bc   :  { %v4247_v25 = vadd.f32 %v4246_v47, %v4245_v18 }
 0x3be   :  { %v5704_v11 = vpack.c.bf16 %v4247_v25, %v4244_v10  ;;  %4477 = vmatpush3.bf16.msra.mxu0 %v5652_v33 }
 0x3bf   :  { %4490 = vmatprep.subr.bf16.mxu0 %v5665_v16 }
 0x3c0   :  { %4447 = vmatmul.mubr.msk.bf16.gmra.mrb[68].mxu1 %vm240_vm2, %v1028_v56 }
 0x3c1   :  { %4470 = vmatprep.mubr.bf16.mxu1 %v5196_v13 }
 0x3c8   :  { %4471 = vmatmul.mubr.bf16.vlgmr.msra.gmra.mrb[72].mxu1 %v5196_v13 }
 0x3c9   :  { %4483 = vmatpush3.bf16.msra.mxu1 %v5661_v38 }
 0x3ca   :  { %4484 = vmatprep.subr.bf16.mxu1 %v4861_v22 }
 0x3cd   :  { %4485 = vmatpush3.bf16.msra.mxu1 %v4861_v22 }
 0x3ce   :  { %4498 = vmatprep.subr.bf16.mxu1 %v5197_v59 }
 0x46b   :  { %v1093_v50 = vpop.f32.mrb[48].mxu1  ;;  %v1172_v14 = vpop.f32.mrb[36].mxu0 }
 0x46c   :  { %v4408_v52 = vpop.f32.mrb[49].mxu1  ;;  %v4424_v17 = vpop.f32.mrb[37].mxu0  ;;  %v1094_v21 = vadd.f32 %v4015_v34, %v1093_v50 }
 0x46d   :  { %v1096_v20 = vpop.f32.mrb[50].mxu1  ;;  %v5713_v23 = vpop.f32.mrb[38].mxu0 }
 0x46e   :  { %v4409_v26 = vpop.f32.mrb[51].mxu1  ;;  %v4425_v27 = vpop.f32.mrb[39].mxu0  ;;  %v1097_v49 = vadd.f32 %v4015_v34, %v1096_v20  ;;  %v1173_v20 = vadd.f32 %v4021_v40, %v1172_v14 }
 0x46f   :  { %v4027_v26 = vld [vmem:[%s6390_s2 + $0x2] ss:$0 sm:$0xff] }
 0x473   :  { %v1101_v28 = vpop.f32.mrb[52].mxu1  ;;  %v1180_v29 = vpop.f32.mrb[40].mxu0 }
 0x474   :  { %v4412_v30 = vpop.f32.mrb[53].mxu1  ;;  %v4428_v31 = vpop.f32.mrb[41].mxu0  ;;  %v1102_v54 = vadd.f32 %v4015_v34, %v1101_v28  ;;  %v1181_v25 = vadd.f32 %v4021_v40, %v1180_v29  ;;  %v1176_v29 = vadd.f32 %v4021_v40, %v5713_v23 }
 0x475   :  { %v1104_v43 = vpop.f32.mrb[54].mxu1  ;;  %v1183_v32 = vpop.f32.mrb[42].mxu0 }
 0x476   :  { %v5721_v37 = vadd.f32 %v4015_v34, %v1104_v43  ;;  %v5723_v35 = vadd.f32 %v4021_v40, %v1183_v32  ;;  %v4413_v39 = vpop.f32.mrb[55].mxu1  ;;  %v4429_v41 = vpop.f32.mrb[43].mxu0 }
 0x47b   :  { %v1109_v42 = vpop.f32.mrb[56].mxu1  ;;  %v1188_v33 = vpop.f32.mrb[44].mxu0 }
 0x47c   :  { %v5725_v44 = vadd.f32 %v4015_v34, %v1109_v42  ;;  %v5727_v45 = vadd.f32 %v4021_v40, %v1188_v33  ;;  %v4416_v46 = vpop.f32.mrb[57].mxu1  ;;  %v4432_v63 = vpop.f32.mrb[45].mxu0 }
 0x47d   :  { %v1112_v36 = vpop.f32.mrb[58].mxu1  ;;  %v1191_v38 = vpop.f32.mrb[46].mxu0 }
 0x47e   :  { %v5729_v48 = vadd.f32 %v4015_v34, %v1112_v36  ;;  %v5731_v61 = vadd.f32 %v4021_v40, %v1191_v38  ;;  %v4417_v51 = vpop.f32.mrb[59].mxu1  ;;  %v4433_v0 = vpop.f32.mrb[47].mxu0 }
 0x483   :  { %v5738_v2 = vpop.f32.mrb[60].mxu1  ;;  %v4456_v53 = vpop.f32.mrb[48].mxu0 }
 0x484   :  { %v1342_v55 = vadd.f32 %v4456_v53, %v5736_v15  ;;  %v4440_v56 = vpop.f32.mrb[61].mxu1  ;;  %v1333_v57 = vpop.f32.mrb[49].mxu0 }
 0x485   :  { %v1334_v58 = vadd.f32 %v5736_v15, %v1333_v57  ;;  %v5742_v60 = vpop.f32.mrb[62].mxu1  ;;  %v4457_v62 = vpop.f32.mrb[50].mxu0 }
 0x486   :  { %v1489_v1 = vadd.f32 %v1342_v55, %v1102_v54  ;;  %v4441_v22 = vpop.f32.mrb[63].mxu1  ;;  %v1336_v3 = vpop.f32.mrb[51].mxu0 }
 0x487   :  { %v1487_v4 = vadd.f32 %v1334_v58, %v1094_v21  ;;  %v1337_v5 = vadd.f32 %v5736_v15, %v1336_v3  ;;  %v5766_v58 = vld [vmem:[%s6390_s2 + $0x5] ss:$0 sm:$0xff] }
 0x488   :  { %v4044_v9 = vmul.f32 -1.442695, %v1489_v1 }
 0x489   :  { %v4042_v12 = vmul.f32 -1.442695, %v1487_v4  ;;  %v1488_v7 = vadd.f32 %v1337_v5, %v1097_v49 }
 0x48a   :  { %4953 = vpow2.f32 %v4044_v9 }
 0x48b   :  { %4955 = vpow2.f32 %v4042_v12  ;;  %v4043_v10 = vmul.f32 -1.442695, %v1488_v7  ;;  %v1259_v18 = vpop.f32.mrb[64].mxu1  ;;  %v4464_v47 = vpop.f32.mrb[52].mxu0 }
 0x48c   :  { %v1412_v50 = vadd.f32 %v4464_v47, %v5748_v8  ;;  %v4444_v52 = vpop.f32.mrb[65].mxu1  ;;  %v1403_v17 = vpop.f32.mrb[53].mxu0 }
 0x48d   :  { %4957 = vpow2.f32 %v4043_v10  ;;  %v1404_v27 = vadd.f32 %v5748_v8, %v1403_v17  ;;  %v1262_v28 = vpop.f32.mrb[66].mxu1  ;;  %v4465_v30 = vpop.f32.mrb[54].mxu0  ;;  %v1252_v17 = vadd.f32 %v4027_v26, %v5738_v2 }
 0x48e   :  { %v1510_v31 = vadd.f32 %v1412_v50, %v1181_v25  ;;  %v5755_v34 = vadd.f32 %v4027_v26, %v1262_v28  ;;  %v4445_v43 = vpop.f32.mrb[67].mxu1  ;;  %v1406_v32 = vpop.f32.mrb[55].mxu0  ;;  %v1260_v50 = vadd.f32 %v4027_v26, %v1259_v18 }
 0x48f   :  { %v1508_v39 = vadd.f32 %v1404_v27, %v1173_v20  ;;  %v1407_v41 = vadd.f32 %v5748_v8, %v1406_v32 }
 0x490   :  { %v4047_v14 = vmul.f32 -1.442695, %v1510_v31  ;;  %v1255_v31 = vadd.f32 %v4027_v26, %v5742_v60 }
 0x491   :  { %v4045_v42 = vmul.f32 -1.442695, %v1508_v39  ;;  %v1509_v33 = vadd.f32 %v1407_v41, %v1176_v29 }
 0x492   :  { %4959 = vpow2.f32 %v4047_v14 }
 0x493   :  { %4961 = vpow2.f32 %v4045_v42  ;;  %v4046_v46 = vmul.f32 -1.442695, %v1509_v33  ;;  %v1267_v63 = vpop.f32.mrb[68].mxu1 }
 0x494   :  { %v4954_v36 = vpop.eup %4953  ;;  %v5759_v38 = vadd.f32 %v4027_v26, %v1267_v63  ;;  %v4448_v51 = vpop.f32.mrb[69].mxu1 }
 0x495   :  { %v4956_v0 = vpop.eup %4955  ;;  %v1501_v53 = vadd.f32 1.0, %v4954_v36  ;;  %4963 = vpow2.f32 %v4046_v46  ;;  %v1270_v54 = vpop.f32.mrb[70].mxu1 }
 0x496   :  { %v1499_v55 = vadd.f32 1.0, %v4956_v0  ;;  %v5761_v23 = vadd.f32 %v4027_v26, %v1270_v54  ;;  %v4449_v40 = vpop.f32.mrb[71].mxu1 }
 0x497   :  { %v4958_v56 = vpop.eup %4957  ;;  %4965 = vrcp.f32 %v1501_v53 }
 0x498   :  { %4967 = vrcp.f32 %v1499_v55  ;;  %v1500_v57 = vadd.f32 1.0, %v4958_v56 }
 0x49a   :  { %4969 = vrcp.f32 %v1500_v57 }
 0x49b   :  { %v4472_v21 = vpop.f32.mrb[72].mxu1 }
 0x49c   :  { %v4960_v62 = vpop.eup %4959  ;;  %v1473_v1 = vpop.f32.mrb[73].mxu1  ;;  %v1482_v4 = vadd.f32 %v4472_v21, %v5766_v58  ;;  %v4864_v21 = vld [vmem:[#allocation2 + $0x60] sm:$0xff]  }
 0x49d   :  { %v4962_v22 = vpop.eup %4961  ;;  %v4473_v3 = vpop.f32.mrb[74].mxu1  ;;  %v1522_v49 = vadd.f32 1.0, %v4960_v62  ;;  %v1474_v7 = vadd.f32 %v5766_v58, %v1473_v1  ;;  %v4865_v62 = vld [vmem:[#allocation2 + $0x68] sm:$0xff]   ;;  %v4866_v1 = vld [vmem:[#allocation2 + $0x70] sm:$0xff]  }
 0x49e   :  { %v1476_v5 = vpop.f32.mrb[75].mxu1  ;;  %v1520_v12 = vadd.f32 1.0, %v4962_v22  ;;  %v4867_v22 = vld [vmem:[#allocation2 + $0x78] sm:$0xff]   ;;  %v4870_v3 = vld [vmem:[#allocation2 + $0x88] sm:$0xff]  }
 0x49f   :  { %v4964_v9 = vpop.eup %4963  ;;  %4971 = vrcp.f32 %v1522_v49  ;;  %v1477_v27 = vadd.f32 %v5766_v58, %v1476_v5  ;;  %v4871_v49 = vld [vmem:[#allocation2 + $0x98] sm:$0xff]   ;;  %v5833_v5 = vld [vmem:[#allocation2 + $0xb0] sm:$0xff]  }
 0x4a0   :  { %v1521_v47 = vadd.f32 1.0, %v4964_v9  ;;  %4973 = vrcp.f32 %v1520_v12  ;;  %v4873_v9 = vld [vmem:[#allocation2 + $0xa8] sm:$0xff]  }
 0x4a1   :  { %v4966_v10 = vpop.eup %4965 }
 0x4a2   :  { %v4968_v25 = vpop.eup %4967  ;;  %v1531_v52 = vmul.f32 %v4966_v10, %v1482_v4  ;;  %4975 = vrcp.f32 %v1521_v47  ;;  %v4872_v4 = vld [vmem:[#allocation2 + $0xa0] sm:$0xff]  }
 0x4a3   :  { %v1529_v20 = vmul.f32 %v4968_v25, %v1474_v7 }
 0x4a4   :  { %v4970_v28 = vpop.eup %4969  ;;  %v1534_v30 = vadd.f32 %v1531_v52, %v1260_v50 }
 0x4a5   :  { %v1532_v43 = vadd.f32 %v1529_v20, %v1252_v17  ;;  %v1530_v32 = vmul.f32 %v4970_v28, %v1477_v27 }
 0x4a6   :  { %4977 = vtanh.f32 %v1534_v30 }
 0x4a7   :  { %4979 = vtanh.f32 %v1532_v43  ;;  %v1533_v29 = vadd.f32 %v1530_v32, %v1255_v31 }
 0x4a9   :  { %4981 = vtanh.f32 %v1533_v29  ;;  %v4972_v18 = vpop.eup %4971 }
 0x4aa   :  { %v4974_v39 = vpop.eup %4973  ;;  %v1540_v14 = vsub.f32 1.0, %v4972_v18  ;;  %v1546_v46 = vmul.f32 0.0, %v4972_v18 }
 0x4ab   :  { %v1538_v42 = vsub.f32 1.0, %v4974_v39  ;;  %v1544_v0 = vmul.f32 0.0, %v4974_v39 }
 0x4ac   :  { %v4976_v41 = vpop.eup %4975 }
 0x4ad   :  { %v1539_v36 = vsub.f32 1.0, %v4976_v41  ;;  %v1545_v54 = vmul.f32 0.0, %v4976_v41 }
 0x4b0   :  { %v4978_v2 = vpop.eup %4977 }
 0x4b1   :  { %v4980_v33 = vpop.eup %4979  ;;  %v1543_v63 = vmul.f32 %v4978_v2, %v1540_v14 }
 0x4b2   :  { %v1541_v51 = vmul.f32 %v4980_v33, %v1538_v42 }
 0x4b3   :  { %v4982_v60 = vpop.eup %4981  ;;  %v5773_v26 = vadd.f32 %v1546_v46, %v1543_v63 }
 0x4b4   :  { %v1542_v53 = vmul.f32 %v4982_v60, %v1539_v36  ;;  %v5775_v55 = vadd.f32 %v1544_v0, %v1541_v51 }
 0x4b5   :  { %v1551_v57 = vpack.c.bf16 %v5773_v26, %v5773_v26 }
 0x4b6   :  { %v5777_v40 = vadd.f32 %v1545_v54, %v1542_v53 }
 0x4b8   :  { %v5781_v56 = vpack.c.bf16 %v5777_v40, %v5775_v55 }
 0x4ba   :  { %4478 = vmatprep.mubr.msk.bf16.mxu0 %vm240_vm2, %v5781_v56  ;;  %4486 = vmatprep.mubr.msk.bf16.mxu1 %vm240_vm2, %v5781_v56 }
 0x4bb   :  { %4479 = vmatmul.mubr.msk.bf16.vlgmr.msra.gmra.mrb[56].mxu0 %vm240_vm2, %v1551_v57  ;;  %4487 = vmatmul.mubr.msk.bf16.vlgmr.msra.gmra.mrb[76].mxu1 %vm240_vm2, %v1551_v57 }
 0x4bc   :  { %4491 = vmatpush3.bf16.msra.mxu0 %v5665_v16  ;;  %4494 = vmatprep.mubr.msk.bf16.mxu0 %vm240_vm2, %v5781_v56  ;;  %v4869_v16 = vld [vmem:[#allocation2 + $0x80] sm:$0xff]  }
 0x4bd   :  { %4499 = vmatpush3.bf16.msra.mxu1 %v4864_v21  ;;  %4492 = vmatprep.subr.bf16.mxu0 %v5685_v24 }
 0x4be   :  { %4500 = vmatprep.subr.bf16.mxu1 %v5197_v59  ;;  %4502 = vmatprep.mubr.msk.bf16.mxu1 %vm5198_vm3, %v5197_v59 }
 0x4c0   :  { %4493 = vmatpush3.bf16.msra.mxu0 %v5685_v24  ;;  %v4868_v24 = vld [vmem:[#allocation2 + $0x90] sm:$0xff]  }
 0x4c1   :  { %4501 = vmatpush3.bf16.msra.mxu1 %v4865_v62  ;;  %4514 = vmatprep.subr.bf16.mxu0 %v5197_v59 }
 0x4c2   :  { %4530 = vmatprep.subr.bf16.mxu1 %v5197_v59 }
 0x4c3   :  { %4495 = vmatmul.mubr.msk.bf16.vlgmr.msra.gmra.mrb[60].mxu0 %vm240_vm2, %v1551_v57  ;;  %v5879_v57 = vld [vmem:[%s6390_s2 + $0x6] ss:$0 sm:$0xff] }
 0x4c4   :  { %4503 = vmatmul.mubr.msk.bf16.vlgmr.msra.gmra.mrb[80].mxu1 %vm240_vm2, %v5681_v19  ;;  %4515 = vmatpush3.bf16.msra.mxu0 %v4866_v1 }
 0x4c5   :  { %4516 = vmatprep.subr.bf16.mxu0 %v5197_v59  ;;  %4506 = vmatprep.mubr.msk.bf16.mxu1 %vm5198_vm3, %v5197_v59 }
 0x4c6   :  { %4518 = vmatprep.mubr.msk.bf16.mxu0 %vm5198_vm3, %v5197_v59  ;;  %4531 = vmatpush3.bf16.msra.mxu1 %v4869_v16 }
 0x4c7   :  { %4532 = vmatprep.subr.bf16.mxu1 %v5197_v59 }
 0x4c8   :  { %4517 = vmatpush3.bf16.msra.mxu0 %v4867_v22 }
 0x4c9   :  { %4546 = vmatprep.subr.bf16.mxu0 %v4868_v24 }
 0x4ca   :  { %4533 = vmatpush3.bf16.msra.mxu1 %v4870_v3 }
 0x4cb   :  { %4519 = vmatmul.mubr.msk.bf16.vlgmr.msra.gmra.mrb[64].mxu0 %vm240_vm2, %v5681_v19  ;;  %4570 = vmatprep.subr.bf16.mxu1 %v4868_v24 }
 0x4cc   :  { %4507 = vmatmul.mubr.msk.bf16.gmra.mrb[84].mxu1 %vm240_vm2, %v5693_v6  ;;  %4547 = vmatpush3.bf16.msra.mxu0 %v4868_v24 }
 0x4cd   :  { %4510 = vmatprep.mubr.msk.bf16.mxu1 %vm5198_vm3, %v5197_v59  ;;  %4522 = vmatprep.mubr.msk.bf16.mxu0 %vm5198_vm3, %v5197_v59 }
 0x4ce   :  { %4548 = vmatprep.subr.bf16.mxu0 %v4871_v49 }
 0x4d0   :  { %4549 = vmatpush3.bf16.msra.mxu0 %v4871_v49 }
 0x4d1   :  { %4554 = vmatprep.subr.bf16.mxu0 %v4872_v4 }
 0x4d3   :  { %4523 = vmatmul.mubr.msk.bf16.gmra.mrb[68].mxu0 %vm240_vm2, %v5693_v6 }
 0x4d4   :  { %4511 = vmatmul.mubr.msk.bf16.gmra.mrb[88].mxu1 %vm240_vm2, %v5704_v11  ;;  %4526 = vmatprep.mubr.msk.bf16.mxu0 %vm5198_vm3, %v5197_v59 }
 0x4d5   :  { %4534 = vmatprep.mubr.msk.bf16.mxu1 %vm5198_vm3, %v5197_v59 }
 0x4db   :  { %4527 = vmatmul.mubr.msk.bf16.gmra.mrb[72].mxu0 %vm240_vm2, %v5704_v11 }
 0x4dc   :  { %4535 = vmatmul.mubr.msk.bf16.vlgmr.msra.gmra.mrb[92].mxu1 %vm240_vm2, %v5681_v19  ;;  %4550 = vmatprep.mubr.bf16.mxu0 %v5196_v13  ;;  %v5843_v19 = vld [vmem:[#allocation2 + $0xb8] sm:$0xff]  }
 0x4dd   :  { %4538 = vmatprep.mubr.msk.bf16.mxu1 %vm5198_vm3, %v5197_v59  ;;  %4571 = vmatpush3.bf16.msra.mxu1 %v4868_v24 }
 0x4de   :  { %4572 = vmatprep.subr.bf16.mxu1 %v4871_v49 }
 0x4e1   :  { %4573 = vmatpush3.bf16.msra.mxu1 %v4871_v49 }
 0x4e2   :  { %4586 = vmatprep.subr.bf16.mxu1 %v5833_v5 }
 0x4e3   :  { %4551 = vmatmul.mubr.bf16.vlgmr.msra.gmra.mrb[76].mxu0 %v5196_v13 }
 0x4e4   :  { %4539 = vmatmul.mubr.msk.bf16.gmra.mrb[96].mxu1 %vm240_vm2, %v5693_v6  ;;  %4555 = vmatpush3.bf16.msra.mxu0 %v4872_v4 }
 0x4e5   :  { %4556 = vmatprep.subr.bf16.mxu0 %v4873_v9  ;;  %4542 = vmatprep.mubr.msk.bf16.mxu1 %vm5198_vm3, %v5197_v59 }
 0x4e6   :  { %4558 = vmatprep.mubr.bf16.mxu0 %v5196_v13 }
 0x4e8   :  { %4557 = vmatpush3.bf16.msra.mxu0 %v4873_v9 }
 0x4e9   :  { %4562 = vmatprep.subr.bf16.mxu0 %v5833_v5 }
 0x4eb   :  { %4559 = vmatmul.mubr.bf16.vlgmr.msra.gmra.mrb[80].mxu0 %v5196_v13 }
 0x4ec   :  { %4543 = vmatmul.mubr.msk.bf16.gmra.mrb[100].mxu1 %vm240_vm2, %v5704_v11  ;;  %4563 = vmatpush3.bf16.msra.mxu0 %v5833_v5 }
 0x4ed   :  { %4564 = vmatprep.subr.bf16.mxu0 %v5843_v19  ;;  %4566 = vmatprep.mubr.bf16.mxu0 %v5196_v13 }
 0x4f0   :  { %4565 = vmatpush3.bf16.msra.mxu0 %v5843_v19 }
 0x4f1   :  { %4578 = vmatprep.subr.bf16.mxu0 %v4872_v4 }
 0x4f3   :  { %4567 = vmatmul.mubr.bf16.vlgmr.msra.gmra.mrb[84].mxu0 %v5196_v13 }
 0x4f4   :  { %4579 = vmatpush3.bf16.msra.mxu0 %v4872_v4 }
 0x4f5   :  { %4580 = vmatprep.subr.bf16.mxu0 %v4873_v9 }
 0x4f8   :  { %4581 = vmatpush3.bf16.msra.mxu0 %v4873_v9 }
 0x4f9   :  { %4594 = vmatprep.subr.bf16.mxu0 %v5197_v59 }
 0x58e   :  { %v4480_v6 = vpop.f32.mrb[56].mxu0  ;;  %v4488_v12 = vpop.f32.mrb[76].mxu1 }
 0x58f   :  { %v1601_v11 = vadd.f32 %v4480_v6, %v5736_v15  ;;  %v1649_v7 = vadd.f32 %v4488_v12, %v5748_v8  ;;  %v1592_v10 = vpop.f32.mrb[57].mxu0  ;;  %v1640_v47 = vpop.f32.mrb[77].mxu1 }
 0x590   :  { %v1593_v25 = vadd.f32 %v5736_v15, %v1592_v10  ;;  %v1641_v50 = vadd.f32 %v5748_v8, %v1640_v47  ;;  %v4481_v52 = vpop.f32.mrb[58].mxu0  ;;  %v4489_v17 = vpop.f32.mrb[78].mxu1 }
 0x591   :  { %v1704_v13 = vadd.f32 %v1601_v11, %v5729_v48  ;;  %v1725_v20 = vadd.f32 %v1649_v7, %v5731_v61  ;;  %v1595_v27 = vpop.f32.mrb[59].mxu0  ;;  %v1643_v28 = vpop.f32.mrb[79].mxu1  ;;  %v5889_v11 = vld [vmem:[%s6390_s2 + $0x7] ss:$0 sm:$0xff] }
 0x592   :  { %v1702_v30 = vadd.f32 %v1593_v25, %v5721_v37  ;;  %v1723_v31 = vadd.f32 %v1641_v50, %v5723_v35  ;;  %v1596_v43 = vadd.f32 %v5736_v15, %v1595_v27  ;;  %v1644_v32 = vadd.f32 %v5748_v8, %v1643_v28 }
 0x593   :  { %v4056_v29 = vmul.f32 -1.442695, %v1704_v13  ;;  %v4059_v37 = vmul.f32 -1.442695, %v1725_v20 }
 0x594   :  { %v4054_v18 = vmul.f32 -1.442695, %v1702_v30  ;;  %v1703_v39 = vadd.f32 %v1596_v43, %v5725_v44  ;;  %v1724_v41 = vadd.f32 %v1644_v32, %v5727_v45  ;;  %v4057_v33 = vmul.f32 -1.442695, %v1723_v31 }
 0x595   :  { %4983 = vpow2.f32 %v4056_v29 }
 0x596   :  { %v4055_v48 = vmul.f32 -1.442695, %v1703_v39  ;;  %v4496_v14 = vpop.f32.mrb[60].mxu0  ;;  %4985 = vpow2.f32 %v4054_v18  ;;  %v4058_v44 = vmul.f32 -1.442695, %v1724_v41 }
 0x597   :  { %v5866_v61 = vpop.f32.mrb[80].mxu1  ;;  %v1688_v2 = vpop.f32.mrb[61].mxu0  ;;  %v1697_v30 = vadd.f32 %v4496_v14, %v5766_v58 }
 0x598   :  { %v4504_v42 = vpop.f32.mrb[81].mxu1  ;;  %v4497_v35 = vpop.f32.mrb[62].mxu0  ;;  %4987 = vpow2.f32 %v4055_v48  ;;  %v1689_v32 = vadd.f32 %v5766_v58, %v1688_v2 }
 0x599   :  { %v5868_v15 = vpop.f32.mrb[82].mxu1  ;;  %v1691_v8 = vpop.f32.mrb[63].mxu0  ;;  %4989 = vpow2.f32 %v4059_v37 }
 0x59a   :  { %v4505_v46 = vpop.f32.mrb[83].mxu1  ;;  %4991 = vpow2.f32 %v4057_v33  ;;  %v1692_v39 = vadd.f32 %v5766_v58, %v1691_v8 }
 0x59b   :  { %4993 = vpow2.f32 %v4058_v44 }
 0x59e   :  { %v5870_v45 = vpop.f32.mrb[64].mxu0 }
 0x59f   :  { %v4984_v63 = vpop.eup %4983  ;;  %v5872_v36 = vpop.f32.mrb[84].mxu1 }
 0x5a0   :  { %v4520_v51 = vpop.f32.mrb[65].mxu0  ;;  %v1716_v0 = vadd.f32 1.0, %v4984_v63  ;;  %v4508_v60 = vpop.f32.mrb[85].mxu1 }
 0x5a1   :  { %v5874_v53 = vpop.f32.mrb[66].mxu0  ;;  %v4986_v54 = vpop.eup %4985  ;;  %v5919_v60 = vld [vmem:[%s6390_s2 + $0x9] ss:$0 sm:$0xff] }
 0x5a2   :  { %v1844_v21 = vpop.f32.mrb[86].mxu1  ;;  %v4521_v62 = vpop.f32.mrb[67].mxu0  ;;  %4995 = vrcp.f32 %v1716_v0  ;;  %v1714_v1 = vadd.f32 1.0, %v4986_v54 }
 0x5a3   :  { %v5882_v16 = vadd.f32 %v5879_v57, %v1844_v21  ;;  %v4509_v22 = vpop.f32.mrb[87].mxu1  ;;  %v4988_v24 = vpop.eup %4987  ;;  %v1842_v21 = vadd.f32 %v5879_v57, %v5872_v36  ;;  %v5934_v36 = vld [vmem:[%s6390_s2 + $0x8] ss:$0 sm:$0xff] }
 0x5a4   :  { %4997 = vrcp.f32 %v1714_v1  ;;  %v1715_v3 = vadd.f32 1.0, %v4988_v24  ;;  %v4990_v49 = vpop.eup %4989  ;;  %v1834_v24 = vadd.f32 %v5879_v57, %v5866_v61 }
 0x5a5   :  { %v4992_v12 = vpop.eup %4991  ;;  %v1737_v25 = vadd.f32 1.0, %v4990_v49 }
 0x5a6   :  { %4999 = vrcp.f32 %v1715_v3  ;;  %v5884_v4 = vpop.f32.mrb[68].mxu0  ;;  %v4994_v27 = vpop.eup %4993  ;;  %v1735_v28 = vadd.f32 1.0, %v4992_v12 }
 0x5a7   :  { %v1849_v9 = vpop.f32.mrb[88].mxu1  ;;  %v4524_v6 = vpop.f32.mrb[69].mxu0  ;;  %5001 = vrcp.f32 %v1737_v25  ;;  %v1736_v18 = vadd.f32 1.0, %v4994_v27 }
 0x5a8   :  { %v5892_v7 = vadd.f32 %v5879_v57, %v1849_v9  ;;  %v4512_v10 = vpop.f32.mrb[89].mxu1  ;;  %v1923_v47 = vpop.f32.mrb[70].mxu0  ;;  %5003 = vrcp.f32 %v1735_v28  ;;  %v1837_v6 = vadd.f32 %v5879_v57, %v5868_v15 }
 0x5a9   :  { %v1852_v50 = vpop.f32.mrb[90].mxu1  ;;  %v5895_v52 = vadd.f32 %v5889_v11, %v1923_v47  ;;  %v4525_v17 = vpop.f32.mrb[71].mxu0 }
 0x5aa   :  { %v5898_v13 = vadd.f32 %v5879_v57, %v1852_v50  ;;  %v4513_v20 = vpop.f32.mrb[91].mxu1 }
 0x5ac   :  { %v4996_v31 = vpop.eup %4995 }
 0x5ad   :  { %v1746_v43 = vmul.f32 %v4996_v31, %v1697_v30 }
 0x5ae   :  { %v4998_v29 = vpop.eup %4997  ;;  %v1928_v41 = vpop.f32.mrb[72].mxu0 }
 0x5af   :  { %v1749_v48 = vadd.f32 %v1746_v43, %v5761_v23  ;;  %v1744_v37 = vmul.f32 %v4998_v29, %v1689_v32  ;;  %v5905_v42 = vadd.f32 %v5889_v11, %v1928_v41  ;;  %v5907_v35 = vpop.f32.mrb[92].mxu1  ;;  %v4528_v14 = vpop.f32.mrb[73].mxu0  ;;  %v5944_v43 = vld [vmem:[%s6390_s2 + $0xa] ss:$0 sm:$0xff] }
 0x5b0   :  { %v5000_v33 = vpop.eup %4999  ;;  %v4536_v46 = vpop.f32.mrb[93].mxu1 }
 0x5b1   :  { %v1931_v44 = vpop.f32.mrb[74].mxu0  ;;  %5005 = vtanh.f32 %v1749_v48  ;;  %v1747_v2 = vadd.f32 %v1744_v37, %v5755_v34  ;;  %v1745_v63 = vmul.f32 %v5000_v33, %v1692_v39  ;;  %v5913_v8 = vpop.f32.mrb[94].mxu1  ;;  %v1913_v46 = vadd.f32 %v5889_v11, %v5870_v45 }
 0x5b2   :  { %v5911_v58 = vadd.f32 %v5889_v11, %v1931_v44  ;;  %v4529_v23 = vpop.f32.mrb[75].mxu0  ;;  %5007 = vrcp.f32 %v1736_v18  ;;  %v4537_v51 = vpop.f32.mrb[95].mxu1  ;;  %v1921_v44 = vadd.f32 %v5889_v11, %v5884_v4 }
 0x5b3   :  { %5009 = vtanh.f32 %v1747_v2  ;;  %v1748_v0 = vadd.f32 %v1745_v63, %v5759_v38  ;;  %v5002_v34 = vpop.eup %5001 }
 0x5b4   :  { %v5004_v9 = vpop.eup %5003  ;;  %v1755_v20 = vsub.f32 1.0, %v5002_v34  ;;  %v1761_v15 = vmul.f32 %v5002_v34, %v5773_v26 }
 0x5b5   :  { %5011 = vtanh.f32 %v1748_v0  ;;  %v1753_v32 = vsub.f32 1.0, %v5004_v9  ;;  %v1759_v39 = vmul.f32 %v5004_v9, %v5775_v55 }
 0x5b6   :  { %v4552_v54 = vpop.f32.mrb[76].mxu0 }
 0x5b7   :  { %v5923_v62 = vpop.f32.mrb[96].mxu1  ;;  %v2079_v1 = vadd.f32 %v4552_v54, %v5919_v60  ;;  %v2070_v22 = vpop.f32.mrb[77].mxu0 }
 0x5b8   :  { %v4540_v38 = vpop.f32.mrb[97].mxu1  ;;  %v2071_v3 = vadd.f32 %v5919_v60, %v2070_v22  ;;  %v4553_v49 = vpop.f32.mrb[78].mxu0 }
 0x5b9   :  { %v2226_v12 = vadd.f32 %v2079_v1, %v1842_v21  ;;  %v2002_v10 = vpop.f32.mrb[98].mxu1  ;;  %v2073_v47 = vpop.f32.mrb[79].mxu0  ;;  %v1916_v38 = vadd.f32 %v5889_v11, %v5874_v53 }
 0x5ba   :  { %v2224_v25 = vadd.f32 %v2071_v3, %v1834_v24  ;;  %v5937_v50 = vadd.f32 %v5934_v36, %v2002_v10  ;;  %v4541_v61 = vpop.f32.mrb[99].mxu1  ;;  %v2074_v17 = vadd.f32 %v5919_v60, %v2073_v47 }
 0x5bb   :  { %v5006_v27 = vpop.eup %5005  ;;  %v4089_v28 = vmul.f32 -1.442695, %v2226_v12 }
 0x5bc   :  { %v5008_v57 = vpop.eup %5007  ;;  %v4087_v30 = vmul.f32 -1.442695, %v2224_v25  ;;  %v2225_v31 = vadd.f32 %v2074_v17, %v1837_v6  ;;  %v1758_v29 = vmul.f32 %v5006_v27, %v1755_v20 }
 0x5bd   :  { %v5010_v18 = vpop.eup %5009  ;;  %5013 = vpow2.f32 %v4089_v28  ;;  %v1754_v51 = vsub.f32 1.0, %v5008_v57  ;;  %v1760_v4 = vmul.f32 %v5008_v57, %v5777_v40 }
 0x5be   :  { %5015 = vpow2.f32 %v4087_v30  ;;  %v4088_v41 = vmul.f32 -1.442695, %v2225_v31  ;;  %v4560_v48 = vpop.f32.mrb[80].mxu0  ;;  %v1756_v37 = vmul.f32 %v5010_v18, %v1753_v32  ;;  %v5947_v14 = vadd.f32 %v1761_v15, %v1758_v29  ;;  %v5974_v32 = vld [vmem:[%s6390_s2 + $0xb] ss:$0 sm:$0xff] }
 0x5bf   :  { %v5012_v33 = vpop.eup %5011  ;;  %v2007_v2 = vpop.f32.mrb[100].mxu1  ;;  %v2149_v63 = vadd.f32 %v4560_v48, %v5944_v43 }
 0x5c0   :  { %v2140_v23 = vpop.f32.mrb[81].mxu0  ;;  %5017 = vpow2.f32 %v4088_v41  ;;  %v5955_v55 = vadd.f32 %v5934_v36, %v2007_v2  ;;  %v4544_v0 = vpop.f32.mrb[101].mxu1  ;;  %v5958_v21 = vadd.f32 %v1759_v39, %v1756_v37  ;;  %v1757_v24 = vmul.f32 %v5012_v33, %v1754_v51 }
 0x5c1   :  { %v2141_v54 = vadd.f32 %v5944_v43, %v2140_v23  ;;  %v4561_v34 = vpop.f32.mrb[82].mxu0  ;;  %v2247_v1 = vadd.f32 %v2149_v63, %v1921_v44  ;;  %v2010_v45 = vpop.f32.mrb[102].mxu1  ;;  %v2000_v63 = vadd.f32 %v5934_v36, %v5923_v62  ;;  %v1992_v51 = vadd.f32 %v5934_v36, %v5907_v35 }
 0x5c2   :  { %v2143_v22 = vpop.f32.mrb[83].mxu0  ;;  %v5964_v49 = vadd.f32 %v5934_v36, %v2010_v45  ;;  %v4545_v9 = vpop.f32.mrb[103].mxu1  ;;  %v5967_v10 = vadd.f32 %v1760_v4, %v1757_v24  ;;  %v1995_v45 = vadd.f32 %v5934_v36, %v5913_v8 }
 0x5c3   :  { %v2245_v3 = vadd.f32 %v2141_v54, %v1913_v46  ;;  %v2144_v6 = vadd.f32 %v5944_v43, %v2143_v22  ;;  %v4092_v12 = vmul.f32 -1.442695, %v2247_v1 }
 0x5c4   :  { %v2707_v61 = vpack.c.bf16 %v5947_v14, %v5967_v10 }
 0x5c5   :  { %v4090_v47 = vmul.f32 -1.442695, %v2245_v3  ;;  %v2246_v25 = vadd.f32 %v2144_v6, %v1916_v38  ;;  %5019 = vpow2.f32 %v4092_v12 }
 0x5c6   :  { %v4568_v17 = vpop.f32.mrb[84].mxu0 }
 0x5c7   :  { %5021 = vpow2.f32 %v4090_v47  ;;  %v4091_v40 = vmul.f32 -1.442695, %v2246_v25  ;;  %v5014_v53 = vpop.eup %5013  ;;  %v2210_v11 = vpop.f32.mrb[85].mxu0  ;;  %v2219_v41 = vadd.f32 %v4568_v17, %v5974_v32 }
 0x5c8   :  { %v5016_v20 = vpop.eup %5015  ;;  %v2238_v27 = vadd.f32 1.0, %v5014_v53  ;;  %v4569_v28 = vpop.f32.mrb[86].mxu0  ;;  %v2211_v33 = vadd.f32 %v5974_v32, %v2210_v11 }
 0x5c9   :  { %5023 = vpow2.f32 %v4091_v40  ;;  %v2236_v15 = vadd.f32 1.0, %v5016_v20  ;;  %v2213_v57 = vpop.f32.mrb[87].mxu0 }
 0x5ca   :  { %v5018_v30 = vpop.eup %5017  ;;  %5025 = vrcp.f32 %v2238_v27  ;;  %v2214_v54 = vadd.f32 %v5974_v32, %v2213_v57 }
 0x5cb   :  { %5027 = vrcp.f32 %v2236_v15  ;;  %v2237_v31 = vadd.f32 1.0, %v5018_v30  ;;  %v4876_v30 = vld [vmem:[#allocation2 + $0xc0] sm:$0xff]  }
 0x5cd   :  { %5029 = vrcp.f32 %v2237_v31  ;;  %v4877_v31 = vld [vmem:[#allocation2 + $0xc8] sm:$0xff]  }
 0x5cf   :  { %v5020_v29 = vpop.eup %5019 }
 0x5d0   :  { %v2259_v39 = vadd.f32 1.0, %v5020_v29  ;;  %v4880_v29 = vld [vmem:[#allocation2 + $0xe0] sm:$0xff]  }
 0x5d1   :  { %v5022_v18 = vpop.eup %5021 }
 0x5d2   :  { %v2257_v37 = vadd.f32 1.0, %v5022_v18  ;;  %5031 = vrcp.f32 %v2259_v39  ;;  %v4881_v18 = vld [vmem:[#allocation2 + $0xe8] sm:$0xff]  }
 0x5d3   :  { %v5024_v48 = vpop.eup %5023 }
 0x5d4   :  { %v5026_v46 = vpop.eup %5025  ;;  %v2258_v44 = vadd.f32 1.0, %v5024_v48  ;;  %5033 = vrcp.f32 %v2257_v37 }
 0x5d5   :  { %v5028_v2 = vpop.eup %5027  ;;  %v2268_v23 = vmul.f32 %v5026_v46, %v2219_v41 }
 0x5d6   :  { %v2266_v0 = vmul.f32 %v5028_v2, %v2211_v33  ;;  %5035 = vrcp.f32 %v2258_v44 }
 0x5d7   :  { %v5030_v34 = vpop.eup %5029  ;;  %v2271_v1 = vadd.f32 %v2268_v23, %v2000_v63 }
 0x5d8   :  { %v2269_v22 = vadd.f32 %v2266_v0, %v1992_v51  ;;  %v2267_v24 = vmul.f32 %v5030_v34, %v2214_v54 }
 0x5d9   :  { %5037 = vtanh.f32 %v2271_v1 }
 0x5da   :  { %5039 = vtanh.f32 %v2269_v22  ;;  %v2270_v62 = vadd.f32 %v2267_v24, %v1995_v45 }
 0x5dc   :  { %5041 = vtanh.f32 %v2270_v62  ;;  %v5032_v4 = vpop.eup %5031 }
 0x5dd   :  { %v2277_v35 = vsub.f32 1.0, %v5032_v4  ;;  %v2283_v47 = vmul.f32 0.0, %v5032_v4 }
 0x5de   :  { %v5034_v38 = vpop.eup %5033 }
 0x5df   :  { %v2275_v6 = vsub.f32 1.0, %v5034_v38  ;;  %v2281_v53 = vmul.f32 0.0, %v5034_v38 }
 0x5e0   :  { %v5036_v3 = vpop.eup %5035 }
 0x5e1   :  { %v2276_v40 = vsub.f32 1.0, %v5036_v3  ;;  %v2282_v20 = vmul.f32 0.0, %v5036_v3 }
 0x5e3   :  { %v5038_v9 = vpop.eup %5037 }
 0x5e4   :  { %v5040_v12 = vpop.eup %5039  ;;  %v2280_v25 = vmul.f32 %v5038_v9, %v2277_v35 }
 0x5e5   :  { %v2278_v17 = vmul.f32 %v5040_v12, %v2275_v6 }
 0x5e6   :  { %v5042_v8 = vpop.eup %5041  ;;  %v5985_v36 = vadd.f32 %v2283_v47, %v2280_v25 }
 0x5e7   :  { %v2279_v11 = vmul.f32 %v5042_v8, %v2276_v40  ;;  %v5987_v27 = vadd.f32 %v2281_v53, %v2278_v17 }
 0x5e8   :  { %v2288_v57 = vpack.c.bf16 %v5985_v36, %v5985_v36 }
 0x5e9   :  { %v5989_v28 = vadd.f32 %v2282_v20, %v2279_v11 }
 0x5eb   :  { %v2287_v15 = vpack.c.bf16 %v5989_v28, %v5987_v27 }
 0x5ed   :  { %4574 = vmatprep.mubr.msk.bf16.mxu1 %vm240_vm2, %v2287_v15  ;;  %4582 = vmatprep.mubr.msk.bf16.mxu0 %vm240_vm2, %v2287_v15 }
 0x5ee   :  { %4575 = vmatmul.mubr.msk.bf16.vlgmr.msra.gmra.mrb[104].mxu1 %vm240_vm2, %v2288_v57  ;;  %4583 = vmatmul.mubr.msk.bf16.vlgmr.msra.gmra.mrb[88].mxu0 %vm240_vm2, %v2288_v57 }
 0x5ef   :  { %4587 = vmatpush3.bf16.msra.mxu1 %v5833_v5  ;;  %4590 = vmatprep.mubr.msk.bf16.mxu1 %vm240_vm2, %v2287_v15  ;;  %v4878_v5 = vld [vmem:[#allocation2 + $0xd0] sm:$0xff]  }
 0x5f0   :  { %4595 = vmatpush3.bf16.msra.mxu0 %v4876_v30  ;;  %4588 = vmatprep.subr.bf16.mxu1 %v5843_v19 }
 0x5f1   :  { %4596 = vmatprep.subr.bf16.mxu0 %v5197_v59  ;;  %4598 = vmatprep.mubr.msk.bf16.mxu0 %vm5198_vm3, %v5197_v59 }
 0x5f3   :  { %4589 = vmatpush3.bf16.msra.mxu1 %v5843_v19  ;;  %v4879_v19 = vld [vmem:[#allocation2 + $0xd8] sm:$0xff]  }
 0x5f4   :  { %4597 = vmatpush3.bf16.msra.mxu0 %v4877_v31  ;;  %4610 = vmatprep.subr.bf16.mxu1 %v5197_v59 }
 0x5f5   :  { %4626 = vmatprep.subr.bf16.mxu0 %v5197_v59 }
 0x5f6   :  { %4591 = vmatmul.mubr.msk.bf16.vlgmr.msra.gmra.mrb[108].mxu1 %vm240_vm2, %v2288_v57 }
 0x5f7   :  { %4599 = vmatmul.mubr.msk.bf16.vlgmr.msra.gmra.mrb[92].mxu0 %vm240_vm2, %v2287_v15  ;;  %4614 = vmatprep.mubr.msk.bf16.mxu1 %vm5198_vm3, %v5197_v59 }
 0x5f8   :  { %4602 = vmatprep.mubr.msk.bf16.mxu0 %vm5198_vm3, %v5197_v59  ;;  %4611 = vmatpush3.bf16.msra.mxu1 %v4878_v5 }
 0x5f9   :  { %4612 = vmatprep.subr.bf16.mxu1 %v5197_v59  ;;  %4627 = vmatpush3.bf16.msra.mxu0 %v4880_v29 }
 0x5fa   :  { %4628 = vmatprep.subr.bf16.mxu0 %v5197_v59 }
 0x5fc   :  { %4613 = vmatpush3.bf16.msra.mxu1 %v4879_v19 }
 0x5fd   :  { %4642 = vmatprep.subr.bf16.mxu1 %v5197_v59  ;;  %4629 = vmatpush3.bf16.msra.mxu0 %v4881_v18 }
 0x5fe   :  { %4658 = vmatprep.subr.bf16.mxu0 %v5197_v59 }
 0x6c1   :  { %v4576_v39 = vpop.f32.mrb[104].mxu1  ;;  %v4584_v41 = vpop.f32.mrb[88].mxu0 }
 0x6c2   :  { %v2338_v48 = vadd.f32 %v4576_v39, %v5919_v60  ;;  %v2386_v37 = vadd.f32 %v4584_v41, %v5944_v43  ;;  %v2329_v33 = vpop.f32.mrb[105].mxu1  ;;  %v2377_v46 = vpop.f32.mrb[89].mxu0 }
 0x6c3   :  { %v2330_v44 = vadd.f32 %v5919_v60, %v2329_v33  ;;  %v2378_v2 = vadd.f32 %v5944_v43, %v2377_v46  ;;  %v4577_v63 = vpop.f32.mrb[106].mxu1  ;;  %v4585_v23 = vpop.f32.mrb[90].mxu0 }
 0x6c4   :  { %v2441_v51 = vadd.f32 %v2338_v48, %v5898_v13  ;;  %v2462_v0 = vadd.f32 %v2386_v37, %v5911_v58  ;;  %v2332_v54 = vpop.f32.mrb[107].mxu1  ;;  %v2380_v34 = vpop.f32.mrb[91].mxu0  ;;  %v6033_v13 = vld [vmem:[%s6390_s2 + $0xc] ss:$0 sm:$0xff] }
 0x6c5   :  { %v2439_v1 = vadd.f32 %v2330_v44, %v5882_v16  ;;  %v2460_v45 = vadd.f32 %v2378_v2, %v5895_v52  ;;  %v2333_v22 = vadd.f32 %v5919_v60, %v2332_v54  ;;  %v2381_v24 = vadd.f32 %v5944_v43, %v2380_v34 }
 0x6c6   :  { %v4101_v62 = vmul.f32 -1.442695, %v2441_v51  ;;  %v4104_v60 = vmul.f32 -1.442695, %v2462_v0 }
 0x6c7   :  { %v4099_v4 = vmul.f32 -1.442695, %v2439_v1  ;;  %v2440_v38 = vadd.f32 %v2333_v22, %v5892_v7  ;;  %v2461_v3 = vadd.f32 %v2381_v24, %v5905_v42  ;;  %v4102_v42 = vmul.f32 -1.442695, %v2460_v45 }
 0x6c8   :  { %5043 = vpow2.f32 %v4101_v62 }
 0x6c9   :  { %v4100_v58 = vmul.f32 -1.442695, %v2440_v38  ;;  %v4592_v16 = vpop.f32.mrb[108].mxu1  ;;  %5045 = vpow2.f32 %v4099_v4  ;;  %v4103_v17 = vmul.f32 -1.442695, %v2461_v3 }
 0x6ca   :  { %v2569_v52 = vpop.f32.mrb[92].mxu0  ;;  %v2425_v35 = vpop.f32.mrb[109].mxu1  ;;  %v2434_v37 = vadd.f32 %v4592_v16, %v5974_v32 }
 0x6cb   :  { %v2570_v43 = vadd.f32 %v6033_v13, %v2569_v52  ;;  %v4600_v9 = vpop.f32.mrb[93].mxu0  ;;  %v4593_v6 = vpop.f32.mrb[110].mxu1  ;;  %5047 = vpow2.f32 %v4100_v58  ;;  %v2426_v2 = vadd.f32 %v5974_v32, %v2425_v35 }
 0x6cc   :  { %v2572_v7 = vpop.f32.mrb[94].mxu0  ;;  %v2428_v12 = vpop.f32.mrb[111].mxu1  ;;  %5049 = vpow2.f32 %v4104_v60 }
 0x6cd   :  { %v2598_v47 = vmul.f32 0.01, %v2570_v43  ;;  %v2573_v25 = vadd.f32 %v6033_v13, %v2572_v7  ;;  %v4601_v40 = vpop.f32.mrb[95].mxu0  ;;  %vm2592_vm4 = vcmp.gt.f32.partialorder %v2570_v43, 0.0  ;;  %5051 = vpow2.f32 %v4102_v42 }
 0x6ce   :  { %5053 = vpow2.f32 %v4103_v17  ;;  %v2429_v0 = vadd.f32 %v5974_v32, %v2428_v12 }
 0x6cf   :  { %vm2593_vm5 = vcmp.gt.f32.partialorder %v2573_v25, 0.0  ;;  %v2599_v53 = vmul.f32 0.01, %v2573_v25  ;;  %v2604_v8 = vsel %vm2592_vm4, %v2570_v43, %v2598_v47  ;;  %vm2921_vm4 = vcmask 392192  }
 0x6d1   :  { %v2605_v11 = vsel %vm2593_vm5, %v2573_v25, %v2599_v53  ;;  %v4883_v25 = vld [vmem:[#allocation2 + $0xf8] sm:$0xff]  }
 0x6d2   :  { %v5044_v20 = vpop.eup %5043  ;;  %v2615_v15 = vpack.c.bf16 %v2605_v11, %v2604_v8 }
 0x6d3   :  { %v2453_v57 = vadd.f32 1.0, %v5044_v20  ;;  %v5046_v30 = vpop.eup %5045 }
 0x6d4   :  { %4615 = vmatmul.mubr.msk.bf16.vlgmr.msra.gmra.mrb[112].mxu1 %vm240_vm2, %v2615_v15  ;;  %v2451_v31 = vadd.f32 1.0, %v5046_v30 }
 0x6d5   :  { %5055 = vrcp.f32 %v2453_v57  ;;  %4618 = vmatprep.mubr.msk.bf16.mxu1 %vm5198_vm3, %v5197_v59  ;;  %v5048_v5 = vpop.eup %5047 }
 0x6d6   :  { %5057 = vrcp.f32 %v2451_v31  ;;  %v2452_v19 = vadd.f32 1.0, %v5048_v5  ;;  %v5050_v29 = vpop.eup %5049 }
 0x6d7   :  { %v5052_v18 = vpop.eup %5051  ;;  %v2474_v41 = vadd.f32 1.0, %v5050_v29 }
 0x6d8   :  { %5059 = vrcp.f32 %v2452_v19  ;;  %v5054_v39 = vpop.eup %5053  ;;  %v2472_v48 = vadd.f32 1.0, %v5052_v18 }
 0x6d9   :  { %v2473_v46 = vadd.f32 1.0, %v5054_v39  ;;  %5061 = vrcp.f32 %v2474_v41 }
 0x6da   :  { %5063 = vrcp.f32 %v2472_v48 }
 0x6db   :  { %5065 = vrcp.f32 %v2473_v46 }
 0x6df   :  { %v5056_v33 = vpop.eup %5055 }
 0x6e0   :  { %v2483_v44 = vmul.f32 %v5056_v33, %v2434_v37  ;;  %v5058_v63 = vpop.eup %5057  ;;  %v4117_v33 = vld [vmem:[%s6390_s2 + $0xe] ss:$0 sm:$0xff] }
 0x6e1   :  { %v2481_v51 = vmul.f32 %v5058_v63, %v2426_v2 }
 0x6e2   :  { %v2486_v23 = vadd.f32 %v2483_v44, %v5964_v49  ;;  %v5060_v54 = vpop.eup %5059 }
 0x6e3   :  { %v2484_v34 = vadd.f32 %v2481_v51, %v5937_v50  ;;  %v2482_v1 = vmul.f32 %v5060_v54, %v2429_v0  ;;  %v5062_v22 = vpop.eup %5061 }
 0x6e4   :  { %5067 = vtanh.f32 %v2486_v23  ;;  %v5064_v24 = vpop.eup %5063  ;;  %v2492_v4 = vsub.f32 1.0, %v5062_v22  ;;  %v2498_v58 = vmul.f32 %v5062_v22, %v5985_v36 }
 0x6e5   :  { %5069 = vtanh.f32 %v2484_v34  ;;  %v2485_v45 = vadd.f32 %v2482_v1, %v5955_v55  ;;  %v5066_v62 = vpop.eup %5065  ;;  %v2490_v3 = vsub.f32 1.0, %v5064_v24  ;;  %v2496_v52 = vmul.f32 %v5064_v24, %v5987_v27 }
 0x6e6   :  { %v2491_v35 = vsub.f32 1.0, %v5066_v62  ;;  %v2497_v55 = vmul.f32 %v5066_v62, %v5989_v28  ;;  %v2706_v28 = vpack.c.bf16 %v5958_v21, %v5773_v26 }
 0x6e7   :  { %5071 = vtanh.f32 %v2485_v45 }
 0x6ee   :  { %v5068_v38 = vpop.eup %5067 }
 0x6ef   :  { %v2495_v49 = vmul.f32 %v5068_v38, %v2492_v4  ;;  %v5070_v32 = vpop.eup %5069 }
 0x6f0   :  { %v2493_v16 = vmul.f32 %v5070_v32, %v2490_v3 }
 0x6f1   :  { %v2501_v50 = vadd.f32 %v2498_v58, %v2495_v49  ;;  %v5072_v60 = vpop.eup %5071 }
 0x6f2   :  { %v2499_v43 = vadd.f32 %v2496_v52, %v2493_v16  ;;  %v2494_v9 = vmul.f32 %v5072_v60, %v2491_v35 }
 0x6f3   :  { %v6050_v6 = vadd.f32 %v2501_v50, %v5947_v14 }
 0x6f4   :  { %v2510_v7 = vpack.c.bf16 %v2499_v43, %v5985_v36  ;;  %v2500_v12 = vadd.f32 %v2497_v55, %v2494_v9  ;;  %v2502_v42 = vadd.f32 %v2499_v43, %v5958_v21 }
 0x6f5   :  { %3936 = vst.msk [vmem:[%s6395_s7 + $0x10] sm:$0xff] %vm240_vm2, %v6050_v6 }
 0x6f6   :  { %4603 = vmatmul.mubr.msk.bf16.gmra.mrb[96].mxu0 %vm240_vm2, %v2510_v7  ;;  %v2511_v27 = vpack.c.bf16 %v2501_v50, %v2500_v12  ;;  %v2503_v47 = vadd.f32 %v2500_v12, %v5967_v10  ;;  %3934 = vst.msk [vmem:[%s6395_s7] sm:$0xff] %vm240_vm2, %v2502_v42 }
 0x6f7   :  { %4606 = vmatprep.mubr.msk.bf16.mxu0 %vm5198_vm3, %v5197_v59 }
 0x6f8   :  { %v6067_v36 = vpack.c.bf16 %v2503_v47, %v2502_v42  ;;  %3935 = vst.msk [vmem:[%s6395_s7 + $0x8] sm:$0xff] %vm240_vm2, %v2503_v47 }
 0x6fe   :  { %4607 = vmatmul.mubr.msk.bf16.gmra.mrb[100].mxu0 %vm240_vm2, %v2511_v27 }
 0x6ff   :  { %4630 = vmatprep.mubr.msk.bf16.mxu0 %vm5198_vm3, %v5197_v59 }
 0x706   :  { %4631 = vmatmul.mubr.msk.bf16.vlgmr.msra.gmra.mrb[104].mxu0 %vm240_vm2, %v5781_v56  ;;  %v4882_v56 = vld [vmem:[#allocation2 + $0xf0] sm:$0xff]  }
 0x707   :  { %4634 = vmatprep.mubr.msk.bf16.mxu0 %vm5198_vm3, %v5197_v59  ;;  %4643 = vmatpush3.bf16.msra.mxu1 %v4882_v56 }
 0x708   :  { %4644 = vmatprep.subr.bf16.mxu1 %v5197_v59 }
 0x70b   :  { %4645 = vmatpush3.bf16.msra.mxu1 %v4883_v25  ;;  %v4889_v25 = vld [vmem:[#allocation2 + $0x150] sm:$0xff]  }
 0x70c   :  { %4676 = vmatprep.subr.bf16.mxu1 %v5197_v59 }
 0x70e   :  { %4635 = vmatmul.mubr.msk.bf16.gmra.mrb[108].mxu0 %vm240_vm2, %v2706_v28 }
 0x70f   :  { %4638 = vmatprep.mubr.msk.bf16.mxu0 %vm5198_vm3, %v5197_v59 }
 0x716   :  { %4639 = vmatmul.mubr.msk.bf16.gmra.mrb[112].mxu0 %vm240_vm2, %v2707_v61 }
 0x717   :  { %4664 = vmatprep.mubr.msk.bf16.mxu0 %vm5198_vm3, %v5197_v59 }
 0x7a7   :  { %v6093_v26 = vpop.f32.mrb[112].mxu1 }
 0x7a8   :  { %v4616_v21 = vpop.f32.mrb[113].mxu1 }
 0x7a9   :  { %v6095_v40 = vpop.f32.mrb[114].mxu1 }
 0x7aa   :  { %v4617_v17 = vpop.f32.mrb[115].mxu1 }
 0x7c9   :  { %v2577_v14 = vpop.f32.mrb[96].mxu0 }
 0x7ca   :  { %v2578_v10 = vadd.f32 %v6033_v13, %v2577_v14  ;;  %v4604_v61 = vpop.f32.mrb[97].mxu0 }
 0x7cb   :  { %v2580_v53 = vpop.f32.mrb[98].mxu0 }
 0x7cc   :  { %v2600_v8 = vmul.f32 0.01, %v2578_v10  ;;  %v2581_v11 = vadd.f32 %v6033_v13, %v2580_v53  ;;  %v4605_v20 = vpop.f32.mrb[99].mxu0  ;;  %vm2594_vm6 = vcmp.gt.f32.partialorder %v2578_v10, 0.0 }
 0x7cd   :  { %v4111_v20 = vld [vmem:[%s6390_s2 + $0xd] ss:$0 sm:$0xff] }
 0x7ce   :  { %vm2595_vm7 = vcmp.gt.f32.partialorder %v2581_v11, 0.0  ;;  %v2601_v15 = vmul.f32 0.01, %v2581_v11  ;;  %v2606_v57 = vsel %vm2594_vm6, %v2578_v10, %v2600_v8 }
 0x7d0   :  { %v2607_v30 = vsel %vm2595_vm7, %v2581_v11, %v2601_v15  ;;  %v4123_v15 = vld [vmem:[%s6390_s2 + $0xf] ss:$0 sm:$0xff] }
 0x7d1   :  { %v2616_v31 = vpack.c.bf16 %v2607_v30, %v2606_v57  ;;  %v2585_v5 = vpop.f32.mrb[100].mxu0  ;;  %v6127_v30 = vadd.f32 %v4111_v20, %v6093_v26 }
 0x7d2   :  { %v2586_v19 = vadd.f32 %v6033_v13, %v2585_v5  ;;  %v4608_v29 = vpop.f32.mrb[101].mxu0 }
 0x7d3   :  { %v2588_v18 = vpop.f32.mrb[102].mxu0  ;;  %4619 = vmatmul.mubr.msk.bf16.gmra.mrb[116].mxu1 %vm240_vm2, %v2616_v31  ;;  %v6130_v29 = vadd.f32 %v4111_v20, %v6095_v40 }
 0x7d4   :  { %v2602_v39 = vmul.f32 0.01, %v2586_v19  ;;  %v2589_v41 = vadd.f32 %v6033_v13, %v2588_v18  ;;  %v4609_v48 = vpop.f32.mrb[103].mxu0  ;;  %4622 = vmatprep.mubr.msk.bf16.mxu1 %vm5198_vm3, %v5197_v59  ;;  %vm2596_vm8 = vcmp.gt.f32.partialorder %v2586_v19, 0.0 }
 0x7d6   :  { %vm2597_vm9 = vcmp.gt.f32.partialorder %v2589_v41, 0.0  ;;  %v2603_v37 = vmul.f32 0.01, %v2589_v41  ;;  %v2608_v46 = vsel %vm2596_vm8, %v2586_v19, %v2602_v39 }
 0x7d8   :  { %v2609_v44 = vsel %vm2597_vm9, %v2589_v41, %v2603_v37 }
 0x7d9   :  { %v2617_v2 = vpack.c.bf16 %v2609_v44, %v2608_v46  ;;  %v2765_v63 = vpop.f32.mrb[104].mxu0 }
 0x7da   :  { %v2766_v23 = vadd.f32 %v4117_v33, %v2765_v63  ;;  %v4632_v51 = vpop.f32.mrb[105].mxu0 }
 0x7db   :  { %4623 = vmatmul.mubr.msk.bf16.gmra.mrb[120].mxu1 %vm240_vm2, %v2617_v2  ;;  %v2768_v13 = vpop.f32.mrb[106].mxu0 }
 0x7dc   :  { %v2794_v0 = vmul.f32 0.01, %v2766_v23  ;;  %v2769_v54 = vadd.f32 %v4117_v33, %v2768_v13  ;;  %v4633_v34 = vpop.f32.mrb[107].mxu0  ;;  %4646 = vmatprep.mubr.msk.bf16.mxu1 %vm5198_vm3, %v5197_v59  ;;  %vm2788_vm10 = vcmp.gt.f32.partialorder %v2766_v23, 0.0 }
 0x7de   :  { %vm2789_vm11 = vcmp.gt.f32.partialorder %v2769_v54, 0.0  ;;  %v2795_v1 = vmul.f32 0.01, %v2769_v54  ;;  %v2800_v45 = vsel %vm2788_vm10, %v2766_v23, %v2794_v0 }
 0x7e0   :  { %v2801_v22 = vsel %vm2789_vm11, %v2769_v54, %v2795_v1 }
 0x7e1   :  { %v2811_v24 = vpack.c.bf16 %v2801_v22, %v2800_v45  ;;  %v2773_v62 = vpop.f32.mrb[108].mxu0 }
 0x7e2   :  { %v2774_v4 = vadd.f32 %v4117_v33, %v2773_v62  ;;  %v4636_v38 = vpop.f32.mrb[109].mxu0 }
 0x7e3   :  { %v2776_v3 = vpop.f32.mrb[110].mxu0  ;;  %4647 = vmatmul.mubr.msk.bf16.vlgmr.msra.gmra.mrb[124].mxu1 %vm240_vm2, %v2811_v24 }
 0x7e4   :  { %v2796_v49 = vmul.f32 0.01, %v2774_v4  ;;  %v2777_v58 = vadd.f32 %v4117_v33, %v2776_v3  ;;  %v4637_v32 = vpop.f32.mrb[111].mxu0  ;;  %4650 = vmatprep.mubr.msk.bf16.mxu1 %vm5198_vm3, %v5197_v59  ;;  %vm2790_vm12 = vcmp.gt.f32.partialorder %v2774_v4, 0.0  ;;  %4677 = vmatpush3.bf16.msra.mxu1 %v4889_v25 }
 0x7e5   :  { %4678 = vmatprep.subr.bf16.mxu1 %v5197_v59  ;;  %v3322_v32 = vpack.c.bf16 %v6050_v6, %v6050_v6  ;;  %v4886_v6 = vld [vmem:[%s6392_s4 + $0x10] sm:$0xff]  }
 0x7e6   :  { %vm2791_vm13 = vcmp.gt.f32.partialorder %v2777_v58, 0.0  ;;  %v2797_v16 = vmul.f32 0.01, %v2777_v58  ;;  %v2802_v52 = vsel %vm2790_vm12, %v2774_v4, %v2796_v49 }
 0x7e8   :  { %v2803_v35 = vsel %vm2791_vm13, %v2777_v58, %v2797_v16  ;;  %v4884_v58 = vld [vmem:[%s6392_s4] sm:$0xff]   ;;  %v3364_v16 = vsel %vm114_vm0, %v3322_v32, 0 }
 0x7e9   :  { %v2812_v50 = vpack.c.bf16 %v2803_v35, %v2802_v52  ;;  %v2781_v60 = vpop.f32.mrb[112].mxu0  ;;  %v4885_v52 = vld [vmem:[%s6392_s4 + $0x8] sm:$0xff]   ;;  %v4888_v35 = vld [vmem:[%s6391_s3 + $0x54] sm:$0xff]  }
 0x7ea   :  { %v2782_v43 = vadd.f32 %v4117_v33, %v2781_v60  ;;  %v4640_v9 = vpop.f32.mrb[113].mxu0  ;;  %v4891_v60 = vld [vmem:[#allocation2 + $0x130] sm:$0xff]  }
 0x7eb   :  { %v2784_v55 = vpop.f32.mrb[114].mxu0  ;;  %4651 = vmatmul.mubr.msk.bf16.gmra.mrb[128].mxu1 %vm240_vm2, %v2812_v50  ;;  %v4890_v50 = vld [vmem:[#allocation2 + $0x158] sm:$0xff]   ;;  %v4898_v9 = vld [vmem:[%s6391_s3 + $0x64] sm:$0xff]  }
 0x7ec   :  { %v2798_v7 = vmul.f32 0.01, %v2782_v43  ;;  %v2785_v12 = vadd.f32 %v4117_v33, %v2784_v55  ;;  %v4641_v42 = vpop.f32.mrb[115].mxu0  ;;  %4654 = vmatprep.mubr.msk.bf16.mxu1 %vm5198_vm3, %v5197_v59  ;;  %vm2792_vm14 = vcmp.gt.f32.partialorder %v2782_v43, 0.0  ;;  %4679 = vmatpush3.bf16.msra.mxu1 %v4890_v50 }
 0x7ed   :  { %4704 = vmatprep.subr.bf16.mxu1 %v4891_v60 }
 0x7ee   :  { %vm2793_vm15 = vcmp.gt.f32.partialorder %v2785_v12, 0.0  ;;  %v2799_v27 = vmul.f32 0.01, %v2785_v12  ;;  %v2804_v47 = vsel %vm2792_vm14, %v2782_v43, %v2798_v7  ;;  %v4897_v43 = vld [vmem:[%s6391_s3 + $0x5c] sm:$0xff]  }
 0x7f0   :  { %v2805_v28 = vsel %vm2793_vm15, %v2785_v12, %v2799_v27 }
 0x7f1   :  { %v2813_v56 = vpack.c.bf16 %v2805_v28, %v2804_v47  ;;  %v4892_v47 = vld [vmem:[#allocation2 + $0x138] sm:$0xff]   ;;  %v4893_v28 = vld [vmem:[#allocation2 + $0x120] sm:$0xff]  }
 0x7f3   :  { %4655 = vmatmul.mubr.msk.bf16.gmra.mrb[132].mxu1 %vm240_vm2, %v2813_v56 }
 0x7f4   :  { %4680 = vmatprep.mubr.msk.bf16.mxu1 %vm5198_vm3, %v5197_v59 }
 0x8a6   :  { %v2686_v21 = vpop.f32.mrb[116].mxu1 }
 0x8a7   :  { %v4620_v17 = vpop.f32.mrb[117].mxu1  ;;  %v6139_v26 = vadd.f32 %v4111_v20, %v2686_v21 }
 0x8a8   :  { %v2689_v14 = vpop.f32.mrb[118].mxu1 }
 0x8a9   :  { %v4621_v10 = vpop.f32.mrb[119].mxu1  ;;  %v6141_v40 = vadd.f32 %v4111_v20, %v2689_v14 }
 0x8ae   :  { %v2694_v61 = vpop.f32.mrb[120].mxu1 }
 0x8af   :  { %v4624_v53 = vpop.f32.mrb[121].mxu1  ;;  %v6150_v34 = vadd.f32 %v4111_v20, %v2694_v61 }
 0x8b0   :  { %v2697_v8 = vpop.f32.mrb[122].mxu1 }
 0x8b1   :  { %v4625_v11 = vpop.f32.mrb[123].mxu1  ;;  %v6152_v24 = vadd.f32 %v4111_v20, %v2697_v8 }
 0x8b6   :  { %v2874_v57 = vpop.f32.mrb[124].mxu1 }
 0x8b7   :  { %v2875_v31 = vadd.f32 %v4123_v15, %v2874_v57  ;;  %v4648_v5 = vpop.f32.mrb[125].mxu1 }
 0x8b8   :  { %v2877_v19 = vpop.f32.mrb[126].mxu1 }
 0x8b9   :  { %v2878_v18 = vadd.f32 %v4123_v15, %v2877_v19  ;;  %v4649_v39 = vpop.f32.mrb[127].mxu1  ;;  %v6133_v41 = vmul.f32 %v2875_v31, %v6127_v30 }
 0x8ba   :  { %v4894_v39 = vld [vmem:[#allocation2 + $0x128] sm:$0xff]  }
 0x8bb   :  { %v2903_v48 = vpack.c.bf16 %v2878_v18, %v2875_v31  ;;  %v6136_v37 = vmul.f32 %v2878_v18, %v6130_v29  ;;  %v4895_v18 = vld [vmem:[%s6391_s3 + $0x3c] sm:$0xff]  }
 0x8bd   :  { %4659 = vmatpush3.bf16.msra.mxu0 %v2903_v48  ;;  %v4896_v48 = vld [vmem:[%s6391_s3 + $0x44] sm:$0xff]  }
 0x8be   :  { %v2882_v33 = vpop.f32.mrb[128].mxu1  ;;  %4660 = vmatprep.subr.bf16.mxu0 %v5197_v59 }
 0x8bf   :  { %v2883_v46 = vadd.f32 %v4123_v15, %v2882_v33  ;;  %v4652_v44 = vpop.f32.mrb[129].mxu1  ;;  %v4899_v33 = vld [vmem:[#allocation2 + $0x100] sm:$0xff]  }
 0x8c0   :  { %v2885_v2 = vpop.f32.mrb[130].mxu1  ;;  %v4901_v44 = vld [vmem:[#allocation2 + $0x110] sm:$0xff]  }
 0x8c1   :  { %v2886_v63 = vadd.f32 %v4123_v15, %v2885_v2  ;;  %v4653_v23 = vpop.f32.mrb[131].mxu1  ;;  %v6144_v51 = vmul.f32 %v2883_v46, %v6139_v26 }
 0x8c3   :  { %v2904_v13 = vpack.c.bf16 %v2886_v63, %v2883_v46  ;;  %v6147_v0 = vmul.f32 %v2886_v63, %v6141_v40  ;;  %v4900_v46 = vld [vmem:[#allocation2 + $0x108] sm:$0xff]  }
 0x8c5   :  { %4661 = vmatpush3.bf16.msra.mxu0 %v2904_v13 }
 0x8c6   :  { %v2890_v54 = vpop.f32.mrb[132].mxu1  ;;  %4662 = vmatprep.subr.bf16.mxu0 %v5197_v59 }
 0x8c7   :  { %v2891_v1 = vadd.f32 %v4123_v15, %v2890_v54  ;;  %v4656_v45 = vpop.f32.mrb[133].mxu1 }
 0x8c8   :  { %v2893_v22 = vpop.f32.mrb[134].mxu1 }
 0x8c9   :  { %v2894_v62 = vadd.f32 %v4123_v15, %v2893_v22  ;;  %v4657_v4 = vpop.f32.mrb[135].mxu1  ;;  %v6155_v38 = vmul.f32 %v2891_v1, %v6150_v34 }
 0x8cb   :  { %v2905_v3 = vpack.c.bf16 %v2894_v62, %v2891_v1  ;;  %v6158_v49 = vmul.f32 %v2894_v62, %v6152_v24 }
 0x8cd   :  { %4663 = vmatpush3.bf16.msra.mxu0 %v2905_v3 }
 0x8ce   :  { %4692 = vmatprep.subr.bf16.mxu0 %v6067_v36 }
 0x8d0   :  { %4665 = vmatmul.mubr.msk.bf16.vlgmr.msra.gmra.mrb[116].mxu0 %vm2921_vm4, %v4884_v58 }
 0x8d1   :  { %4693 = vmatpush3.bf16.msra.mxu0 %v6067_v36  ;;  %4668 = vmatprep.mubr.msk.bf16.mxu0 %vm5198_vm3, %v5197_v59  ;;  %v4887_v36 = vld [vmem:[%s6391_s3 + $0x4c] sm:$0xff]  }
 0x8d2   :  { %4765 = vmatprep.subr.msk.bf16.mxu0 %vm114_vm0, %v3322_v32 }
 0x8d5   :  { %4695 = vmatpush3.bf16.msra.mxu0 %v3364_v16 }
 0x8d6   :  { %4720 = vmatprep.subr.bf16.mxu0 %v4899_v33 }
 0x8d8   :  { %4669 = vmatmul.mubr.msk.bf16.gmra.mrb[120].mxu0 %vm2921_vm4, %v4885_v52 }
 0x8d9   :  { %4672 = vmatprep.mubr.msk.bf16.mxu0 %vm5198_vm3, %v5197_v59 }
 0x8e0   :  { %4673 = vmatmul.mubr.msk.bf16.gmra.mrb[124].mxu0 %vm2921_vm4, %v4886_v6 }
 0x8e1   :  { %4696 = vmatprep.mubr.msk.bf16.mxu0 %vm95_vm1, %v4887_v36 }
 0x8e8   :  { %4697 = vmatmul.mubr.msk.bf16.vlgmr.msra.gmra.mrb[128].mxu0 %vm95_vm1, %v4888_v35 }
 0x8e9   :  { %4700 = vmatprep.mubr.msk.bf16.mxu0 %vm95_vm1, %v4897_v43  ;;  %4721 = vmatpush3.bf16.msra.mxu0 %v4899_v33 }
 0x8ea   :  { %4722 = vmatprep.subr.bf16.mxu0 %v4900_v46 }
 0x8ed   :  { %4723 = vmatpush3.bf16.msra.mxu0 %v4900_v46 }
 0x8ee   :  { %4728 = vmatprep.subr.bf16.mxu0 %v4901_v44 }
 0x8f0   :  { %4701 = vmatmul.mubr.msk.bf16.gmra.mrb[132].mxu0 %vm95_vm1, %v4898_v9  ;;  %vm3290_vm1 = vcmask 7168  }
 0x9a3   :  { %v2965_v55 = vpop.f32.mrb[116].mxu0 }
 0x9a4   :  { %v4666_v7 = vpop.f32.mrb[117].mxu0 }
 0x9a5   :  { %v2968_v12 = vpop.f32.mrb[118].mxu0 }
 0x9a6   :  { %v2993_v42 = vpack.c.bf16 %v2968_v12, %v2965_v55  ;;  %v4667_v27 = vpop.f32.mrb[119].mxu0 }
 0x9a8   :  { %4681 = vmatmul.mubr.msk.bf16.vlgmr.msra.gmra.mrb[136].mxu1 %vm240_vm2, %v2993_v42 }
 0x9a9   :  { %4684 = vmatprep.mubr.msk.bf16.mxu1 %vm5198_vm3, %v5197_v59  ;;  %4705 = vmatpush3.bf16.msra.mxu1 %v4891_v60 }
 0x9aa   :  { %4706 = vmatprep.subr.bf16.mxu1 %v4892_v47 }
 0x9ab   :  { %v2973_v56 = vpop.f32.mrb[120].mxu0 }
 0x9ac   :  { %v4670_v25 = vpop.f32.mrb[121].mxu0 }
 0x9ad   :  { %v2976_v21 = vpop.f32.mrb[122].mxu0  ;;  %4707 = vmatpush3.bf16.msra.mxu1 %v4892_v47  ;;  %v4904_v25 = vld [vmem:[#allocation2 + $0x148] sm:$0xff]  }
 0x9ae   :  { %v2994_v17 = vpack.c.bf16 %v2976_v21, %v2973_v56  ;;  %v4671_v14 = vpop.f32.mrb[123].mxu0  ;;  %4712 = vmatprep.subr.bf16.mxu1 %v4893_v28  ;;  %v4902_v56 = vld [vmem:[#allocation2 + $0x118] sm:$0xff]   ;;  %v4170_v21 = vld [vmem:[%s6390_s2 + $0x10] ss:$0 sm:$0xff] }
 0x9b0   :  { %4685 = vmatmul.mubr.msk.bf16.gmra.mrb[140].mxu1 %vm240_vm2, %v2994_v17 }
 0x9b1   :  { %4688 = vmatprep.mubr.msk.bf16.mxu1 %vm5198_vm3, %v5197_v59 }
 0x9b3   :  { %v2981_v10 = vpop.f32.mrb[124].mxu0 }
 0x9b4   :  { %v4674_v61 = vpop.f32.mrb[125].mxu0 }
 0x9b5   :  { %v2984_v53 = vpop.f32.mrb[126].mxu0 }
 0x9b6   :  { %v2995_v8 = vpack.c.bf16 %v2984_v53, %v2981_v10  ;;  %v4675_v11 = vpop.f32.mrb[127].mxu0 }
 0x9b8   :  { %4689 = vmatmul.mubr.msk.bf16.gmra.mrb[144].mxu1 %vm240_vm2, %v2995_v8 }
 0x9bb   :  { %v6202_v20 = vpop.f32.mrb[128].mxu0 }
 0x9bc   :  { %v6204_v15 = vpop.f32.mrb[129].mxu0 }
 0x9bd   :  { %v6206_v57 = vpop.f32.mrb[130].mxu0 }
 0x9be   :  { %v3446_v31 = vpack.c.bf16 %v6206_v57, %v6202_v20  ;;  %v6210_v5 = vpop.f32.mrb[131].mxu0 }
 0x9bf   :  { %v3445_v19 = vpack.c.bf16 %v6210_v5, %v6204_v15 }
 0x9c1   :  { %4708 = vmatprep.mubr.msk.bf16.mxu1 %vm240_vm2, %v3445_v19 }
 0x9c2   :  { %4709 = vmatmul.mubr.msk.bf16.vlgmr.msra.gmra.mrb[148].mxu1 %vm240_vm2, %v3446_v31 }
 0x9c3   :  { %4713 = vmatpush3.bf16.msra.mxu1 %v4893_v28  ;;  %4716 = vmatprep.mubr.msk.bf16.mxu1 %vm240_vm2, %v4895_v18  ;;  %v4702_v2 = vpop.f32.mrb[132].mxu0 }
 0x9c4   :  { %4714 = vmatprep.subr.bf16.mxu1 %v4894_v39  ;;  %v3416_v63 = vpop.f32.mrb[133].mxu0 }
 0x9c5   :  { %v4703_v23 = vpop.f32.mrb[134].mxu0 }
 0x9c6   :  { %v3680_v13 = vpack.c.bf16 %v4703_v23, %v4702_v2  ;;  %v3419_v54 = vpop.f32.mrb[135].mxu0 }
 0x9c7   :  { %4715 = vmatpush3.bf16.msra.mxu1 %v4894_v39  ;;  %v3679_v1 = vpack.c.bf16 %v3419_v54, %v3416_v63 }
 0x9ce   :  { %4717 = vmatmul.mubr.msk.bf16.vlgmr.msra.gmra.mrb[148].mxu1 %vm240_vm2, %v4896_v48 }
 0xa7b   :  { %v3051_v45 = vpop.f32.mrb[136].mxu1 }
 0xa7c   :  { %v6225_v22 = vmul.f32 %v3051_v45, %v6127_v30  ;;  %v4682_v62 = vpop.f32.mrb[137].mxu1 }
 0xa7d   :  { %v3054_v4 = vpop.f32.mrb[138].mxu1 }
 0xa7e   :  { %v6228_v3 = vmul.f32 %v3054_v4, %v6130_v29  ;;  %v4683_v58 = vpop.f32.mrb[139].mxu1 }
 0xa83   :  { %v3059_v32 = vpop.f32.mrb[140].mxu1 }
 0xa84   :  { %v6231_v16 = vmul.f32 %v3059_v32, %v6139_v26  ;;  %v4686_v52 = vpop.f32.mrb[141].mxu1 }
 0xa85   :  { %v3062_v6 = vpop.f32.mrb[142].mxu1  ;;  %v3852_v52 = vld [vmem:[%s6393_s5 + $0x10] sm:$0xff] }
 0xa86   :  { %v6234_v36 = vmul.f32 %v3062_v6, %v6141_v40  ;;  %v4687_v35 = vpop.f32.mrb[143].mxu1  ;;  %v3850_v6 = vld [vmem:[%s6393_s5] sm:$0xff] }
 0xa8b   :  { %v3067_v50 = vpop.f32.mrb[144].mxu1 }
 0xa8c   :  { %v6237_v30 = vmul.f32 %v3067_v50, %v6150_v34  ;;  %v4690_v60 = vpop.f32.mrb[145].mxu1 }
 0xa8d   :  { %v3070_v43 = vpop.f32.mrb[146].mxu1 }
 0xa8e   :  { %v6240_v29 = vmul.f32 %v3070_v43, %v6152_v24  ;;  %v4691_v9 = vpop.f32.mrb[147].mxu1  ;;  %v4903_v24 = vld [vmem:[#allocation2 + $0x140] sm:$0xff]  }
 0xa8f   :  { %4736 = vmatprep.subr.bf16.mxu1 %v4903_v24 }
 0xa90   :  { %4737 = vmatpush3.bf16.msra.mxu1 %v4903_v24 }
 0xa91   :  { %4738 = vmatprep.subr.bf16.mxu1 %v4904_v25 }
 0xa94   :  { %4739 = vmatpush3.bf16.msra.mxu1 %v4904_v25 }
 0xa95   :  { %4744 = vmatprep.subr.bf16.mxu1 %v5197_v59 }
 0xaa1   :  { %v4718_v55 = vpop.f32.mrb[148].mxu1 }
 0xaa2   :  { %5073 = vtanh.f32 %v4718_v55  ;;  %v3576_v26 = vpop.f32.mrb[149].mxu1  ;;  %v3853_v55 = vld [vmem:[%s6393_s5 + $0x18] sm:$0xff] }
 0xaa3   :  { %5075 = vtanh.f32 %v3576_v26  ;;  %v4719_v7 = vpop.f32.mrb[150].mxu1 }
 0xaa4   :  { %5077 = vtanh.f32 %v4719_v7  ;;  %v3579_v12 = vpop.f32.mrb[151].mxu1  ;;  %v3851_v7 = vld [vmem:[%s6393_s5 + $0x8] sm:$0xff] }
 0xaa5   :  { %5079 = vtanh.f32 %v3579_v12 }
 0xaac   :  { %v5074_v40 = vpop.eup %5073 }
 0xaad   :  { %v5076_v42 = vpop.eup %5075 }
 0xaae   :  { %v5078_v27 = vpop.eup %5077 }
 0xaaf   :  { %v5080_v47 = vpop.eup %5079  ;;  %v3601_v34 = vpack.c.bf16 %v5078_v27, %v5074_v40  ;;  %v3089_v27 = vsel %vm240_vm2, %v6136_v37, 0.0  ;;  %v3110_v37 = vsel %vm240_vm2, %v6231_v16, 0.0 }
 0xab0   :  { %v3600_v28 = vpack.c.bf16 %v5080_v47, %v5076_v42  ;;  %v3086_v42 = vsel %vm240_vm2, %v6133_v41, 0.0  ;;  %v3092_v47 = vsel %vm240_vm2, %v6144_v51, 0.0  ;;  %v3104_v41 = vsel %vm240_vm2, %v6225_v22, 0.0 }
 0xab1   :  { %v3107_v51 = vsel %vm240_vm2, %v6228_v3, 0.0 }
 0xab2   :  { %4724 = vmatprep.mubr.msk.bf16.mxu0 %vm240_vm2, %v3600_v28  ;;  %v3095_v28 = vsel %vm240_vm2, %v6147_v0, 0.0  ;;  %v3116_v0 = vsel %vm240_vm2, %v6237_v30, 0.0 }
 0xab3   :  { %4725 = vmatmul.mubr.msk.bf16.vlgmr.msra.gmra.mrb[136].mxu0 %vm240_vm2, %v3601_v34  ;;  %v3098_v34 = vsel %vm240_vm2, %v6155_v38, 0.0  ;;  %v3113_v38 = vsel %vm240_vm2, %v6234_v36, 0.0 }
 0xab4   :  { %4729 = vmatpush3.bf16.msra.mxu0 %v4901_v44  ;;  %4732 = vmatprep.mubr.msk.bf16.mxu0 %vm240_vm2, %v3679_v1 }
 0xab5   :  { %4730 = vmatprep.subr.bf16.mxu0 %v4902_v56 }
 0xab8   :  { %4731 = vmatpush3.bf16.msra.mxu0 %v4902_v56  ;;  %v3101_v56 = vsel %vm240_vm2, %v6158_v49, 0.0  ;;  %v3119_v49 = vsel %vm240_vm2, %v6240_v29, 0.0  ;;  %v3858_v29 = vld [vmem:[%s6391_s3 + $0x6c] sm:$0x3] }
 0xabf   :  { %4733 = vmatmul.mubr.msk.bf16.vlgmr.msra.gmra.mrb[136].mxu0 %vm240_vm2, %v3680_v13 }
 0xb92   :  { %v4734_v17 = vpop.f32.mrb[136].mxu0 }
 0xb93   :  { %v4752_v14 = vadd.f32 %v4734_v17, %v4170_v21  ;;  %v3733_v10 = vpop.f32.mrb[137].mxu0 }
 0xb94   :  { %v4753_v61 = vadd.f32 %v4170_v21, %v3733_v10  ;;  %v4735_v53 = vpop.f32.mrb[138].mxu0 }
 0xb95   :  { %v4181_v8 = vmul.f32 -1.442695, %v4752_v14  ;;  %v4754_v11 = vadd.f32 %v4735_v53, %v4170_v21  ;;  %v3736_v31 = vpop.f32.mrb[139].mxu0 }
 0xb96   :  { %v4179_v19 = vmul.f32 -1.442695, %v4753_v61  ;;  %v4755_v18 = vadd.f32 %v4170_v21, %v3736_v31  ;;  %v3126_v31 = vld [vmem:[%s6393_s5 + $0x40] sm:$0xff] }
 0xb97   :  { %5081 = vpow2.f32 %v4181_v8  ;;  %v4182_v39 = vmul.f32 -1.442695, %v4754_v11 }
 0xb98   :  { %5083 = vpow2.f32 %v4179_v19  ;;  %v4180_v48 = vmul.f32 -1.442695, %v4755_v18  ;;  %v3125_v19 = vld [vmem:[%s6393_s5 + $0x38] sm:$0xff] }
 0xb99   :  { %5085 = vpow2.f32 %v4182_v39 }
 0xb9a   :  { %5087 = vpow2.f32 %v4180_v48 }
 0xba1   :  { %v5082_v33 = vpop.eup %5081 }
 0xba2   :  { %v5084_v46 = vpop.eup %5083  ;;  %v3766_v44 = vadd.f32 1.0, %v5082_v33 }
 0xba3   :  { %v5086_v2 = vpop.eup %5085  ;;  %v3764_v63 = vadd.f32 1.0, %v5084_v46 }
 0xba4   :  { %v5088_v23 = vpop.eup %5087  ;;  %5089 = vrcp.f32 %v3766_v44  ;;  %v3767_v13 = vadd.f32 1.0, %v5086_v2  ;;  %v3128_v2 = vld [vmem:[%s6393_s5 + $0x50] sm:$0xff] }
 0xba5   :  { %5091 = vrcp.f32 %v3764_v63  ;;  %v3765_v54 = vadd.f32 1.0, %v5088_v23  ;;  %v3127_v63 = vld [vmem:[%s6393_s5 + $0x48] sm:$0xff] }
 0xba6   :  { %5093 = vrcp.f32 %v3767_v13 }
 0xba7   :  { %5095 = vrcp.f32 %v3765_v54 }
 0xbae   :  { %v5090_v1 = vpop.eup %5089 }
 0xbaf   :  { %v5092_v45 = vpop.eup %5091 }
 0xbb0   :  { %v5094_v62 = vpop.eup %5093 }
 0xbb1   :  { %v5096_v4 = vpop.eup %5095  ;;  %v3782_v58 = vpack.c.bf16 %v5094_v62, %v5090_v1 }
 0xbb2   :  { %v3781_v32 = vpack.c.bf16 %v5096_v4, %v5092_v45  ;;  %v3130_v4 = vld [vmem:[%s6393_s5 + $0x60] sm:$0xff] }
 0xbb4   :  { %4740 = vmatprep.mubr.msk.bf16.mxu1 %vm240_vm2, %v3781_v32 }
 0xbb5   :  { %4741 = vmatmul.mubr.msk.bf16.vlgmr.msra.gmra.mrb[152].mxu1 %vm240_vm2, %v3782_v58  ;;  %v3129_v58 = vld [vmem:[%s6393_s5 + $0x58] sm:$0xff] }
 0xbb6   :  { %4748 = vmatprep.mubr.msk.bf16.mxu1 %vm5198_vm3, %v5197_v59 }
 0xc88   :  { %v4742_v35 = vpop.f32.mrb[152].mxu1 }
 0xc89   :  { %v3856_v50 = vmul.f32 %v4742_v35, %v3852_v52  ;;  %v3835_v60 = vpop.f32.mrb[153].mxu1 }
 0xc8a   :  { %v3854_v43 = vmul.f32 %v3850_v6, %v3835_v60  ;;  %v4743_v9 = vpop.f32.mrb[154].mxu1 }
 0xc8b   :  { %3871 = vperm.xlu1 %4773, %v3856_v50   ;;  %v3838_v26 = vpop.f32.mrb[155].mxu1  ;;  %v3857_v12 = vmul.f32 %v4743_v9, %v3853_v55  ;;  %v3132_v55 = vld [vmem:[%s6393_s5 + $0x70] sm:$0xff] }
 0xc8c   :  { %3861 = vperm.xlu0 %4772, %v3854_v43   ;;  %v3855_v40 = vmul.f32 %v3851_v7, %v3838_v26  ;;  %v3131_v26 = vld [vmem:[%s6393_s5 + $0x68] sm:$0xff] }
 0xc8f   :  { %3876 = vperm.xlu1 %4773, %v3857_v12  }
 0xc90   :  { %3866 = vperm.xlu0 %4772, %v3855_v40  }
 0xcaf   :  { %3087 = vadd.xlane.f32.xlu0 %v3086_v42 }
 0xcb3   :  { %3090 = vadd.xlane.f32.xlu1 %v3089_v27  ;;  %3093 = vadd.xlane.f32.xlu0 %v3092_v47 }
 0xcb7   :  { %3099 = vadd.xlane.f32.xlu1 %v3098_v34  ;;  %3096 = vadd.xlane.f32.xlu0 %v3095_v28 }
 0xcbb   :  { %3105 = vadd.xlane.f32.xlu1 %v3104_v41  ;;  %3102 = vadd.xlane.f32.xlu0 %v3101_v56 }
 0xcbf   :  { %3111 = vadd.xlane.f32.xlu1 %v3110_v37  ;;  %3108 = vadd.xlane.f32.xlu0 %v3107_v51  ;;  %v3133_v37 = vld [vmem:[%s6393_s5 + $0x78] sm:$0xff] }
 0xcc3   :  { %3117 = vadd.xlane.f32.xlu1 %v3116_v0  ;;  %3114 = vadd.xlane.f32.xlu0 %v3113_v38 }
 0xcc7   :  { %3120 = vadd.xlane.f32.xlu0 %v3119_v49 }
 0xd0a   :  { %v3872_v22 = vpop.permute.xlu1 %3871 }
 0xd0b   :  { %v3862_v24 = vpop.permute.xlu0 %3861  ;;  %v3881_v25 = vmul.f32 %v6202_v20, %v3872_v22  ;;  %v3122_v20 = vld [vmem:[%s6393_s5 + $0x20] sm:$0xff] }
 0xd0c   :  { %v3879_v17 = vmul.f32 %v3862_v24, %v6204_v15 }
 0xd0e   :  { %v3877_v16 = vpop.permute.xlu1 %3876 }
 0xd0f   :  { %v3882_v3 = vmul.f32 %v6206_v57, %v3877_v16  ;;  %v3867_v21 = vpop.permute.xlu0 %3866 }
 0xd10   :  { %v3880_v30 = vmul.f32 %v3867_v21, %v6210_v5  ;;  %v3123_v5 = vld [vmem:[%s6393_s5 + $0x28] sm:$0xff] }
 0xd11   :  { %v3884_v14 = vpack.c.bf16 %v3882_v3, %v3881_v25 }
 0xd12   :  { %v3883_v36 = vpack.c.bf16 %v3880_v30, %v3879_v17 }
 0xd14   :  { %4745 = vmatpush3.bf16.msra.mxu1 %v3883_v36 }
 0xd15   :  { %4746 = vmatprep.subr.bf16.mxu1 %v5197_v59  ;;  %v3124_v59 = vld [vmem:[%s6393_s5 + $0x30] sm:$0xff] }
 0xd18   :  { %4747 = vmatpush3.bf16.msra.mxu1 %v3884_v14 }
 0xd1b   :  { %4749 = vmatmul.mubr.msk.bf16.vlgmr.msra.gmra.mrb[156].mxu1 %vm240_vm2, %v3858_v29 }
 0xd3c   :  { %v3088_v57 = vpop.xlane.xlu0 %3087 }
 0xd3d   :  { %v3146_v15 = vmul.f32 %v3122_v20, %v3088_v57 }
 0xd3f   :  { %v4140_v10 = vmul.f32 -1.442695, %v3146_v15 }
 0xd40   :  { %v3091_v61 = vpop.xlane.xlu1 %3090  ;;  %v3094_v53 = vpop.xlane.xlu0 %3093 }
 0xd41   :  { %5097 = vpow2.f32 %v4140_v10  ;;  %v3147_v8 = vmul.f32 %v3123_v5, %v3091_v61  ;;  %v3148_v11 = vmul.f32 %v3124_v59, %v3094_v53 }
 0xd43   :  { %v4141_v18 = vmul.f32 -1.442695, %v3147_v8  ;;  %v4142_v39 = vmul.f32 -1.442695, %v3148_v11 }
 0xd44   :  { %v3100_v48 = vpop.xlane.xlu1 %3099  ;;  %v3097_v33 = vpop.xlane.xlu0 %3096 }
 0xd45   :  { %5099 = vpow2.f32 %v4141_v18  ;;  %v3150_v46 = vmul.f32 %v3126_v31, %v3100_v48  ;;  %v3149_v44 = vmul.f32 %v3125_v19, %v3097_v33 }
 0xd46   :  { %5101 = vpow2.f32 %v4142_v39 }
 0xd47   :  { %v4144_v23 = vmul.f32 -1.442695, %v3150_v46  ;;  %v4143_v13 = vmul.f32 -1.442695, %v3149_v44 }
 0xd48   :  { %v3106_v54 = vpop.xlane.xlu1 %3105  ;;  %v3103_v1 = vpop.xlane.xlu0 %3102 }
 0xd49   :  { %5103 = vpow2.f32 %v4144_v23  ;;  %v3152_v45 = vmul.f32 %v3128_v2, %v3106_v54  ;;  %v3151_v62 = vmul.f32 %v3127_v63, %v3103_v1 }
 0xd4a   :  { %5105 = vpow2.f32 %v4143_v13 }
 0xd4b   :  { %v5098_v32 = vpop.eup %5097  ;;  %v4146_v52 = vmul.f32 -1.442695, %v3152_v45  ;;  %v4145_v6 = vmul.f32 -1.442695, %v3151_v62 }
 0xd4c   :  { %v3194_v35 = vadd.f32 1.0, %v5098_v32  ;;  %v3112_v50 = vpop.xlane.xlu1 %3111  ;;  %v3109_v60 = vpop.xlane.xlu0 %3108 }
 0xd4d   :  { %5107 = vpow2.f32 %v4146_v52  ;;  %v3154_v43 = vmul.f32 %v3130_v4, %v3112_v50  ;;  %v3153_v9 = vmul.f32 %v3129_v58, %v3109_v60  ;;  %v3134_v58 = vld [vmem:[%s6393_s5 + $0x80] sm:$0xff]  ;;  %v3135_v50 = vld [vmem:[%s6393_s5 + $0x88] sm:$0xff] }
 0xd4e   :  { %5109 = vrcp.f32 %v3194_v35 }
 0xd4f   :  { %v5100_v7 = vpop.eup %5099  ;;  %5111 = vpow2.f32 %v4145_v6  ;;  %v4148_v12 = vmul.f32 -1.442695, %v3154_v43  ;;  %v4147_v27 = vmul.f32 -1.442695, %v3153_v9 }
 0xd50   :  { %v5102_v40 = vpop.eup %5101  ;;  %v3195_v42 = vadd.f32 1.0, %v5100_v7  ;;  %v3118_v47 = vpop.xlane.xlu1 %3117 }
 0xd51   :  { %v3115_v34 = vpop.xlane.xlu0 %3114  ;;  %v3196_v28 = vadd.f32 1.0, %v5102_v40  ;;  %5113 = vpow2.f32 %v4148_v12  ;;  %v3156_v41 = vmul.f32 %v3132_v55, %v3118_v47 }
 0xd52   :  { %v3155_v56 = vmul.f32 %v3131_v26, %v3115_v34  ;;  %5115 = vrcp.f32 %v3195_v42  ;;  %v3136_v26 = vld [vmem:[%s6393_s5 + $0x90] sm:$0xff] }
 0xd53   :  { %v5104_v51 = vpop.eup %5103  ;;  %5117 = vrcp.f32 %v3196_v28  ;;  %v4150_v0 = vmul.f32 -1.442695, %v3156_v41 }
 0xd54   :  { %v5106_v38 = vpop.eup %5105  ;;  %v3198_v49 = vadd.f32 1.0, %v5104_v51  ;;  %5119 = vpow2.f32 %v4147_v27  ;;  %v4149_v22 = vmul.f32 -1.442695, %v3155_v56  ;;  %v3138_v56 = vld [vmem:[%s6393_s5 + $0xa0] sm:$0xff] }
 0xd55   :  { %v3121_v24 = vpop.xlane.xlu0 %3120  ;;  %v3197_v16 = vadd.f32 1.0, %v5106_v38  ;;  %5121 = vpow2.f32 %v4150_v0 }
 0xd56   :  { %v3157_v25 = vmul.f32 %v3133_v37, %v3121_v24  ;;  %5123 = vrcp.f32 %v3198_v49 }
 0xd57   :  { %v5108_v3 = vpop.eup %5107  ;;  %5125 = vrcp.f32 %v3197_v16 }
 0xd58   :  { %v4151_v21 = vmul.f32 -1.442695, %v3157_v25  ;;  %v5110_v17 = vpop.eup %5109  ;;  %v3200_v30 = vadd.f32 1.0, %v5108_v3  ;;  %5127 = vpow2.f32 %v4149_v22  ;;  %v3137_v22 = vld [vmem:[%s6393_s5 + $0x98] sm:$0xff] }
 0xd59   :  { %v5112_v14 = vpop.eup %5111  ;;  %v3230_v36 = vadd.f32 1e-08, %v5110_v17 }
 0xd5a   :  { %5129 = vpow2.f32 %v4151_v21  ;;  %v3199_v29 = vadd.f32 1.0, %v5112_v14 }
 0xd5b   :  { %5131 = vrcp.f32 %v3200_v30  ;;  %v5114_v20 = vpop.eup %5113 }
 0xd5c   :  { %5133 = vlog2.f32 %v3230_v36  ;;  %v5116_v57 = vpop.eup %5115  ;;  %v3202_v15 = vadd.f32 1.0, %v5114_v20 }
 0xd5d   :  { %5135 = vrcp.f32 %v3199_v29  ;;  %v5118_v5 = vpop.eup %5117  ;;  %v3231_v59 = vadd.f32 1e-08, %v5116_v57 }
 0xd5e   :  { %v5120_v10 = vpop.eup %5119  ;;  %v3232_v61 = vadd.f32 1e-08, %v5118_v5  ;;  %5137 = vrcp.f32 %v3202_v15 }
 0xd5f   :  { %v5122_v53 = vpop.eup %5121  ;;  %5139 = vlog2.f32 %v3231_v59  ;;  %v3201_v8 = vadd.f32 1.0, %v5120_v10  ;;  %v3140_v10 = vld [vmem:[%s6393_s5 + $0xb0] sm:$0xff] }
 0xd60   :  { %v5124_v11 = vpop.eup %5123  ;;  %5141 = vlog2.f32 %v3232_v61  ;;  %v3204_v31 = vadd.f32 1.0, %v5122_v53  ;;  %v3139_v61 = vld [vmem:[%s6393_s5 + $0xa8] sm:$0xff] }
 0xd61   :  { %v5126_v19 = vpop.eup %5125  ;;  %v3234_v18 = vadd.f32 1e-08, %v5124_v11  ;;  %5143 = vrcp.f32 %v3201_v8 }
 0xd62   :  { %v5128_v39 = vpop.eup %5127  ;;  %v3233_v48 = vadd.f32 1e-08, %v5126_v19  ;;  %5145 = vrcp.f32 %v3204_v31 }
 0xd63   :  { %5147 = vlog2.f32 %v3234_v18  ;;  %v3203_v46 = vadd.f32 1.0, %v5128_v39 }
 0xd64   :  { %v5130_v33 = vpop.eup %5129  ;;  %5149 = vlog2.f32 %v3233_v48 }
 0xd65   :  { %v5132_v44 = vpop.eup %5131  ;;  %v3205_v2 = vadd.f32 1.0, %v5130_v33  ;;  %5151 = vrcp.f32 %v3203_v46 }
 0xd66   :  { %v5134_v63 = vpop.eup %5133  ;;  %v3236_v23 = vadd.f32 1e-08, %v5132_v44  ;;  %v3142_v44 = vld [vmem:[%s6393_s5 + $0xc0] sm:$0xff] }
 0xd67   :  { %v5136_v13 = vpop.eup %5135  ;;  %v3243_v54 = vmul.f32 0.6931472, %v5134_v63  ;;  %5153 = vrcp.f32 %v3205_v2 }
 0xd68   :  { %5155 = vlog2.f32 %v3236_v23  ;;  %v3235_v1 = vadd.f32 1e-08, %v5136_v13  ;;  %v5138_v45 = vpop.eup %5137  ;;  %v3141_v23 = vld [vmem:[%s6393_s5 + $0xb8] sm:$0xff] }
 0xd69   :  { %v3266_v62 = vsub.f32 0.0, %v3243_v54  ;;  %v5140_v4 = vpop.eup %5139  ;;  %v3238_v32 = vadd.f32 1e-08, %v5138_v45 }
 0xd6a   :  { %5157 = vlog2.f32 %v3235_v1  ;;  %v5142_v52 = vpop.eup %5141  ;;  %v3245_v6 = vmul.f32 0.6931472, %v5140_v4 }
 0xd6b   :  { %v5144_v35 = vpop.eup %5143  ;;  %v3247_v60 = vmul.f32 0.6931472, %v5142_v52  ;;  %5159 = vlog2.f32 %v3238_v32  ;;  %v3278_v9 = vmul.f32 %v3266_v62, %v3134_v58 }
 0xd6c   :  { %v5146_v43 = vpop.eup %5145  ;;  %v3267_v55 = vsub.f32 0.0, %v3245_v6  ;;  %v3237_v7 = vadd.f32 1e-08, %v5144_v35 }
 0xd6d   :  { %v5148_v12 = vpop.eup %5147  ;;  %v3268_v40 = vsub.f32 0.0, %v3247_v60  ;;  %v3240_v42 = vadd.f32 1e-08, %v5146_v43  ;;  %v3291_v0 = vsel %vm3290_vm1, %v3278_v9, 0.0  ;;  %v3143_v60 = vld [vmem:[%s6393_s5 + $0xc8] sm:$0xff] }
 0xd6e   :  { %v5150_v27 = vpop.eup %5149  ;;  %v3279_v47 = vmul.f32 %v3267_v55, %v3135_v50  ;;  %v3251_v34 = vmul.f32 0.6931472, %v5148_v12  ;;  %5161 = vlog2.f32 %v3237_v7  ;;  %v3144_v50 = vld [vmem:[%s6393_s5 + $0xd0] sm:$0xff] }
 0xd6f   :  { %v5152_v28 = vpop.eup %5151  ;;  %v3280_v41 = vmul.f32 %v3268_v40, %v3136_v26  ;;  %v3249_v37 = vmul.f32 0.6931472, %v5150_v27  ;;  %5163 = vlog2.f32 %v3240_v42  ;;  %v3145_v26 = vld [vmem:[%s6393_s5 + $0xd8] sm:$0xff] }
 0xd70   :  { %v3292_v38 = vsel %vm3290_vm1, %v3279_v47, 0.0  ;;  %v3270_v49 = vsub.f32 0.0, %v3251_v34  ;;  %v3239_v24 = vadd.f32 1e-08, %v5152_v28 }
 0xd71   :  { %v5154_v51 = vpop.eup %5153  ;;  %v3293_v25 = vadd.f32 %v3292_v38, %v3291_v0  ;;  %v3269_v3 = vsub.f32 0.0, %v3249_v37  ;;  %v3294_v17 = vsel %vm3290_vm1, %v3280_v41, 0.0 }
 0xd72   :  { %v5156_v16 = vpop.eup %5155  ;;  %v3241_v21 = vadd.f32 1e-08, %v5154_v51  ;;  %5165 = vlog2.f32 %v3239_v24  ;;  %v3282_v29 = vmul.f32 %v3270_v49, %v3138_v56 }
 0xd73   :  { %v3255_v30 = vmul.f32 0.6931472, %v5156_v16  ;;  %v3295_v36 = vadd.f32 %v3294_v17, %v3293_v25  ;;  %v3281_v20 = vmul.f32 %v3269_v3, %v3137_v22 }
 0xd74   :  { %v5158_v14 = vpop.eup %5157  ;;  %5167 = vlog2.f32 %v3241_v21  ;;  %v3298_v31 = vsel %vm3290_vm1, %v3282_v29, 0.0 }
 0xd75   :  { %v3272_v57 = vsub.f32 0.0, %v3255_v30  ;;  %v3253_v15 = vmul.f32 0.6931472, %v5158_v14  ;;  %v5160_v5 = vpop.eup %5159  ;;  %v3296_v59 = vsel %vm3290_vm1, %v3281_v20, 0.0 }
 0xd76   :  { %v3297_v53 = vadd.f32 %v3296_v59, %v3295_v36  ;;  %v3259_v11 = vmul.f32 0.6931472, %v5160_v5 }
 0xd77   :  { %v3271_v8 = vsub.f32 0.0, %v3253_v15  ;;  %v3284_v18 = vmul.f32 %v3272_v57, %v3140_v10 }
 0xd78   :  { %v5162_v19 = vpop.eup %5161  ;;  %v3299_v39 = vadd.f32 %v3298_v31, %v3297_v53  ;;  %v3274_v33 = vsub.f32 0.0, %v3259_v11 }
 0xd79   :  { %v3283_v48 = vmul.f32 %v3271_v8, %v3139_v61  ;;  %v5164_v46 = vpop.eup %5163  ;;  %v3257_v2 = vmul.f32 0.6931472, %v5162_v19  ;;  %v3302_v62 = vsel %vm3290_vm1, %v3284_v18, 0.0 }
 0xd7a   :  { %v3263_v13 = vmul.f32 0.6931472, %v5164_v46  ;;  %v3286_v4 = vmul.f32 %v3274_v33, %v3142_v44 }
 0xd7b   :  { %v3300_v63 = vsel %vm3290_vm1, %v3283_v48, 0.0  ;;  %v3273_v1 = vsub.f32 0.0, %v3257_v2 }
 0xd7c   :  { %v3301_v54 = vadd.f32 %v3300_v63, %v3299_v39  ;;  %v5166_v45 = vpop.eup %5165  ;;  %v3276_v6 = vsub.f32 0.0, %v3263_v13  ;;  %v3306_v40 = vsel %vm3290_vm1, %v3286_v4, 0.0 }
 0xd7d   :  { %v3285_v52 = vmul.f32 %v3273_v1, %v3141_v23  ;;  %v3261_v35 = vmul.f32 0.6931472, %v5166_v45 }
 0xd7e   :  { %v5168_v58 = vpop.eup %5167  ;;  %v3303_v32 = vadd.f32 %v3302_v62, %v3301_v54  ;;  %v3288_v42 = vmul.f32 %v3276_v6, %v3144_v50 }
 0xd7f   :  { %v3265_v43 = vmul.f32 0.6931472, %v5168_v58  ;;  %v3304_v9 = vsel %vm3290_vm1, %v3285_v52, 0.0  ;;  %v3275_v55 = vsub.f32 0.0, %v3261_v35 }
 0xd80   :  { %v3305_v7 = vadd.f32 %v3304_v9, %v3303_v32  ;;  %v3310_v56 = vsel %vm3290_vm1, %v3288_v42, 0.0 }
 0xd81   :  { %v3277_v12 = vsub.f32 0.0, %v3265_v43  ;;  %v3287_v27 = vmul.f32 %v3275_v55, %v3143_v60 }
 0xd82   :  { %v3307_v34 = vadd.f32 %v3306_v40, %v3305_v7 }
 0xd83   :  { %v3289_v47 = vmul.f32 %v3277_v12, %v3145_v26  ;;  %v3308_v28 = vsel %vm3290_vm1, %v3287_v27, 0.0 }
 0xd84   :  { %v3309_v41 = vadd.f32 %v3308_v28, %v3307_v34 }
 0xd85   :  { %v3312_v37 = vsel %vm3290_vm1, %v3289_v47, 0.0 }
 0xd86   :  { %v3311_v51 = vadd.f32 %v3310_v56, %v3309_v41 }
 0xd88   :  { %v3313_v0 = vadd.f32 %v3312_v37, %v3311_v51 }
 0xd8a   :  { %v3314_v38 = vrot.slane %v3313_v0, 4 }
 0xd8c   :  { %v3315_v49 = vadd.f32 %v3314_v38, %v3313_v0 }
 0xd8e   :  { %v3316_v22 = vrot.slane %v3315_v49, 2 }
 0xd90   :  { %v3317_v24 = vadd.f32 %v3316_v22, %v3315_v49 }
 0xd92   :  { %v3318_v16 = vrot.slane %v3317_v24, 1 }
 0xd94   :  { %v3319_v25 = vadd.f32 %v3318_v16, %v3317_v24 }
 0xd96   :  { %v3320_v3 = vmul.f32 0.005, %v3319_v25 }
 0xd98   :  { %3930 = vperm.xlu1 %4773, %v3320_v3  }
 0xdee   :  { %v3922_v21 = vpop.f32.mrb[156].mxu1 }
 0xdef   :  { %v4750_v17 = vpop.f32.mrb[157].mxu1 }
 0xdf0   :  { %v3925_v30 = vpop.f32.mrb[158].mxu1 }
 0xdf1   :  { %v4751_v14 = vpop.f32.mrb[159].mxu1 }
 0xe17   :  { %v3931_v36 = vpop.permute.xlu1 %3930 }
 0xe18   :  { %v3933_v29 = vsel %vm114_vm0, %v3922_v21, %v3931_v36 }
 0xe19   :  { %3937 = vst.msk [vmem:[%s6395_s7 + $0x18] sm:$0xff] %vm240_vm2, %v3933_v29 }
 0xe1a   :  { %3942 = vsyncpa [#allocation3], 1 }

</bundles_post_ra>
